<compile_context>
chip_gen: v7x
topology: tpu7x:2x2x1
jax: 0.10.0
libtpu: 0.0.40
codegen_flags: <defaults>
</compile_context>

<pallas_src>
import functools
import math

import jax
import jax.numpy as jnp
from jax.experimental import pallas as pl
from jax.experimental.pallas import tpu as pltpu


def _signed_log(x):
    # sign(x) * log(|x| + 1); y >= 0 so sign handling is a single select.
    y = jnp.log(jnp.abs(x) + 1.0)
    return jnp.where(x < 0, -y, y)


def _cpb_kernel(num_hidden, q_ref, kv_ref, *refs):
    """One grid step: one (batch*group) element x one tile of TI query rows.

    Refs (VMEM tiles), N = TI * J:
      q_ref  : (2, N)      query coords, repeated J times along the flat axis
      kv_ref : (1, 2, N)   key coords, tiled TI times along the flat axis
      w1     : (D, 2),  b1   : (D, 1)
      (wh_l, bh_l) * num_hidden : (D, D), (D, 1)
      wout   : (O, D),  bout : (O, 1)
      out    : (1, O, N)
    """
    w1_ref, b1_ref = refs[0], refs[1]
    hidden_refs = refs[2:2 + 2 * num_hidden]
    wout_ref, bout_ref = refs[2 + 2 * num_hidden], refs[3 + 2 * num_hidden]
    out_ref = refs[4 + 2 * num_hidden]

    # Relative positions + signed log, feature-major and lane-dense: (2, N).
    bias = _signed_log(q_ref[...] - kv_ref[0])

    # Linear(2, D) + ReLU as two VPU broadcast-multiplies (K=2 is too small
    # for a useful MXU pass) -> (D, N).
    w1 = w1_ref[...]                              # (D, 2)
    h = jnp.maximum(
        w1[:, 0:1] * bias[0:1, :] + w1[:, 1:2] * bias[1:2, :] + b1_ref[...],
        0.0)

    # Hidden Linear(D, D) + ReLU: one batched MXU matmul per layer.
    for l in range(num_hidden):
        wh = hidden_refs[2 * l][...]
        bh = hidden_refs[2 * l + 1][...]
        h = jnp.maximum(
            jnp.dot(wh, h, preferred_element_type=jnp.float32) + bh, 0.0)

    # Output Linear(D, O): one matmul, then a single lane-dense store.
    res = jnp.dot(wout_ref[...], h, preferred_element_type=jnp.float32) \
        + bout_ref[...]
    out_ref[0] = res.astype(out_ref.dtype)


def _choose_ti(i_len, j_len, d, o, bg, budget_bytes=20 << 20):
    """Pick the query-row tile TI (and padded I) for the flat N = TI*J layout."""
    align = 128 // math.gcd(128, j_len)           # smallest TI with TI*J % 128 == 0

    def vmem(ti):
        n = ti * j_len
        # double-buffered q/kv/out blocks + (D,N) activations + temps, f32.
        return 4 * n * (8 + 2 * o + 2 * d + 8)

    ti = i_len
    if vmem(ti) > budget_bytes or (bg < 2 and i_len >= 2 * align):
        # Tile I. TI must be a multiple of `align` so TI*J is a 128 multiple.
        ti = align
        while vmem(2 * ti) <= budget_bytes and 2 * ti < i_len:
            ti *= 2
    i_pad = ((i_len + ti - 1) // ti) * ti
    return ti, i_pad


def cpb_forward(grid_q, grid_kv, params, *, heads, offset_groups):
    """Pallas CPB forward. Returns the (B, heads, I, J) relative position bias."""
    hq, wq, c = grid_q.shape
    bg, hk, wk, _ = grid_kv.shape
    assert c == 2 and bg % offset_groups == 0 and heads % offset_groups == 0
    g = offset_groups
    b = bg // g
    o = heads // g
    i_len = hq * wq
    j_len = hk * wk
    d = params["w1"].shape[0]
    num_hidden = len(params["hidden_w"])
    out_dtype = grid_q.dtype

    ti, i_pad = _choose_ti(i_len, j_len, d, o, bg)
    n = ti * j_len
    n_i = i_pad // ti

    # ---- wrapper-side layout plumbing (no compute hoisted out of the kernel)
    q_flat = grid_q.reshape(i_len, 2).astype(jnp.float32)           # (I, 2)
    if i_pad > i_len:
        q_flat = jnp.pad(q_flat, ((0, i_pad - i_len), (0, 0)))
    # q repeated J times: q_rep[c, i*J + j] = q[i, c]        -> (2, I_pad*J)
    q_rep = jnp.broadcast_to(q_flat.T[:, :, None],
                             (2, i_pad, j_len)).reshape(2, i_pad * j_len)
    # kv tiled TI times: kv_rep[bg, c, i*J + j] = kv[bg, j, c] -> (BG, 2, TI*J)
    kv_t = grid_kv.reshape(bg, j_len, 2).transpose(0, 2, 1).astype(jnp.float32)
    kv_rep = jnp.tile(kv_t, (1, 1, ti))

    b1 = params["b1"].reshape(d, 1)
    bout = params["bout"].reshape(o, 1)
    hidden_b = [x.reshape(d, 1) for x in params["hidden_b"]]

    def wspec(shape):
        return pl.BlockSpec(shape, lambda bi, it: (0,) * len(shape))

    in_specs = [
        pl.BlockSpec((2, n), lambda bi, it: (0, it)),          # q coords tile
        pl.BlockSpec((1, 2, n), lambda bi, it: (bi, 0, 0)),    # kv coords (per bg)
        wspec((d, 2)), wspec((d, 1)),                          # w1, b1
    ]
    args = [q_rep, kv_rep, params["w1"], b1]
    for whi, bhi in zip(params["hidden_w"], hidden_b):
        in_specs += [wspec((d, d)), wspec((d, 1))]
        args += [whi, bhi]
    in_specs += [wspec((o, d)), wspec((o, 1))]
    args += [params["wout"], bout]

    out = pl.pallas_call(
        functools.partial(_cpb_kernel, num_hidden),
        out_shape=jax.ShapeDtypeStruct((bg, o, i_pad * j_len), out_dtype),
        grid_spec=pltpu.PrefetchScalarGridSpec(
            num_scalar_prefetch=0,
            grid=(bg, n_i),
            in_specs=in_specs,
            out_specs=pl.BlockSpec((1, o, n), lambda bi, it: (bi, 0, it)),
        ),
        compiler_params=pltpu.CompilerParams(
            dimension_semantics=("parallel", "parallel")),
    )(*args)

    # (BG, O, I_pad*J) -> (b, g*o, I, J): pure reshape (+ slice if padded).
    out = out.reshape(bg, o, i_pad, j_len)
    if i_pad > i_len:
        out = out[:, :, :i_len, :]
    return out.reshape(b, g * o, i_len, j_len)


def init_params(key, dim, heads, offset_groups, depth):
    """Deterministic PyTorch-Linear-style init, weights kept in (out, in) layout."""
    o = heads // offset_groups
    n_hidden = depth - 1
    keys = jax.random.split(key, 2 * (depth + 1))

    def lin(kw, kb, out_f, in_f):
        bound = 1.0 / (in_f ** 0.5)
        w = jax.random.uniform(kw, (out_f, in_f), jnp.float32, -bound, bound)
        bb = jax.random.uniform(kb, (out_f,), jnp.float32, -bound, bound)
        return w, bb

    w1, b1 = lin(keys[0], keys[1], dim, 2)
    hidden_w, hidden_b = [], []
    for l in range(n_hidden):
        wh, bh = lin(keys[2 + 2 * l], keys[3 + 2 * l], dim, dim)
        hidden_w.append(wh)
        hidden_b.append(bh)
    wout, bout = lin(keys[-2], keys[-1], o, dim)
    return {"w1": w1, "b1": b1, "hidden_w": hidden_w, "hidden_b": hidden_b,
            "wout": wout, "bout": bout}


def _reference(grid_q, grid_kv, params, *, heads, offset_groups):
    """Pure-JAX replica of the PyTorch forward, for verification."""
    hq, wq, _ = grid_q.shape
    bg, hk, wk, _ = grid_kv.shape
    g = offset_groups
    b = bg // g
    o = heads // g
    i_len = hq * wq
    j_len = hk * wk
    q = grid_q.reshape(1, i_len, 2)
    kv = grid_kv.reshape(bg, j_len, 2)
    pos = q[:, :, None, :] - kv[:, None, :, :]                    # (BG, I, J, 2)
    x = jnp.sign(pos) * jnp.log(jnp.abs(pos) + 1.0)
    x = jax.nn.relu(x @ params["w1"].T + params["b1"])
    for wh, bh in zip(params["hidden_w"], params["hidden_b"]):
        x = jax.nn.relu(x @ wh.T + bh)
    x = x @ params["wout"].T + params["bout"]                     # (BG, I, J, O)
    x = x.reshape(b, g, i_len, j_len, o)
    x = jnp.transpose(x, (0, 1, 4, 2, 3)).reshape(b, g * o, i_len, j_len)
    return x


if __name__ == "__main__":
    # Small shapes consistent with the module.
    dim = 32
    heads = 8
    offset_groups = 4
    depth = 2
    b = 2
    hq = wq = 8       # query grid  -> I = 64
    hk = wk = 8       # key grid    -> J = 64

    key = jax.random.PRNGKey(0)
    k_off, k_p = jax.random.split(key, 2)

    ys, xs = jnp.meshgrid(jnp.linspace(-1.0, 1.0, hq),
                          jnp.linspace(-1.0, 1.0, wq), indexing="ij")
    grid_q = jnp.stack([ys, xs], axis=-1).astype(jnp.float32)          # (h, w, 2)
    grid_kv = (grid_q[None] +
               0.1 * jax.random.normal(k_off, (b * offset_groups, hk, wk, 2),
                                       jnp.float32))                   # (b*g, h, w, 2)

    params = init_params(k_p, dim, heads, offset_groups, depth)

    out = cpb_forward(grid_q, grid_kv, params,
                      heads=heads, offset_groups=offset_groups)
    out = jax.block_until_ready(out)

    ref = _reference(grid_q, grid_kv, params,
                     heads=heads, offset_groups=offset_groups)

    assert out.shape == (b, heads, hq * wq, hk * wk)
    assert jnp.allclose(out, ref, atol=5e-4, rtol=5e-4), \
        float(jnp.max(jnp.abs(out - ref)))

    print("KERNEL_OK")
</pallas_src>

<mosaic_0001>
module attributes {stable_mosaic.version = 11 : i64} {
  func.func @_cpb_kernel(%arg0: i32, %arg1: i32, %arg2: memref<2x4096xf32, #tpu.memory_space<vmem>>, %arg3: memref<1x2x4096xf32, #tpu.memory_space<vmem>>, %arg4: memref<32x2xf32, #tpu.memory_space<vmem>>, %arg5: memref<32x1xf32, #tpu.memory_space<vmem>>, %arg6: memref<32x32xf32, #tpu.memory_space<vmem>>, %arg7: memref<32x1xf32, #tpu.memory_space<vmem>>, %arg8: memref<2x32xf32, #tpu.memory_space<vmem>>, %arg9: memref<2x1xf32, #tpu.memory_space<vmem>>, %arg10: memref<1x2x4096xf32, #tpu.memory_space<vmem>>) attributes {dimension_semantics = [#tpu.dimension_semantics<parallel>, #tpu.dimension_semantics<parallel>], iteration_bounds = array<i64: 8, 1>, scalar_prefetch = 0 : i64, scratch_operands = 0 : i64, tpu.core_type = #tpu.core_type<tc>, window_params = [{transform_indices = @transform_0, window_bounds = array<i64: 2, 4096>}, {transform_indices = @transform_1, window_bounds = array<i64: 1, 2, 4096>}, {pipeline_mode = #tpu.pipeline_mode<synchronous>, transform_indices = @transform_2, window_bounds = array<i64: 32, 2>}, {pipeline_mode = #tpu.pipeline_mode<synchronous>, transform_indices = @transform_3, window_bounds = array<i64: 32, 1>}, {pipeline_mode = #tpu.pipeline_mode<synchronous>, transform_indices = @transform_4, window_bounds = array<i64: 32, 32>}, {pipeline_mode = #tpu.pipeline_mode<synchronous>, transform_indices = @transform_5, window_bounds = array<i64: 32, 1>}, {pipeline_mode = #tpu.pipeline_mode<synchronous>, transform_indices = @transform_6, window_bounds = array<i64: 2, 32>}, {pipeline_mode = #tpu.pipeline_mode<synchronous>, transform_indices = @transform_7, window_bounds = array<i64: 2, 1>}, {transform_indices = @transform_8, window_bounds = array<i64: 1, 2, 4096>}]} {
    %c0 = arith.constant 0 : index
    %c0_0 = arith.constant 0 : index
    %0 = vector.load %arg2[%c0, %c0_0] : memref<2x4096xf32, #tpu.memory_space<vmem>>, vector<2x4096xf32>
    %c0_1 = arith.constant 0 : index
    %c0_2 = arith.constant 0 : index
    %c0_3 = arith.constant 0 : index
    %1 = vector.load %arg3[%c0_1, %c0_2, %c0_3] : memref<1x2x4096xf32, #tpu.memory_space<vmem>>, vector<1x2x4096xf32>
    %2 = vector.shape_cast %1 : vector<1x2x4096xf32> to vector<2x4096xf32>
    %3 = arith.subf %0, %2 : vector<2x4096xf32>
    %4 = math.absf %3 : vector<2x4096xf32>
    %cst = arith.constant 1.000000e+00 : f32
    %5 = vector.broadcast %cst : f32 to vector<2x4096xf32>
    %6 = arith.addf %4, %5 : vector<2x4096xf32>
    %7 = math.log %6 : vector<2x4096xf32>
    %cst_4 = arith.constant 0.000000e+00 : f32
    %8 = vector.broadcast %cst_4 : f32 to vector<2x4096xf32>
    %9 = arith.cmpf olt, %3, %8 : vector<2x4096xf32>
    %cst_5 = arith.constant 0.000000e+00 : f32
    %10 = vector.broadcast %cst_5 : f32 to vector<2x4096xf32>
    %11 = arith.subf %10, %7 : vector<2x4096xf32>
    %12 = arith.select %9, %11, %7 : vector<2x4096xi1>, vector<2x4096xf32>
    %c0_6 = arith.constant 0 : index
    %c0_7 = arith.constant 0 : index
    %13 = vector.load %arg4[%c0_6, %c0_7] : memref<32x2xf32, #tpu.memory_space<vmem>>, vector<32x2xf32>
    %14 = vector.extract_strided_slice %13 {offsets = [0, 0], sizes = [32, 1], strides = [1, 1]} : vector<32x2xf32> to vector<32x1xf32>
    %15 = vector.extract_strided_slice %12 {offsets = [0, 0], sizes = [1, 4096], strides = [1, 1]} : vector<2x4096xf32> to vector<1x4096xf32>
    %16 = vector.broadcast %14 : vector<32x1xf32> to vector<32x4096xf32>
    %17 = vector.broadcast %15 : vector<1x4096xf32> to vector<32x4096xf32>
    %18 = arith.mulf %16, %17 : vector<32x4096xf32>
    %19 = vector.extract_strided_slice %13 {offsets = [0, 1], sizes = [32, 1], strides = [1, 1]} : vector<32x2xf32> to vector<32x1xf32>
    %20 = vector.extract_strided_slice %12 {offsets = [1, 0], sizes = [1, 4096], strides = [1, 1]} : vector<2x4096xf32> to vector<1x4096xf32>
    %21 = vector.broadcast %19 : vector<32x1xf32> to vector<32x4096xf32>
    %22 = vector.broadcast %20 : vector<1x4096xf32> to vector<32x4096xf32>
    %23 = arith.mulf %21, %22 : vector<32x4096xf32>
    %24 = arith.addf %18, %23 : vector<32x4096xf32>
    %c0_8 = arith.constant 0 : index
    %c0_9 = arith.constant 0 : index
    %25 = vector.load %arg5[%c0_8, %c0_9] : memref<32x1xf32, #tpu.memory_space<vmem>>, vector<32x1xf32>
    %26 = vector.broadcast %25 : vector<32x1xf32> to vector<32x4096xf32>
    %27 = arith.addf %24, %26 : vector<32x4096xf32>
    %cst_10 = arith.constant 0.000000e+00 : f32
    %28 = vector.broadcast %cst_10 : f32 to vector<32x4096xf32>
    %29 = arith.maximumf %27, %28 : vector<32x4096xf32>
    %c0_11 = arith.constant 0 : index
    %c0_12 = arith.constant 0 : index
    %30 = vector.load %arg6[%c0_11, %c0_12] : memref<32x32xf32, #tpu.memory_space<vmem>>, vector<32x32xf32>
    %c0_13 = arith.constant 0 : index
    %c0_14 = arith.constant 0 : index
    %31 = vector.load %arg7[%c0_13, %c0_14] : memref<32x1xf32, #tpu.memory_space<vmem>>, vector<32x1xf32>
    %cst_15 = arith.constant dense<0.000000e+00> : vector<32x4096xf32>
    %32 = tpu.matmul %30, %29, %cst_15 {dimension_numbers = #tpu.dot_dimension_numbers<[1], [0], [0], [1], [0, 0, 1, 1], [], []>} : vector<32x32xf32>, vector<32x4096xf32>, vector<32x4096xf32> -> vector<32x4096xf32>
    %33 = vector.broadcast %31 : vector<32x1xf32> to vector<32x4096xf32>
    %34 = arith.addf %32, %33 : vector<32x4096xf32>
    %cst_16 = arith.constant 0.000000e+00 : f32
    %35 = vector.broadcast %cst_16 : f32 to vector<32x4096xf32>
    %36 = arith.maximumf %34, %35 : vector<32x4096xf32>
    %c0_17 = arith.constant 0 : index
    %c0_18 = arith.constant 0 : index
    %37 = vector.load %arg8[%c0_17, %c0_18] : memref<2x32xf32, #tpu.memory_space<vmem>>, vector<2x32xf32>
    %cst_19 = arith.constant dense<0.000000e+00> : vector<2x4096xf32>
    %38 = tpu.matmul %37, %36, %cst_19 {dimension_numbers = #tpu.dot_dimension_numbers<[1], [0], [0], [1], [0, 0, 1, 1], [], []>} : vector<2x32xf32>, vector<32x4096xf32>, vector<2x4096xf32> -> vector<2x4096xf32>
    %c0_20 = arith.constant 0 : index
    %c0_21 = arith.constant 0 : index
    %39 = vector.load %arg9[%c0_20, %c0_21] : memref<2x1xf32, #tpu.memory_space<vmem>>, vector<2x1xf32>
    %40 = vector.broadcast %39 : vector<2x1xf32> to vector<2x4096xf32>
    %41 = arith.addf %38, %40 : vector<2x4096xf32>
    %c0_22 = arith.constant 0 : index
    %c0_23 = arith.constant 0 : index
    %c0_24 = arith.constant 0 : index
    %42 = vector.load %arg10[%c0_22, %c0_23, %c0_24] : memref<1x2x4096xf32, #tpu.memory_space<vmem>>, vector<1x2x4096xf32>
    %43 = vector.shape_cast %42 : vector<1x2x4096xf32> to vector<2x4096xf32>
    %44 = vector.shape_cast %41 : vector<2x4096xf32> to vector<1x2x4096xf32>
    tpu.vector_store %arg10[%c0_22, %c0_23, %c0_24], %44 {strides = array<i32>} : memref<1x2x4096xf32, #tpu.memory_space<vmem>>, vector<1x2x4096xf32>,
    return
  }
  func.func @transform_0(%arg0: i32, %arg1: i32) -> (i32, i32) {
    %c0_i32 = arith.constant 0 : i32
    %c0_i32_0 = arith.constant 0 : i32
    return %c0_i32, %arg1 : i32, i32
  }
  func.func @transform_1(%arg0: i32, %arg1: i32) -> (i32, i32, i32) {
    %c0_i32 = arith.constant 0 : i32
    %c0_i32_0 = arith.constant 0 : i32
    %c0_i32_1 = arith.constant 0 : i32
    return %arg0, %c0_i32, %c0_i32_0 : i32, i32, i32
  }
  func.func @transform_2(%arg0: i32, %arg1: i32) -> (i32, i32) {
    %c0_i32 = arith.constant 0 : i32
    %c0_i32_0 = arith.constant 0 : i32
    %c0_i32_1 = arith.constant 0 : i32
    return %c0_i32, %c0_i32_0 : i32, i32
  }
  func.func @transform_3(%arg0: i32, %arg1: i32) -> (i32, i32) {
    %c0_i32 = arith.constant 0 : i32
    %c0_i32_0 = arith.constant 0 : i32
    %c0_i32_1 = arith.constant 0 : i32
    return %c0_i32, %c0_i32_0 : i32, i32
  }
  func.func @transform_4(%arg0: i32, %arg1: i32) -> (i32, i32) {
    %c0_i32 = arith.constant 0 : i32
    %c0_i32_0 = arith.constant 0 : i32
    %c0_i32_1 = arith.constant 0 : i32
    return %c0_i32, %c0_i32_0 : i32, i32
  }
  func.func @transform_5(%arg0: i32, %arg1: i32) -> (i32, i32) {
    %c0_i32 = arith.constant 0 : i32
    %c0_i32_0 = arith.constant 0 : i32
    %c0_i32_1 = arith.constant 0 : i32
    return %c0_i32, %c0_i32_0 : i32, i32
  }
  func.func @transform_6(%arg0: i32, %arg1: i32) -> (i32, i32) {
    %c0_i32 = arith.constant 0 : i32
    %c0_i32_0 = arith.constant 0 : i32
    %c0_i32_1 = arith.constant 0 : i32
    return %c0_i32, %c0_i32_0 : i32, i32
  }
  func.func @transform_7(%arg0: i32, %arg1: i32) -> (i32, i32) {
    %c0_i32 = arith.constant 0 : i32
    %c0_i32_0 = arith.constant 0 : i32
    %c0_i32_1 = arith.constant 0 : i32
    return %c0_i32, %c0_i32_0 : i32, i32
  }
  func.func @transform_8(%arg0: i32, %arg1: i32) -> (i32, i32, i32) {
    %c0_i32 = arith.constant 0 : i32
    %c0_i32_0 = arith.constant 0 : i32
    return %arg0, %c0_i32, %arg1 : i32, i32, i32
  }
}

</mosaic_0001>

<bundles_post_ra>
// kernel: tpu_custom_call.1
= control target key start
LH: loop header
LB: loop body
LE: loop exit
PB: predicated region body
PF: predicated region fallthrough
CT: control target
= control target key end

     0   :  { %13 = vsyncpa [#allocation3], 0  ;;  %s7144_s0 = inlined_call_operand.vmem [shape: f32[2,4096], index: 0, kind: input, shape index: {}]   ;;  %s7145_s1 = inlined_call_operand.hbm [shape: f32[8,2,4096], index: 1, kind: input, shape index: {}]   ;;  %s7146_s2 = inlined_call_operand.vmem [shape: f32[32,2], index: 2, kind: input, shape index: {}]   ;;  %s7147_s3 = inlined_call_operand.vmem [shape: f32[32,1], index: 3, kind: input, shape index: {}]   ;;  %s7148_s4 = inlined_call_operand.vmem [shape: f32[32,32], index: 4, kind: input, shape index: {}]   ;;  %s7149_s5 = inlined_call_operand.vmem [shape: f32[32,1], index: 5, kind: input, shape index: {}]   ;;  %s7150_s6 = inlined_call_operand.vmem [shape: f32[2,32], index: 6, kind: input, shape index: {}]   ;;  %s7151_s7 = inlined_call_operand.vmem [shape: f32[2,1], index: 7, kind: input, shape index: {}]   ;;  %s7152_s8 = inlined_call_operand.hbm [shape: f32[8,2,4096], index: 8, kind: output, shape index: {}]  }
   0x1   :  { %15 = vsyncpa [#allocation3 + $0x1], 0 }
   0x2   :  { %16 = vsyncpa [#allocation4], 0 }
   0x3   :  { %18 = vsyncpa [#allocation4 + $0x1], 0  ;;  %s5375_s27 = smov 0   ;;  %s5377_s28 = smov 0  }
   0x4   :  { %s5379_s29 = smov 0   ;;  %s5381_s30 = smov 0  }
   0x5   :  { %s5383_s9 = smov 0   ;;  %s5385_s10 = smov 0  }
   0x6 LB: > { %s4763_s11 = sadd.s32 4294967295, %s5322_s10   ;;  %s4764_s12 = sadd.s32 4294967294, %s5322_s10   ;;  %s5322_s10 = sphi %s5385_s10, %s24_s10   ;;  %s5318_s9 = sphi %s5383_s9, %s7328_s9   ;;  %s5314_s30 = sphi %s5381_s30, %s7327_s30   ;;  %s5310_s29 = sphi %s5379_s29, %s7326_s29   ;;  %s5306_s28 = sphi %s5377_s28, %s7325_s28   ;;  %s5302_s27 = sphi %s5375_s27, %s7324_s27  }
   0x7   : > { %s36_s13 = sadd.s32 1, %s5318_s9  ;;  %s69_s14 = sadd.s32 1, %s5310_s29 }
   0x8   : > { %p38_p0 = scmp.ge.s32.totalorder %s36_s13, 8  ;;  %p76_p1 = scmp.ne.s32.totalorder %s5310_s29, %s5306_s28 }
   0x9   : > { %p77_p2 = scmp.eq.s32.totalorder %s5322_s10, 0  ;;  %p82_p3 = scmp.ne.s32.totalorder %s5306_s28, %s5302_s27 }
   0xa   : > { %s7330_s13 = smov (%p38_p0, %s36_s13), 0  ;;  %p83_p5 = scmp.eq.s32.totalorder %s4763_s11, 0 }
   0xb   : > { %p5416_p4 = por %p77_p2, %p76_p1  ;;  %s66_s16 = ssub.s32 %s5318_s9, %s7330_s13 }
   0xc   : > { %p234_p6 = scmp.eq.s32.totalorder %s4763_s11, 7  ;;  %p67_p7 = scmp.eq.s32.totalorder %s66_s16, 0 }
   0xd   : > { %p5422_p8 = por %p83_p5, %p82_p3  ;;  %p240_p10 = scmp.eq.s32.totalorder %s4764_s12, 7 }
   0xe   : > { %p5426_p9 = por %p234_p6, %p76_p1  ;;  %p5129_p12 = scmp.lt.s32.totalorder %s5322_s10, 8 }
   0xf   : > { %s5431_s19 = scalar_select %p67_p7, %s5310_s29, %s69_s14  }
  0x10   : > { %s7219_s18 = scalar_select %p5426_p9, 1, 0 }
  0x11   : > { %p5433_p11 = por %p240_p10, %p82_p3  ;;  %s287_s21 = sand.u32 1, %s5310_s29  }
  0x12   : > { %s4768_s22 = sshll.u32 %s287_s21, 6  ;;  %s4859_s23 = sshll.u32 %s5318_s9, 10 }
  0x13   : > { %s7220_s20 = scalar_select %p5433_p11, 1, 0 }
  0x14   : > { %s5443_s26 = scalar_lea.hbm %s7145_s1, %s4859_s23  ;;  %s291_s11 = scalar_lea.vmem [#allocation2], %s4768_s22 }
  0x15   : > { %s299_s12 = sshll.u32 %s291_s11, 4  ;;  %p5449_p13 = pnand %p5129_p12, %p5416_p4  ;;  %s5445_s12 = int_to_ptr.vmem [resolvable:$true] %s299_s12 }
  0x16   : > { %s288_s16 = scalar_lea.sflag [#allocation3], %s287_s21  ;;  %s5210_s23 = scalar_lea.hbm %s5443_s26, 1024 }
  0x17   : > { %p5211_p2 = scmp.ne.s32.totalorder %s5443_s26, %s5210_s23  ;;  %p5212_p3 = pneg %p5449_p13 }
  0x18   : > { %s5215_s15 = scalar_lea.hbm %s7145_s1, 8192  ;;  %p5216_p4 = scmp.lt.u32.totalorder %s5443_s26, %s7145_s1 }
  0x19   : > { %p5213_p5 = pnand %p5212_p3, %p5211_p2  ;;  %p5217_p7 = scmp.lt.u32.totalorder %s5215_s15, %s5210_s23 }
  0x1a   : > { %p5219_p12 = scmp.lt.u32.totalorder %s5210_s23, %s5443_s26 }
  0x1b   : > { %p5214_p6 = pneg %p5213_p5  ;;  %p5218_p10 = por %p5217_p7, %p5216_p4 }
  0x1d   : > { %p5220_p0 = por %p5219_p12, %p5218_p10 }
  0x1f   : > { %p5221_p1 = pnand %p5220_p0, %p5214_p6 }
  0x21   : > { %5224 = shalt.err (!%p5221_p1)
}
  0x22   : > { %s5225_s21 = scalar_lea.vmem %s5445_s12, 1024  ;;  %s5324_s22 = smov [#allocation2]  }
  0x23   : > { %p5226_p2 = scmp.ne.s32.totalorder %s5445_s12, %s5225_s21  ;;  %s5230_s24 = sshll.u32 %s5324_s22, 4  ;;  %s5231_s24 = int_to_ptr.vmem [resolvable:$false] %s5230_s24 }
  0x24   : > { %s5232_s25 = scalar_lea.vmem %s5231_s24, 2048  ;;  %p5233_p9 = scmp.lt.s32.totalorder %s5445_s12, %s5231_s24 }
  0x25   : > { %p5228_p5 = pnand %p5226_p2, %p5212_p3  ;;  %p5234_p4 = scmp.lt.s32.totalorder %s5232_s25, %s5225_s21 }
  0x27   : > { %p5229_p11 = pneg %p5228_p5  ;;  %p5235_p7 = por %p5234_p4, %p5233_p9 }
  0x29   : > { %p5236_p10 = pnand %p5235_p7, %p5229_p11 }
  0x2b   : > { %5239 = shalt.err (!%p5236_p10)
}
  0x2c   : > { %5124 = dma.hbm_to_vmem [thread:$0]  (!%p5449_p13), %s5443_s26, 1024, %s5445_s12, %s288_s16  }
  0x2d   : > { %p7222_p0 = scmp.lt.s32.totalorder %s5322_s10, 9  ;;  %p7223_p1 = scmp.ge.s32.totalorder %s5322_s10, 1 }
  0x2f   : > { %p305_p3 = pnand %p7223_p1, %p7222_p0 }
  0x31   : > { %308 = sbr.rel (%p305_p3) target bundleno = 857 (0x359), region = 52 }
  0x38   : > { %s5485_s23 = sand.u32 1, %s5306_s28  }
  0x39   : > { %s4772_s15 = sshll.u32 %s5485_s23, 6  ;;  %s311_s11 = scalar_lea.sflag [#allocation3], %s5485_s23 }
  0x3a   : > { %s5491_s14 = scalar_lea.vmem [#allocation2], %s4772_s15 }
  0x3b   : > { %5293 = dma.done.wait (%p5422_p8), %s311_s11, 1024  }
  0x3c   : > { %5295 = vsyncadd (%p5422_p8), %s311_s11, 4294966272  ;;  %v5325_v0 = vmov 1   ;;  %v5326_v1 = vmov 0   ;;  %v439_v2 = vld [vmem:[%s7146_s2] sm:$0xff]  ;;  %v440_v3 = vld [vmem:[%s7146_s2 + $0x8] sm:$0xff]  ;;  %v7154_v15 = vmov 0.0   ;;  %v471_v42 = vlaneseq }
  0x3d   : > { %5184 = vset.pattern.permute.xlu1 %v5325_v0  ;;  %5183 = vset.pattern.permute.xlu0 %v5326_v1  ;;  %v441_v4 = vld [vmem:[%s7146_s2 + $0x10] sm:$0xff]  ;;  %v442_v5 = vld [vmem:[%s7146_s2 + $0x18] sm:$0xff]  ;;  %v1448_v6 = vld [vmem:[%s7147_s3 + $0x8] sm:$0xff]  ;;  %vm1755_vm7 = vcmask 261120   ;;  %s7039_s22 = scalar_lea.vmem [#allocation5], %s4772_s15  ;;  %s4860_s15 = sshll.u32 %s5314_s30, 10 }
  0x3e   : > { %888 = vperm.xlu1 %5184, %v439_v2   ;;  %445 = vperm.xlu0 %5183, %v439_v2   ;;  %v1447_v7 = vld [vmem:[%s7147_s3] sm:$0xff]  ;;  %v1449_v9 = vld [vmem:[%s7147_s3 + $0x10] sm:$0xff]  ;;  %v1450_v11 = vld [vmem:[%s7147_s3 + $0x18] sm:$0xff]  ;;  %v5576_v48 = vshrl.u32 %v471_v42, 7  ;;  %s4667_s24 = sshll.u32 %s7039_s22, 4  ;;  %s7095_s25 = scalar_lea.hbm %s7152_s8, %s4860_s15  ;;  %s7097_s24 = int_to_ptr.vmem [resolvable:$true] %s4667_s24 }
  0x3f   : > { %v1731_v8 = vld [vmem:[%s7149_s5] sm:$0xff]  ;;  %v1733_v10 = vld [vmem:[%s7149_s5 + $0x10] sm:$0xff]  ;;  %v1732_v13 = vld [vmem:[%s7149_s5 + $0x8] sm:$0xff]  ;;  %1832 = vmatprep.mubr.f32.mxu0 %v7154_v15  ;;  %1921 = vmatprep.mubr.f32.mxu1 %v7154_v15  ;;  %s4651_s11 = scalar_lea.sflag [#allocation4], %s5485_s23  ;;  %s5240_s26 = scalar_lea.vmem %s7097_s24, 1024 }
  0x40   : > { %v3321_v12 = vld [vmem:[%s7151_s7] sm:$0x3]  ;;  %v1734_v14 = vld [vmem:[%s7149_s5 + $0x18] sm:$0xff]  ;;  %v360_v19 = vld [vmem:[%s7144_s0 + $0x8] sm:$0xff]  ;;  %7224 = vst [vmem:[#allocation8_spill] sm:$0xff] %v5576_v48  ;;  %v5580_v53 = vsub.s32 0, %v5576_v48  ;;  %p5241_p8 = scmp.ne.s32.totalorder %s7097_s24, %s5240_s26 }
  0x41   : > { %v359_v16 = vld [vmem:[%s7144_s0] sm:$0xff]  ;;  %v368_v20 = vld [vmem:[%s5491_s14 + $0x8] sm:$0xff]  ;;  %v361_v23 = vld [vmem:[%s7144_s0 + $0x10] sm:$0xff]  ;;  %v5583_v54 = vsub.s32 2, %v5576_v48  ;;  %v5586_v55 = vsub.s32 3, %v5576_v48  ;;  %v5589_v57 = vsub.s32 6, %v5576_v48 }
  0x42   : > { %892 = vperm.xlu1 %5184, %v440_v3   ;;  %5186 = vset.pattern.permute.xlu0 %v5325_v0  ;;  %v367_v17 = vld [vmem:[%s5491_s14] sm:$0xff]  ;;  %v5546_v22 = vsub.f32 %v360_v19, %v368_v20  ;;  %v369_v24 = vld [vmem:[%s5491_s14 + $0x10] sm:$0xff]  ;;  %v362_v29 = vld [vmem:[%s7144_s0 + $0x18] sm:$0xff]  ;;  %7225 = vst [vmem:[#allocation9_spill] sm:$0xff] %v5580_v53  ;;  %v5592_v58 = vsub.s32 7, %v5576_v48  ;;  %v5599_v62 = vsub.s32 1, %v5576_v48 }
  0x43   : > { %896 = vperm.xlu0 %5186, %v441_v4   ;;  %v375_v18 = vsub.f32 %v359_v16, %v367_v17  ;;  %v5553_v27 = vsub.f32 %v361_v23, %v369_v24  ;;  %v370_v30 = vld [vmem:[%s5491_s14 + $0x18] sm:$0xff]  ;;  %v363_v33 = vld [vmem:[%s7144_s0 + $0x20] sm:$0xff]  ;;  %v364_v39 = vld [vmem:[%s7144_s0 + $0x28] sm:$0xff]  ;;  %7226 = vst [vmem:[#allocation10_spill] sm:$0xff] %v5583_v54  ;;  %v5602_v63 = vsub.s32 4, %v5576_v48  ;;  %p7322_p9 = scmp.ne.s32.totalorder %s7219_s18, 0 }
  0x44   : > { %v384_v26 = vand.u32 2147483647, %v5546_v22  ;;  %v5560_v32 = vsub.f32 %v362_v29, %v370_v30  ;;  %v371_v34 = vld [vmem:[%s5491_s14 + $0x20] sm:$0xff]  ;;  %v372_v40 = vld [vmem:[%s5491_s14 + $0x28] sm:$0xff]  ;;  %7227 = vst [vmem:[#allocation11_spill] sm:$0xff] %v5586_v55  ;;  %7228 = vst [vmem:[#allocation12_spill] sm:$0xff] %v5589_v57 }
  0x45   : > { %v383_v21 = vand.u32 2147483647, %v375_v18  ;;  %v385_v31 = vand.u32 2147483647, %v5553_v27  ;;  %v5566_v36 = vsub.f32 %v363_v33, %v371_v34  ;;  %v5574_v45 = vsub.f32 %v364_v39, %v372_v40  ;;  %7229 = vst [vmem:[#allocation13_spill] sm:$0xff] %v5592_v58  ;;  %v365_v60 = vld [vmem:[%s7144_s0 + $0x30] sm:$0xff]  ;;  %p5242_p11 = pnand %p5241_p8, %p7322_p9 }
  0x46   : > { %5185 = vset.pattern.permute.xlu1 %v5326_v1  ;;  %v392_v28 = vadd.f32 1.0, %v384_v26  ;;  %v386_v37 = vand.u32 2147483647, %v5560_v32  ;;  %vm415_vm0 = vcmp.lt.f32.partialorder %v375_v18, 0.0  ;;  %v373_v61 = vld [vmem:[%s5491_s14 + $0x30] sm:$0xff]  ;;  %7230 = vst [vmem:[#allocation14_spill] sm:$0xff] %v5599_v62 }
  0x47   : > { %460 = vperm.xlu1 %5185, %v442_v5   ;;  %5187 = vset.pattern.permute.xlu0 %v5326_v1  ;;  %v391_v25 = vadd.f32 1.0, %v383_v21  ;;  %v393_v35 = vadd.f32 1.0, %v385_v31  ;;  %v387_v41 = vand.u32 2147483647, %v5566_v36  ;;  %v388_v50 = vand.u32 2147483647, %v5574_v45  ;;  %p5243_p13 = pneg %p5242_p11 }
  0x48   : > { %450 = vperm.xlu0 %5187, %v440_v3   ;;  %v394_v43 = vadd.f32 1.0, %v386_v37  ;;  %7231 = vst [vmem:[#allocation15_spill] sm:$0xff] %v5602_v63  ;;  %vm416_vm1 = vcmp.lt.f32.partialorder %v5546_v22, 0.0  ;;  %vm417_vm2 = vcmp.lt.f32.partialorder %v5553_v27, 0.0  ;;  %vm418_vm3 = vcmp.lt.f32.partialorder %v5560_v32, 0.0  ;;  %s5329_s30 = smov [#allocation5]  }
  0x49   : > { %5190 = vlog2.f32 %v391_v25  ;;  %v395_v47 = vadd.f32 1.0, %v387_v41  ;;  %v396_v59 = vadd.f32 1.0, %v388_v50  ;;  %vm419_vm4 = vcmp.lt.f32.partialorder %v5566_v36, 0.0  ;;  %s5244_s12 = sshll.u32 %s5329_s30, 4  ;;  %s5245_s12 = int_to_ptr.vmem [resolvable:$false] %s5244_s12 }
  0x4a   : > { %5192 = vlog2.f32 %v392_v28  ;;  %vm420_vm5 = vcmp.lt.f32.partialorder %v5574_v45, 0.0  ;;  %s5246_s16 = scalar_lea.vmem %s5245_s12, 2048  ;;  %p5247_p6 = scmp.lt.s32.totalorder %s7097_s24, %s5245_s12 }
  0x4b   : > { %5188 = vset.pattern.permute.xlu1 %v5325_v0  ;;  %5194 = vlog2.f32 %v393_v35  ;;  %p5248_p12 = scmp.lt.s32.totalorder %s5246_s16, %s5240_s26 }
  0x4c   : > { %900 = vperm.xlu1 %5188, %v442_v5   ;;  %455 = vperm.xlu0 %5187, %v441_v4   ;;  %5196 = vlog2.f32 %v394_v43  ;;  %v5610_v5 = vsub.s32 5, %v5576_v48 }
  0x4d   : > { %5198 = vlog2.f32 %v395_v47  ;;  %p5249_p2 = por %p5248_p12, %p5247_p6 }
  0x4e   : > { %7232 = vst [vmem:[#allocation16_spill] sm:$0xff] %v5610_v5  ;;  %5200 = vlog2.f32 %v396_v59 }
  0x4f   : > { %p5250_p5 = pnand %p5249_p2, %p5243_p13 }
  0x50   : > { %5189 = vset.pattern.permute.xlu1 %v5326_v1  ;;  %1458 = vperm.xlu0 %5187, %v1448_v6   ;;  %v5604_v1 = vsub.f32 %v365_v60, %v373_v61 }
  0x51   : > { %1453 = vperm.xlu1 %5189, %v1447_v7  }
  0x52   : > { %v389_v6 = vand.u32 2147483647, %v5604_v1  ;;  %vm421_vm6 = vcmp.lt.f32.partialorder %v5604_v1, 0.0 }
  0x53   : > { %v5191_v38 = vpop.eup %5190 }
  0x54   : > { %1737 = vperm.xlu0 %5187, %v1731_v8   ;;  %v400_v44 = vmul.f32 0.6931472, %v5191_v38  ;;  %v5193_v46 = vpop.eup %5192 }
  0x55   : > { %1463 = vperm.xlu1 %5189, %v1449_v9   ;;  %v402_v51 = vmul.f32 0.6931472, %v5193_v46  ;;  %v5195_v52 = vpop.eup %5194 }
  0x56   : > { %v423_v49 = vsub.f32 0.0, %v400_v44  ;;  %v404_v2 = vmul.f32 0.6931472, %v5195_v52 }
  0x57   : > { %v424_v0 = vsub.f32 0.0, %v402_v51 }
  0x58   : > { %1747 = vperm.xlu0 %5187, %v1733_v10   ;;  %v431_v56 = vsel %vm415_vm0, %v423_v49, %v400_v44  ;;  %v5197_v10 = vpop.eup %5196  ;;  %v425_v16 = vsub.f32 0.0, %v404_v2 }
  0x59   : > { %1468 = vperm.xlu1 %5189, %v1450_v11   ;;  %v478_v3 = vrot.slane %v431_v56, %v5583_v54  ;;  %v910_v4 = vrot.slane %v431_v56, %v5586_v55  ;;  %v486_v7 = vrot.slane %v431_v56, %v5589_v57  ;;  %v918_v8 = vrot.slane %v431_v56, %v5592_v58  ;;  %v5199_v19 = vpop.eup %5198 }
  0x5a   : > { %v474_v9 = vrot.slane %v431_v56, %v5580_v53  ;;  %v906_v11 = vrot.slane %v431_v56, %v5599_v62  ;;  %v914_v21 = vrot.slane %v431_v56, %v5610_v5  ;;  %v406_v23 = vmul.f32 0.6931472, %v5197_v10  ;;  %v5201_v46 = vpop.eup %5200 }
  0x5b   : > { %v5619_v17 = vrot.slane %v478_v3, %v5580_v53  ;;  %v5622_v18 = vrot.slane %v910_v4, %v5599_v62  ;;  %v5626_v20 = vrot.slane %v486_v7, %v5580_v53  ;;  %v5631_v24 = vrot.slane %v918_v8, %v5599_v62 }
  0x5c   : > { %3324 = vperm.xlu0 %5187, %v3321_v12   ;;  %v482_v12 = vrot.slane %v431_v56, %v5602_v63  ;;  %v5634_v25 = vrot.slane %v474_v9, %v5580_v53  ;;  %v5637_v26 = vrot.slane %v906_v11, %v5599_v62  ;;  %v433_v31 = vsel %vm417_vm2, %v425_v16, %v404_v2 }
  0x5d   : > { %1742 = vperm.xlu1 %5189, %v1732_v13   ;;  %v432_v13 = vsel %vm416_vm1, %v424_v0, %v402_v51  ;;  %v408_v37 = vmul.f32 0.6931472, %v5199_v19  ;;  %v5649_v38 = vrot.slane %v914_v21, %v5599_v62  ;;  %v426_v41 = vsub.f32 0.0, %v406_v23 }
  0x5e   : > { %v494_v22 = vrot.slane %v432_v13, %v5583_v54  ;;  %v5640_v27 = vrot.slane %v482_v12, %v5580_v53  ;;  %v926_v28 = vrot.slane %v432_v13, %v5586_v55  ;;  %v502_v29 = vrot.slane %v432_v13, %v5589_v57 }
  0x5f   : > { %v934_v30 = vrot.slane %v432_v13, %v5592_v58  ;;  %v490_v33 = vrot.slane %v432_v13, %v5580_v53  ;;  %v922_v34 = vrot.slane %v432_v13, %v5599_v62  ;;  %v498_v35 = vrot.slane %v432_v13, %v5602_v63 }
  0x60   : > { %v5652_v39 = vrot.slane %v494_v22, %v5580_v53  ;;  %v930_v40 = vrot.slane %v432_v13, %v5610_v5  ;;  %v510_v42 = vrot.slane %v433_v31, %v5583_v54  ;;  %v942_v43 = vrot.slane %v433_v31, %v5586_v55 }
  0x61   : > { %1752 = vperm.xlu1 %5189, %v1734_v14   ;;  %v397_v14 = vadd.f32 1.0, %v389_v6  ;;  %v518_v44 = vrot.slane %v433_v31, %v5589_v57  ;;  %v5660_v47 = vrot.slane %v926_v28, %v5599_v62  ;;  %v5663_v49 = vrot.slane %v502_v29, %v5580_v53 }
  0x62   : > { %v5666_v50 = vrot.slane %v934_v30, %v5599_v62  ;;  %v950_v51 = vrot.slane %v433_v31, %v5592_v58  ;;  %v5670_v52 = vrot.slane %v490_v33, %v5580_v53  ;;  %v5673_v56 = vrot.slane %v922_v34, %v5599_v62 }
  0x63   : > { %5202 = vlog2.f32 %v397_v14  ;;  %v5676_v32 = vrot.slane %v498_v35, %v5580_v53  ;;  %v427_v59 = vsub.f32 0.0, %v408_v37  ;;  %v5679_v60 = vrot.slane %v930_v40, %v5599_v62 }
  0x64   : > { %7233 = vst [vmem:[#allocation17_spill] sm:$0xff] %v5673_v56  ;;  %v506_v61 = vrot.slane %v433_v31, %v5580_v53  ;;  %v434_v0 = vsel %vm418_vm3, %v426_v41, %v406_v23  ;;  %v5684_v3 = vrot.slane %v510_v42, %v5580_v53  ;;  %v5687_v4 = vrot.slane %v942_v43, %v5599_v62 }
  0x65   : > { %7234 = vst [vmem:[#allocation18_spill] sm:$0xff] %v5679_v60  ;;  %v5690_v6 = vrot.slane %v518_v44, %v5580_v53  ;;  %v410_v7 = vmul.f32 0.6931472, %v5201_v46  ;;  %v5693_v8 = vrot.slane %v950_v51, %v5599_v62  ;;  %v938_v9 = vrot.slane %v433_v31, %v5599_v62 }
  0x66   : > { %7235 = vst [vmem:[#allocation19_spill] sm:$0xff] %v5684_v3  ;;  %7236 = vst [vmem:[#allocation20_spill] sm:$0xff] %v5687_v4  ;;  %v514_v10 = vrot.slane %v433_v31, %v5602_v63  ;;  %v946_v36 = vrot.slane %v433_v31, %v5610_v5  ;;  %v526_v11 = vrot.slane %v434_v0, %v5583_v54 }
  0x67   : > { %7237 = vst [vmem:[#allocation21_spill] sm:$0xff] %v5690_v6  ;;  %7238 = vst [vmem:[#allocation22_spill] sm:$0xff] %v5693_v8  ;;  %v958_v12 = vrot.slane %v434_v0, %v5586_v55  ;;  %v435_v13 = vsel %vm419_vm4, %v427_v59, %v408_v37  ;;  %v5701_v16 = vrot.slane %v506_v61, %v5580_v53  ;;  %v428_v30 = vsub.f32 0.0, %v410_v7 }
  0x68   : > { %v534_v19 = vrot.slane %v434_v0, %v5589_v57  ;;  %v966_v21 = vrot.slane %v434_v0, %v5592_v58  ;;  %v522_v22 = vrot.slane %v434_v0, %v5580_v53  ;;  %v954_v23 = vrot.slane %v434_v0, %v5599_v62 }
  0x69   : > { %7239 = vst [vmem:[#allocation23_spill] sm:$0xff] %v5701_v16  ;;  %v530_v28 = vrot.slane %v434_v0, %v5602_v63  ;;  %v962_v29 = vrot.slane %v434_v0, %v5610_v5  ;;  %v5710_v31 = vrot.slane %v938_v9, %v5599_v62  ;;  %v5713_v33 = vrot.slane %v514_v10, %v5580_v53 }
  0x6a   : > { %v542_v34 = vrot.slane %v435_v13, %v5583_v54  ;;  %v5718_v35 = vrot.slane %v946_v36, %v5599_v62  ;;  %v5721_v37 = vrot.slane %v526_v11, %v5580_v53  ;;  %v5724_v40 = vrot.slane %v958_v12, %v5599_v62 }
  0x6b   : > { %7240 = vst [vmem:[#allocation24_spill] sm:$0xff] %v5710_v31  ;;  %7241 = vst [vmem:[#allocation25_spill] sm:$0xff] %v5713_v33  ;;  %v5727_v42 = vrot.slane %v534_v19, %v5580_v53  ;;  %v5730_v43 = vrot.slane %v966_v21, %v5599_v62  ;;  %v5733_v44 = vrot.slane %v522_v22, %v5580_v53 }
  0x6c   : > { %7242 = vst [vmem:[#allocation26_spill] sm:$0xff] %v5718_v35  ;;  %7243 = vst [vmem:[#allocation27_spill] sm:$0xff] %v5721_v37  ;;  %v5737_v45 = vrot.slane %v954_v23, %v5599_v62  ;;  %v5740_v46 = vrot.slane %v530_v28, %v5580_v53  ;;  %v5743_v51 = vrot.slane %v962_v29, %v5599_v62 }
  0x6d   : > { %v5203_v2 = vpop.eup %5202  ;;  %7244 = vst [vmem:[#allocation28_spill] sm:$0xff] %v5724_v40  ;;  %7245 = vst [vmem:[#allocation29_spill] sm:$0xff] %v5727_v42  ;;  %v436_v59 = vsel %vm420_vm5, %v428_v30, %v410_v7  ;;  %v5746_v61 = vrot.slane %v542_v34, %v5580_v53  ;;  %v974_v0 = vrot.slane %v435_v13, %v5586_v55 }
  0x6e   : > { %v412_v14 = vmul.f32 0.6931472, %v5203_v2  ;;  %7246 = vst [vmem:[#allocation30_spill] sm:$0xff] %v5730_v43  ;;  %7247 = vst [vmem:[#allocation31_spill] sm:$0xff] %v5733_v44  ;;  %v550_v2 = vrot.slane %v435_v13, %v5589_v57  ;;  %v982_v9 = vrot.slane %v435_v13, %v5592_v58  ;;  %v538_v1 = vrot.slane %v435_v13, %v5580_v53 }
  0x6f   : > { %7248 = vst [vmem:[#allocation32_spill] sm:$0xff] %v5737_v45  ;;  %7249 = vst [vmem:[#allocation33_spill] sm:$0xff] %v5740_v46  ;;  %v970_v10 = vrot.slane %v435_v13, %v5599_v62  ;;  %v546_v36 = vrot.slane %v435_v13, %v5602_v63  ;;  %v978_v12 = vrot.slane %v435_v13, %v5610_v5 }
  0x70   : > { %v429_v41 = vsub.f32 0.0, %v412_v14  ;;  %7250 = vst [vmem:[#allocation34_spill] sm:$0xff] %v5743_v51  ;;  %7251 = vst [vmem:[#allocation35_spill] sm:$0xff] %v5746_v61  ;;  %v558_v7 = vrot.slane %v436_v59, %v5583_v54  ;;  %v990_v19 = vrot.slane %v436_v59, %v5586_v55  ;;  %v566_v21 = vrot.slane %v436_v59, %v5589_v57 }
  0x71   : > { %v998_v22 = vrot.slane %v436_v59, %v5592_v58  ;;  %v554_v23 = vrot.slane %v436_v59, %v5580_v53  ;;  %v986_v28 = vrot.slane %v436_v59, %v5599_v62  ;;  %v562_v29 = vrot.slane %v436_v59, %v5602_v63 }
  0x72   : > { %v5754_v11 = vsel %vm421_vm6, %v429_v41, %v412_v14  ;;  %v5765_v14 = vrot.slane %v974_v0, %v5599_v62  ;;  %v5768_v13 = vrot.slane %v550_v2, %v5580_v53  ;;  %v994_v30 = vrot.slane %v436_v59, %v5610_v5  ;;  %v366_v2 = vld [vmem:[%s7144_s0 + $0x38] sm:$0xff] }
  0x73   : > { %7252 = vst [vmem:[#allocation36_spill] sm:$0xff] %v5754_v11  ;;  %v574_v34 = vrot.slane %v5754_v11, %v5583_v54  ;;  %v5774_v41 = vrot.slane %v982_v9, %v5599_v62  ;;  %v5777_v15 = vrot.slane %v538_v1, %v5580_v53  ;;  %v5780_v48 = vrot.slane %v970_v10, %v5599_v62  ;;  %v374_v59 = vld [vmem:[%s5491_s14 + $0x38] sm:$0xff] }
  0x74   : > { %7253 = vst [vmem:[#allocation37_spill] sm:$0xff] %v5765_v14  ;;  %7254 = vst [vmem:[#allocation38_spill] sm:$0xff] %v5768_v13  ;;  %v5783_v0 = vrot.slane %v546_v36, %v5580_v53  ;;  %v5790_v5 = vrot.slane %v978_v12, %v5599_v62  ;;  %v5793_v9 = vrot.slane %v558_v7, %v5580_v53 }
  0x75   : > { %7255 = vst [vmem:[#allocation39_spill] sm:$0xff] %v5774_v41  ;;  %7256 = vst [vmem:[#allocation40_spill] sm:$0xff] %v5777_v15  ;;  %v5796_v1 = vrot.slane %v990_v19, %v5599_v62  ;;  %v5799_v10 = vrot.slane %v566_v21, %v5580_v53  ;;  %v5802_v36 = vrot.slane %v998_v22, %v5599_v62 }
  0x76   : > { %7257 = vst [vmem:[#allocation41_spill] sm:$0xff] %v5780_v48  ;;  %7258 = vst [vmem:[#allocation42_spill] sm:$0xff] %v5783_v0  ;;  %v5805_v54 = vrot.slane %v554_v23, %v5580_v53  ;;  %v5808_v63 = vrot.slane %v986_v28, %v5599_v62  ;;  %v5811_v12 = vrot.slane %v562_v29, %v5580_v53 }
  0x77   : > { %7259 = vst [vmem:[#allocation43_spill] sm:$0xff] %v5790_v5  ;;  %7260 = vst [vmem:[#allocation44_spill] sm:$0xff] %v5793_v9  ;;  %v5818_v19 = vrot.slane %v994_v30, %v5599_v62  ;;  %v5821_v21 = vrot.slane %v574_v34, %v5580_v53  ;;  %v5825_v23 = vsub.f32 %v366_v2, %v374_v59 }
  0x78   : > { %7261 = vst [vmem:[#allocation45_spill] sm:$0xff] %v5796_v1  ;;  %7262 = vst [vmem:[#allocation46_spill] sm:$0xff] %v5799_v10 }
  0x79   : > { %7263 = vst [vmem:[#allocation47_spill] sm:$0xff] %v5802_v36  ;;  %7264 = vst [vmem:[#allocation48_spill] sm:$0xff] %v5805_v54  ;;  %vm422_vm8 = vcmp.lt.f32.partialorder %v5825_v23, 0.0 }
  0x7a   : > { %7265 = vst [vmem:[#allocation49_spill] sm:$0xff] %v5808_v63  ;;  %7266 = vst [vmem:[#allocation50_spill] sm:$0xff] %v5811_v12 }
  0x7b   : > { %7269 = vst [vmem:[#allocation53_spill] sm:$0xff] %v5818_v19  ;;  %7270 = vst [vmem:[#allocation54_spill] sm:$0xff] %v5821_v21 }
  0xbd   : > { %v5813_v7 = vpop.permute.xlu1 %888  ;;  %v5815_v58 = vpop.permute.xlu0 %445 }
  0xbe   : > { %7267 = vst [vmem:[#allocation51_spill] sm:$0xff] %v5813_v7  ;;  %7268 = vst [vmem:[#allocation52_spill] sm:$0xff] %v5815_v58  ;;  %v760_v28 = vmul.f32 %v5619_v17, %v5815_v58  ;;  %v1192_v29 = vmul.f32 %v5622_v18, %v5813_v7  ;;  %v762_v57 = vmul.f32 %v5626_v20, %v5815_v58 }
  0xbf   : > { %v1194_v30 = vmul.f32 %v5631_v24, %v5813_v7  ;;  %v759_v34 = vmul.f32 %v5634_v25, %v5815_v58  ;;  %v1191_v22 = vmul.f32 %v5637_v26, %v5813_v7  ;;  %v761_v2 = vmul.f32 %v5640_v27, %v5815_v58 }
  0xc0   : > { %v1193_v59 = vmul.f32 %v5649_v38, %v5813_v7  ;;  %v5843_v53 = vadd.f32 %v1192_v29, %v760_v28  ;;  %v764_v11 = vmul.f32 %v5652_v39, %v5815_v58  ;;  %v1196_v62 = vmul.f32 %v5660_v47, %v5813_v7 }
  0xc1   : > { %v5845_v55 = vadd.f32 %v1194_v30, %v762_v57  ;;  %v5851_v21 = vpop.permute.xlu1 %892  ;;  %v5853_v19 = vadd.f32 %v1191_v22, %v759_v34  ;;  %v766_v63 = vmul.f32 %v5663_v49, %v5815_v58  ;;  %v1198_v28 = vmul.f32 %v5666_v50, %v5813_v7 }
  0xc2   : > { %7271 = vst [vmem:[#allocation55_spill] sm:$0xff] %v5851_v21  ;;  %v5855_v12 = vadd.f32 %v1193_v59, %v761_v2  ;;  %v5861_v57 = vpop.permute.xlu0 %896  ;;  %v1224_v29 = vmul.f32 %v5622_v18, %v5851_v21  ;;  %v1226_v30 = vmul.f32 %v5631_v24, %v5851_v21  ;;  %v1223_v22 = vmul.f32 %v5637_v26, %v5851_v21 }
  0xc3   : > { %v1225_v34 = vmul.f32 %v5649_v38, %v5851_v21  ;;  %v1256_v2 = vmul.f32 %v5622_v18, %v5861_v57  ;;  %v1258_v59 = vmul.f32 %v5631_v24, %v5861_v57  ;;  %v1255_v54 = vmul.f32 %v5637_v26, %v5861_v57 }
  0xc4   : > { %v1257_v36 = vmul.f32 %v5649_v38, %v5861_v57  ;;  %v1228_v10 = vmul.f32 %v5660_v47, %v5851_v21  ;;  %v5881_v1 = vadd.f32 %v1196_v62, %v764_v11  ;;  %v1230_v9 = vmul.f32 %v5666_v50, %v5851_v21 }
  0xc5   : > { %v5885_v5 = vadd.f32 %v1198_v28, %v766_v63  ;;  %v763_v0 = vmul.f32 %v5670_v52, %v5815_v58  ;;  %v1195_v48 = vmul.f32 %v5673_v56, %v5813_v7  ;;  %v1227_v15 = vmul.f32 %v5673_v56, %v5851_v21 }
  0xc6   : > { %v5895_v41 = vmul.f32 %v5676_v32, %v5815_v58  ;;  %v5897_v62 = vpop.permute.xlu1 %460  ;;  %v5901_v11 = vmul.f32 %v5679_v60, %v5813_v7  ;;  %v5905_v63 = vmul.f32 %v5679_v60, %v5851_v21  ;;  %v5909_v28 = vmul.f32 %v5660_v47, %v5861_v57 }
  0xc7   : > { %v5913_v13 = vmul.f32 %v5666_v50, %v5861_v57  ;;  %v5915_v14 = vpop.permute.xlu0 %450  ;;  %v856_v61 = vmul.f32 %v5619_v17, %v5897_v62  ;;  %v858_v51 = vmul.f32 %v5626_v20, %v5897_v62  ;;  %v855_v46 = vmul.f32 %v5634_v25, %v5897_v62 }
  0xc8   : > { %v857_v45 = vmul.f32 %v5640_v27, %v5897_v62  ;;  %v792_v44 = vmul.f32 %v5619_v17, %v5915_v14  ;;  %v794_v43 = vmul.f32 %v5626_v20, %v5915_v14  ;;  %v791_v42 = vmul.f32 %v5634_v25, %v5915_v14 }
  0xc9   : > { %v793_v40 = vmul.f32 %v5640_v27, %v5915_v14  ;;  %v796_v37 = vmul.f32 %v5652_v39, %v5915_v14  ;;  %v798_v35 = vmul.f32 %v5663_v49, %v5915_v14  ;;  %v795_v33 = vmul.f32 %v5670_v52, %v5915_v14 }
  0xca   : > { %v5939_v31 = vadd.f32 %v1195_v48, %v763_v0  ;;  %v1352_v16 = vadd.f32 %v1224_v29, %v792_v44  ;;  %v1354_v8 = vadd.f32 %v1226_v30, %v794_v43  ;;  %v1351_v6 = vadd.f32 %v1223_v22, %v791_v42 }
  0xcb   : > { %v1353_v21 = vadd.f32 %v1225_v34, %v793_v40  ;;  %v5941_v4 = vpop.permute.xlu1 %900  ;;  %v5943_v7 = vpop.permute.xlu0 %455  ;;  %v1356_v3 = vadd.f32 %v1228_v10, %v796_v37  ;;  %v1358_v58 = vadd.f32 %v1230_v9, %v798_v35  ;;  %v5945_v60 = vadd.f32 %v1227_v15, %v795_v33 }
  0xcc   : > { %v5949_v56 = vmul.f32 %v5676_v32, %v5915_v14  ;;  %v824_v48 = vmul.f32 %v5619_v17, %v5943_v7  ;;  %v1288_v43 = vmul.f32 %v5622_v18, %v5941_v4  ;;  %v826_v40 = vmul.f32 %v5626_v20, %v5943_v7 }
  0xcd   : > { %v1290_v42 = vmul.f32 %v5631_v24, %v5941_v4  ;;  %v823_v15 = vmul.f32 %v5634_v25, %v5943_v7  ;;  %v1287_v33 = vmul.f32 %v5637_v26, %v5941_v4  ;;  %v825_v35 = vmul.f32 %v5640_v27, %v5943_v7 }
  0xce   : > { %v1289_v17 = vmul.f32 %v5649_v38, %v5941_v4  ;;  %v1384_v37 = vadd.f32 %v1256_v2, %v824_v48  ;;  %v1416_v18 = vadd.f32 %v1288_v43, %v856_v61  ;;  %v1386_v44 = vadd.f32 %v1258_v59, %v826_v40 }
  0xcf   : > { %v1418_v0 = vadd.f32 %v1290_v42, %v858_v51  ;;  %v5967_v20 = vpop.permute.xlu0 %1458  ;;  %v1383_v9 = vadd.f32 %v1255_v54, %v823_v15  ;;  %v1415_v24 = vadd.f32 %v1287_v33, %v855_v46  ;;  %v1385_v10 = vadd.f32 %v1257_v36, %v825_v35 }
  0xd0   : > { %v1417_v29 = vadd.f32 %v1289_v17, %v857_v45  ;;  %v5969_v25 = vpop.permute.xlu1 %1453  ;;  %v1504_v26 = vadd.f32 %v5967_v20, %v1352_v16  ;;  %v1506_v30 = vadd.f32 %v5967_v20, %v1354_v8  ;;  %v1503_v27 = vadd.f32 %v5967_v20, %v1351_v6 }
  0xd1   : > { %v1505_v38 = vadd.f32 %v5967_v20, %v1353_v21  ;;  %v1472_v61 = vadd.f32 %v5969_v25, %v5843_v53  ;;  %v1474_v51 = vadd.f32 %v5969_v25, %v5845_v55  ;;  %v1471_v54 = vadd.f32 %v5969_v25, %v5853_v19 }
  0xd2   : > { %v1473_v45 = vadd.f32 %v5969_v25, %v5855_v12  ;;  %v1632_v46 = vmax.f32 %v1504_v26, 0.0  ;;  %v1634_v16 = vmax.f32 %v1506_v30, 0.0  ;;  %v1631_v36 = vmax.f32 %v1503_v27, 0.0 }
  0xd3   : > { %v1633_v8 = vmax.f32 %v1505_v38, 0.0  ;;  %v1600_v22 = vmax.f32 %v1472_v61, 0.0  ;;  %v1602_v6 = vmax.f32 %v1474_v51, 0.0  ;;  %v1599_v34 = vmax.f32 %v1471_v54, 0.0 }
  0xd4   : > { %v1601_v21 = vmax.f32 %v1473_v45, 0.0  ;;  %v5983_v2 = vpop.permute.xlu1 %1463  ;;  %v1476_v53 = vadd.f32 %v5969_v25, %v5881_v1  ;;  %v1508_v55 = vadd.f32 %v5967_v20, %v1356_v3  ;;  %v1478_v19 = vadd.f32 %v5969_v25, %v5885_v5 }
  0xd5   : > { %v1510_v12 = vadd.f32 %v5967_v20, %v1358_v58  ;;  %v4861_v59 = vpack.c.bf16 %v1632_v46, %v1600_v22  ;;  %v4869_v48 = vpack.c.bf16 %v1634_v16, %v1602_v6  ;;  %v4863_v43 = vpack.c.bf16 %v1631_v36, %v1599_v34 }
  0xd6   : > { %v4871_v40 = vpack.c.bf16 %v1633_v8, %v1601_v21  ;;  %v1536_v42 = vadd.f32 %v5983_v2, %v1384_v37  ;;  %v1538_v15 = vadd.f32 %v5983_v2, %v1386_v44  ;;  %v1535_v33 = vadd.f32 %v5983_v2, %v1383_v9 }
  0xd7   : > { %v1537_v35 = vadd.f32 %v5983_v2, %v1385_v10  ;;  %4862 = vmatprep.subr.bf16.mxu0 %v4861_v59  ;;  %4870 = vmatprep.subr.bf16.mxu1 %v4869_v48  ;;  %v1604_v3 = vmax.f32 %v1476_v53, 0.0  ;;  %v1636_v1 = vmax.f32 %v1508_v55, 0.0  ;;  %v1606_v17 = vmax.f32 %v1478_v19, 0.0 }
  0xd8   : > { %v1638_v5 = vmax.f32 %v1510_v12, 0.0  ;;  %v5995_v26 = vpop.permute.xlu1 %1468  ;;  %4864 = vmatpush1.bf16.msra.mxu0 %v4863_v43  ;;  %4872 = vmatpush1.bf16.msra.mxu1 %v4871_v40  ;;  %v1664_v58 = vmax.f32 %v1536_v42, 0.0  ;;  %v1666_v30 = vmax.f32 %v1538_v15, 0.0  ;;  %v1663_v27 = vmax.f32 %v1535_v33, 0.0 }
  0xd9   : > { %v1665_v37 = vmax.f32 %v1537_v35, 0.0  ;;  %v1568_v44 = vadd.f32 %v5995_v26, %v1416_v18  ;;  %v1570_v9 = vadd.f32 %v5995_v26, %v1418_v0  ;;  %v1567_v10 = vadd.f32 %v5995_v26, %v1415_v24 }
  0xda   : > { %v1569_v38 = vadd.f32 %v5995_v26, %v1417_v29  ;;  %v4877_v61 = vpack.c.bf16 %v1636_v1, %v1604_v3  ;;  %v4885_v51 = vpack.c.bf16 %v1638_v5, %v1606_v17  ;;  %v1475_v54 = vadd.f32 %v5969_v25, %v5939_v31  ;;  %v7272_v3 = vld [vmem:[#allocation17_spill] sm:$0xff] }
  0xdb   : > { %v1507_v45 = vadd.f32 %v5967_v20, %v5945_v60  ;;  %v1696_v46 = vmax.f32 %v1568_v44, 0.0  ;;  %v1698_v16 = vmax.f32 %v1570_v9, 0.0  ;;  %v1695_v36 = vmax.f32 %v1567_v10, 0.0 }
  0xdc   : > { %v1697_v8 = vmax.f32 %v1569_v38, 0.0  ;;  %v1603_v22 = vmax.f32 %v1475_v54, 0.0  ;;  %v1325_v0 = vadd.f32 %v5901_v11, %v5895_v41  ;;  %v1357_v24 = vadd.f32 %v5905_v63, %v5949_v56  ;;  %v6022_v63 = vld [vmem:[%s7148_s4] sm:$0xff]  ;;  %v7274_v38 = vld [vmem:[#allocation18_spill] sm:$0xff] }
  0xdd   : > { %v1635_v18 = vmax.f32 %v1507_v45, 0.0  ;;  %v4865_v29 = vpack.c.bf16 %v1696_v46, %v1664_v58  ;;  %v4873_v6 = vpack.c.bf16 %v1698_v16, %v1666_v30  ;;  %v4867_v34 = vpack.c.bf16 %v1695_v36, %v1663_v27  ;;  %v7275_v46 = vld [vmem:[#allocation52_spill] sm:$0xff]  ;;  %v7276_v16 = vld [vmem:[#allocation19_spill] sm:$0xff] }
  0xde   : > { %v4875_v21 = vpack.c.bf16 %v1697_v8, %v1665_v37  ;;  %v1477_v53 = vadd.f32 %v5969_v25, %v1325_v0  ;;  %v1509_v60 = vadd.f32 %v5967_v20, %v1357_v24  ;;  %v828_v55 = vmul.f32 %v5652_v39, %v5943_v7 }
  0xdf   : > { %v4879_v31 = vpack.c.bf16 %v1635_v18, %v1603_v22  ;;  %4866 = vmatprep.subr.bf16.mxu0 %v4865_v29  ;;  %4874 = vmatprep.subr.bf16.mxu1 %v4873_v6  ;;  %v860_v41 = vmul.f32 %v5652_v39, %v5897_v62  ;;  %v1292_v56 = vmul.f32 %v5660_v47, %v5941_v4  ;;  %v390_v33 = vand.u32 2147483647, %v5825_v23  ;;  %v7277_v29 = vld [vmem:[#allocation51_spill] sm:$0xff]  ;;  %v7278_v6 = vld [vmem:[#allocation20_spill] sm:$0xff] }
  0xe0   : > { %v830_v11 = vmul.f32 %v5663_v49, %v5943_v7  ;;  %4868 = vmatpush1.bf16.msra.mxu0 %v4867_v34  ;;  %4876 = vmatpush1.bf16.msra.mxu1 %v4875_v21  ;;  %v1605_v19 = vmax.f32 %v1477_v53, 0.0  ;;  %v1637_v12 = vmax.f32 %v1509_v60, 0.0  ;;  %v1388_v59 = vadd.f32 %v5909_v28, %v828_v55  ;;  %v7279_v21 = vld [vmem:[#allocation55_spill] sm:$0xff]  ;;  %v7280_v53 = vld [vmem:[#allocation21_spill] sm:$0xff]  ;;  %v6082_v55 = vld [vmem:[%s7148_s4 + $0x10] sm:$0xff] }
  0xe1   : > { %v862_v39 = vmul.f32 %v5663_v49, %v5897_v62  ;;  %4878 = vmatprep.subr.bf16.mxu0 %v4877_v61  ;;  %4886 = vmatprep.subr.bf16.mxu1 %v4885_v51  ;;  %v1420_v47 = vadd.f32 %v1292_v56, %v860_v41  ;;  %v1294_v48 = vmul.f32 %v5666_v50, %v5941_v4  ;;  %v7273_v37 = vmov 0.0  }
  0xe2   : > { %v1390_v43 = vadd.f32 %v5913_v13, %v830_v11  ;;  %v4887_v40 = vpack.c.bf16 %v1637_v12, %v1605_v19  ;;  %v1540_v42 = vadd.f32 %v5983_v2, %v1388_v59  ;;  %v827_v15 = vmul.f32 %v5670_v52, %v5943_v7 }
  0xe3   : > { %v859_v28 = vmul.f32 %v5670_v52, %v5897_v62  ;;  %4774 = vmatmul.mubr.msk.f32.vlgmr.msra.gmra.mrb[0].mxu0 %vm1755_vm7, %v6022_v63  ;;  %4778 = vmatmul.mubr.msk.f32.vlgmr.msra.gmra.mrb[0].mxu1 %vm1755_vm7, %v6022_v63  ;;  %v1572_v49 = vadd.f32 %v5995_v26, %v1420_v47  ;;  %v1422_v50 = vadd.f32 %v1294_v48, %v862_v39  ;;  %v6045_v52 = vld [vmem:[%s7148_s4 + $0x8] sm:$0xff]  ;;  %v7281_v47 = vld [vmem:[#allocation22_spill] sm:$0xff] }
  0xe4   : > { %v1542_v13 = vadd.f32 %v5983_v2, %v1390_v43  ;;  %4880 = vmatpush1.bf16.msra.mxu0 %v4879_v31  ;;  %4888 = vmatpush1.bf16.msra.mxu1 %v4887_v40  ;;  %v1668_v35 = vmax.f32 %v1540_v42, 0.0  ;;  %v1259_v1 = vmul.f32 %v7272_v3, %v5861_v57  ;;  %v1291_v17 = vmul.f32 %v7272_v3, %v5941_v4 }
  0xe5   : > { %v829_v5 = vmul.f32 %v5676_v32, %v5943_v7  ;;  %v1700_v58 = vmax.f32 %v1572_v49, 0.0  ;;  %v1574_v30 = vadd.f32 %v5995_v26, %v1422_v50  ;;  %1838 = vmatprep.mubr.f32.mxu0 %v7273_v37  ;;  %1927 = vmatprep.mubr.f32.mxu1 %v7273_v37  ;;  %v861_v44 = vmul.f32 %v5676_v32, %v5897_v62 }
  0xe6   : > { %v1670_v27 = vmax.f32 %v1542_v13, 0.0  ;;  %v1387_v9 = vadd.f32 %v1259_v1, %v827_v15  ;;  %v1419_v10 = vadd.f32 %v1291_v17, %v859_v28  ;;  %v1261_v61 = vmul.f32 %v7274_v38, %v5861_v57  ;;  %v6104_v13 = vld [vmem:[%s7148_s4 + $0x18] sm:$0xff] }
  0xe7   : > { %v1293_v51 = vmul.f32 %v7274_v38, %v5941_v4  ;;  %v4881_v54 = vpack.c.bf16 %v1700_v58, %v1668_v35  ;;  %v1702_v45 = vmax.f32 %v1574_v30, 0.0  ;;  %4775 = vmatmul.mubr.msk.f32.gmra.mrb[2].mxu0 %vm1755_vm7, %v6045_v52  ;;  %4779 = vmatmul.mubr.msk.f32.gmra.mrb[2].mxu1 %vm1755_vm7, %v6045_v52  ;;  %v768_v36 = vmul.f32 %v7276_v16, %v7275_v46  ;;  %v7282_v1 = vld [vmem:[#allocation23_spill] sm:$0xff] }
  0xe8   : > { %v800_v32 = vmul.f32 %v7276_v16, %v5915_v14  ;;  %v1539_v8 = vadd.f32 %v5983_v2, %v1387_v9  ;;  %v1571_v22 = vadd.f32 %v5995_v26, %v1419_v10  ;;  %v1389_v18 = vadd.f32 %v1261_v61, %v829_v5  ;;  %1844 = vmatprep.mubr.f32.mxu0 %v7273_v37  ;;  %v7284_v61 = vld [vmem:[#allocation25_spill] sm:$0xff] }
  0xe9   : > { %v1421_v0 = vadd.f32 %v1293_v51, %v861_v44  ;;  %4882 = vmatprep.subr.bf16.mxu0 %v4881_v54  ;;  %v4889_v24 = vpack.c.bf16 %v1702_v45, %v1670_v27  ;;  %v1200_v34 = vmul.f32 %v7278_v6, %v7277_v29  ;;  %v1232_v31 = vmul.f32 %v7278_v6, %v7279_v21  ;;  %v7283_v44 = vld [vmem:[#allocation24_spill] sm:$0xff] }
  0xea   : > { %v770_v60 = vmul.f32 %v7280_v53, %v7275_v46  ;;  %v1667_v41 = vmax.f32 %v1539_v8, 0.0  ;;  %v1699_v56 = vmax.f32 %v1571_v22, 0.0  ;;  %v1541_v11 = vadd.f32 %v5983_v2, %v1389_v18  ;;  %1933 = vmatprep.mubr.f32.mxu1 %v7273_v37 }
  0xeb   : > { %v1573_v19 = vadd.f32 %v5995_v26, %v1421_v0  ;;  %4890 = vmatprep.subr.bf16.mxu1 %v4889_v24  ;;  %v1328_v12 = vadd.f32 %v1200_v34, %v768_v36  ;;  %v1360_v59 = vadd.f32 %v1232_v31, %v800_v32  ;;  %v802_v39 = vmul.f32 %v7280_v53, %v5915_v14  ;;  %v7285_v0 = vld [vmem:[#allocation26_spill] sm:$0xff] }
  0xec   : > { %v1202_v48 = vmul.f32 %v7281_v47, %v7277_v29  ;;  %v4883_v43 = vpack.c.bf16 %v1699_v56, %v1667_v41  ;;  %v1669_v40 = vmax.f32 %v1541_v11, 0.0  ;;  %v1234_v15 = vmul.f32 %v7281_v47, %v7279_v21  ;;  %4776 = vmatmul.mubr.msk.f32.gmra.mrb[4].mxu0 %vm1755_vm7, %v6082_v55  ;;  %4780 = vmatmul.mubr.msk.f32.gmra.mrb[4].mxu1 %vm1755_vm7, %v6082_v55 }
  0xed   : > { %v1701_v42 = vmax.f32 %v1573_v19, 0.0  ;;  %v1480_v28 = vadd.f32 %v5969_v25, %v1328_v12  ;;  %v1512_v49 = vadd.f32 %v5967_v20, %v1360_v59  ;;  %1850 = vmatprep.mubr.f32.mxu0 %v7273_v37  ;;  %1939 = vmatprep.mubr.f32.mxu1 %v7273_v37  ;;  %v767_v17 = vmul.f32 %v7282_v1, %v7275_v46 }
  0xee   : > { %v1330_v50 = vadd.f32 %v1202_v48, %v770_v60  ;;  %4884 = vmatpush1.bf16.msra.mxu0 %v4883_v43  ;;  %v1362_v3 = vadd.f32 %v1234_v15, %v802_v39  ;;  %v799_v5 = vmul.f32 %v7282_v1, %v5915_v14  ;;  %v1199_v9 = vmul.f32 %v7283_v44, %v7277_v29 }
  0xef   : > { %v4891_v35 = vpack.c.bf16 %v1701_v42, %v1669_v40  ;;  %v1608_v58 = vmax.f32 %v1480_v28, 0.0  ;;  %v1640_v30 = vmax.f32 %v1512_v49, 0.0  ;;  %v1231_v38 = vmul.f32 %v7283_v44, %v7279_v21 }
  0xf0   : > { %v1482_v27 = vadd.f32 %v5969_v25, %v1330_v50  ;;  %v1514_v10 = vadd.f32 %v5967_v20, %v1362_v3  ;;  %4777 = vmatmul.mubr.msk.f32.gmra.mrb[6].mxu0 %vm1755_vm7, %v6104_v13  ;;  %v769_v51 = vmul.f32 %v7284_v61, %v7275_v46  ;;  %v6122_v54 = vadd.f32 1.0, %v390_v33  ;;  %4781 = vmatmul.mubr.msk.f32.gmra.mrb[6].mxu1 %vm1755_vm7, %v6104_v13 }
  0xf1   : > { %4892 = vmatpush1.bf16.msra.mxu1 %v4891_v35  ;;  %v4893_v45 = vpack.c.bf16 %v1640_v30, %v1608_v58  ;;  %2010 = vmatprep.mubr.f32.mxu0 %v7273_v37  ;;  %v1327_v32 = vadd.f32 %v1199_v9, %v767_v17  ;;  %v801_v8 = vmul.f32 %v7284_v61, %v5915_v14 }
  0xf2   : > { %v1610_v36 = vmax.f32 %v1482_v27, 0.0  ;;  %v1642_v22 = vmax.f32 %v1514_v10, 0.0  ;;  %2099 = vmatprep.mubr.f32.mxu1 %v7273_v37  ;;  %v1359_v18 = vadd.f32 %v1231_v38, %v799_v5  ;;  %v1201_v24 = vmul.f32 %v7285_v0, %v7277_v29 }
  0xf3   : > { %v1233_v33 = vmul.f32 %v7285_v0, %v7279_v21  ;;  %4894 = vmatprep.subr.bf16.mxu0 %v4893_v45  ;;  %v1479_v34 = vadd.f32 %v5969_v25, %v1327_v32  ;;  %v832_v31 = vmul.f32 %v7276_v16, %v5943_v7  ;;  %v864_v60 = vmul.f32 %v7276_v16, %v5897_v62 }
  0xf4   : > { %v1264_v41 = vmul.f32 %v7278_v6, %v5861_v57  ;;  %v4901_v56 = vpack.c.bf16 %v1642_v22, %v1610_v36  ;;  %4782 = vmatmul.mubr.msk.f32.vlgmr.msra.gmra.mrb[8].mxu0 %vm1755_vm7, %v6022_v63  ;;  %v1511_v11 = vadd.f32 %v5967_v20, %v1359_v18  ;;  %v1329_v19 = vadd.f32 %v1201_v24, %v769_v51 }
  0xf5   : > { %v1361_v12 = vadd.f32 %v1233_v33, %v801_v8  ;;  %4786 = vmatmul.mubr.msk.f32.vlgmr.msra.gmra.mrb[8].mxu1 %vm1755_vm7, %v6022_v63  ;;  %v1607_v59 = vmax.f32 %v1479_v34, 0.0  ;;  %v1296_v39 = vmul.f32 %v7278_v6, %v5941_v4  ;;  %v834_v16 = vmul.f32 %v7280_v53, %v5943_v7  ;;  %2016 = vmatprep.mubr.f32.mxu0 %v7273_v37 }
  0xf6   : > { %v1392_v48 = vadd.f32 %v1264_v41, %v832_v31  ;;  %4902 = vmatprep.subr.bf16.mxu1 %v4901_v56  ;;  %v1639_v43 = vmax.f32 %v1511_v11, 0.0  ;;  %v1481_v40 = vadd.f32 %v5969_v25, %v1329_v19  ;;  %v866_v15 = vmul.f32 %v7280_v53, %v5897_v62  ;;  %2105 = vmatprep.mubr.f32.mxu1 %v7273_v37  ;;  %v7286_v41 = vld [vmem:[#allocation27_spill] sm:$0xff] }
  0xf7   : > { %v1513_v42 = vadd.f32 %v5967_v20, %v1361_v12  ;;  %v1424_v28 = vadd.f32 %v1296_v39, %v864_v60  ;;  %v1266_v49 = vmul.f32 %v7281_v47, %v5861_v57  ;;  %v1298_v50 = vmul.f32 %v7281_v47, %v5941_v4  ;;  %v7287_v12 = vld [vmem:[#allocation28_spill] sm:$0xff] }
  0xf8   : > { %v1544_v6 = vadd.f32 %v5983_v2, %v1392_v48  ;;  %v4895_v35 = vpack.c.bf16 %v1639_v43, %v1607_v59  ;;  %v1609_v3 = vmax.f32 %v1481_v40, 0.0  ;;  %4783 = vmatmul.mubr.msk.f32.gmra.mrb[10].mxu0 %vm1755_vm7, %v6045_v52  ;;  %v831_v53 = vmul.f32 %v7282_v1, %v5943_v7 }
  0xf9   : > { %v1641_v17 = vmax.f32 %v1513_v42, 0.0  ;;  %v1576_v5 = vadd.f32 %v5995_v26, %v1424_v28  ;;  %v1394_v30 = vadd.f32 %v1266_v49, %v834_v16  ;;  %v1426_v27 = vadd.f32 %v1298_v50, %v866_v15  ;;  %4787 = vmatmul.mubr.msk.f32.gmra.mrb[10].mxu1 %vm1755_vm7, %v6045_v52  ;;  %2022 = vmatprep.mubr.f32.mxu0 %v7273_v37  ;;  %v7288_v15 = vld [vmem:[#allocation29_spill] sm:$0xff] }
  0xfa   : > { %v1672_v58 = vmax.f32 %v1544_v6, 0.0  ;;  %4896 = vmatpush1.bf16.msra.mxu0 %v4895_v35  ;;  %v863_v9 = vmul.f32 %v7282_v1, %v5897_v62  ;;  %v1263_v10 = vmul.f32 %v7283_v44, %v5861_v57  ;;  %v1295_v38 = vmul.f32 %v7283_v44, %v5941_v4  ;;  %2111 = vmatprep.mubr.f32.mxu1 %v7273_v37 }
  0xfb   : > { %v4903_v47 = vpack.c.bf16 %v1641_v17, %v1609_v3  ;;  %v1704_v51 = vmax.f32 %v1576_v5, 0.0  ;;  %v1546_v45 = vadd.f32 %v5983_v2, %v1394_v30  ;;  %v1578_v36 = vadd.f32 %v5995_v26, %v1426_v27  ;;  %v7289_v3 = vld [vmem:[#allocation30_spill] sm:$0xff]  ;;  %v7290_v30 = vld [vmem:[#allocation31_spill] sm:$0xff] }
  0xfc   : > { %v833_v32 = vmul.f32 %v7284_v61, %v5943_v7  ;;  %v1391_v8 = vadd.f32 %v1263_v10, %v831_v53  ;;  %v1423_v22 = vadd.f32 %v1295_v38, %v863_v9  ;;  %v865_v1 = vmul.f32 %v7284_v61, %v5897_v62  ;;  %4784 = vmatmul.mubr.msk.f32.gmra.mrb[12].mxu0 %vm1755_vm7, %v6082_v55  ;;  %v7291_v38 = vld [vmem:[#allocation32_spill] sm:$0xff] }
  0xfd   : > { %4904 = vmatpush1.bf16.msra.mxu1 %v4903_v47  ;;  %v1265_v18 = vmul.f32 %v7285_v0, %v5861_v57  ;;  %v4897_v44 = vpack.c.bf16 %v1704_v51, %v1672_v58  ;;  %v1674_v24 = vmax.f32 %v1546_v45, 0.0  ;;  %v1706_v33 = vmax.f32 %v1578_v36, 0.0  ;;  %2028 = vmatprep.mubr.f32.mxu0 %v7273_v37 }
  0xfe   : > { %v1297_v34 = vmul.f32 %v7285_v0, %v5941_v4  ;;  %4788 = vmatmul.mubr.msk.f32.gmra.mrb[12].mxu1 %vm1755_vm7, %v6082_v55  ;;  %v1543_v31 = vadd.f32 %v5983_v2, %v1391_v8  ;;  %v1575_v60 = vadd.f32 %v5995_v26, %v1423_v22  ;;  %v772_v56 = vmul.f32 %v7286_v41, %v7275_v46 }
  0xff   : > { %v1393_v61 = vadd.f32 %v1265_v18, %v833_v32  ;;  %4898 = vmatprep.subr.bf16.mxu0 %v4897_v44  ;;  %v4905_v11 = vpack.c.bf16 %v1706_v33, %v1674_v24  ;;  %v804_v0 = vmul.f32 %v7286_v41, %v5915_v14  ;;  %v1204_v59 = vmul.f32 %v7287_v12, %v7277_v29  ;;  %v7292_v44 = vld [vmem:[#allocation33_spill] sm:$0xff] }
 0x100   : > { %v1425_v19 = vadd.f32 %v1297_v34, %v865_v1  ;;  %v1671_v39 = vmax.f32 %v1543_v31, 0.0  ;;  %v1703_v48 = vmax.f32 %v1575_v60, 0.0  ;;  %v1236_v43 = vmul.f32 %v7287_v12, %v7279_v21  ;;  %2117 = vmatprep.mubr.f32.mxu1 %v7273_v37  ;;  %4785 = vmatmul.mubr.msk.f32.gmra.mrb[14].mxu0 %vm1755_vm7, %v6104_v13 }
 0x101   : > { %v1545_v16 = vadd.f32 %v5983_v2, %v1393_v61  ;;  %4906 = vmatprep.subr.bf16.mxu1 %v4905_v11  ;;  %v1332_v42 = vadd.f32 %v1204_v59, %v772_v56  ;;  %v774_v28 = vmul.f32 %v7288_v15, %v7275_v46  ;;  %v806_v6 = vmul.f32 %v7288_v15, %v5915_v14  ;;  %v7293_v11 = vld [vmem:[#allocation34_spill] sm:$0xff] }
 0x102   : > { %v1577_v40 = vadd.f32 %v5995_v26, %v1425_v19  ;;  %v4899_v49 = vpack.c.bf16 %v1703_v48, %v1671_v39  ;;  %v1364_v35 = vadd.f32 %v1236_v43, %v804_v0  ;;  %v1206_v17 = vmul.f32 %v7289_v3, %v7277_v29  ;;  %4789 = vmatmul.mubr.msk.f32.gmra.mrb[14].mxu1 %vm1755_vm7, %v6104_v13 }
 0x103   : > { %v1673_v50 = vmax.f32 %v1545_v16, 0.0  ;;  %v1484_v5 = vadd.f32 %v5969_v25, %v1332_v42  ;;  %v1238_v58 = vmul.f32 %v7289_v3, %v7279_v21  ;;  %2188 = vmatprep.mubr.f32.mxu0 %v7273_v37  ;;  %2277 = vmatprep.mubr.f32.mxu1 %v7273_v37  ;;  %v771_v27 = vmul.f32 %v7290_v30, %v7275_v46 }
 0x104   : > { %v1705_v53 = vmax.f32 %v1577_v40, 0.0  ;;  %4900 = vmatpush1.bf16.msra.mxu0 %v4899_v49  ;;  %v1516_v47 = vadd.f32 %v5967_v20, %v1364_v35  ;;  %v1334_v9 = vadd.f32 %v1206_v17, %v774_v28  ;;  %v803_v10 = vmul.f32 %v7290_v30, %v5915_v14 }
 0x105   : > { %v1203_v51 = vmul.f32 %v7291_v38, %v7277_v29  ;;  %v1612_v36 = vmax.f32 %v1484_v5, 0.0  ;;  %v1366_v32 = vadd.f32 %v1238_v58, %v806_v6  ;;  %v1235_v8 = vmul.f32 %v7291_v38, %v7279_v21 }
 0x106   : > { %v4907_v45 = vpack.c.bf16 %v1705_v53, %v1673_v50  ;;  %v1644_v22 = vmax.f32 %v1516_v47, 0.0  ;;  %v1486_v1 = vadd.f32 %v5969_v25, %v1334_v9  ;;  %v773_v24 = vmul.f32 %v7292_v44, %v7275_v46 }
 0x107   : > { %v1331_v18 = vadd.f32 %v1203_v51, %v771_v27  ;;  %v1518_v33 = vadd.f32 %v5967_v20, %v1366_v32  ;;  %4790 = vmatmul.mubr.msk.f32.vlgmr.msra.gmra.mrb[16].mxu0 %vm1755_vm7, %v6022_v63  ;;  %v1363_v34 = vadd.f32 %v1235_v8, %v803_v10  ;;  %v805_v31 = vmul.f32 %v7292_v44, %v5915_v14 }
 0x108   : > { %4908 = vmatpush1.bf16.msra.mxu1 %v4907_v45  ;;  %5204 = vlog2.f32 %v6122_v54  ;;  %v4909_v60 = vpack.c.bf16 %v1644_v22, %v1612_v36  ;;  %v1614_v61 = vmax.f32 %v1486_v1, 0.0  ;;  %v1205_v19 = vmul.f32 %v7293_v11, %v7277_v29  ;;  %2194 = vmatprep.mubr.f32.mxu0 %v7273_v37 }
 0x109   : > { %v1483_v56 = vadd.f32 %v5969_v25, %v1331_v18  ;;  %v1646_v0 = vmax.f32 %v1518_v33, 0.0  ;;  %v1515_v59 = vadd.f32 %v5967_v20, %v1363_v34  ;;  %v1237_v39 = vmul.f32 %v7293_v11, %v7279_v21 }
 0x10a   : > { %v836_v48 = vmul.f32 %v7286_v41, %v5943_v7  ;;  %4910 = vmatprep.subr.bf16.mxu0 %v4909_v60  ;;  %v1333_v16 = vadd.f32 %v1205_v19, %v773_v24  ;;  %v868_v43 = vmul.f32 %v7286_v41, %v5897_v62  ;;  %v1268_v40 = vmul.f32 %v7287_v12, %v5861_v57 }
 0x10b   : > { %4794 = vmatmul.mubr.msk.f32.vlgmr.msra.gmra.mrb[16].mxu1 %vm1755_vm7, %v6022_v63  ;;  %v1611_v54 = vmax.f32 %v1483_v56, 0.0  ;;  %v4917_v42 = vpack.c.bf16 %v1646_v0, %v1614_v61  ;;  %v1643_v28 = vmax.f32 %v1515_v59, 0.0  ;;  %v1365_v6 = vadd.f32 %v1237_v39, %v805_v31  ;;  %4791 = vmatmul.mubr.msk.f32.gmra.mrb[18].mxu0 %vm1755_vm7, %v6045_v52 }
 0x10c   : > { %v1300_v49 = vmul.f32 %v7287_v12, %v5941_v4  ;;  %2283 = vmatprep.mubr.f32.mxu1 %v7273_v37  ;;  %v1485_v50 = vadd.f32 %v5969_v25, %v1333_v16  ;;  %v1396_v35 = vadd.f32 %v1268_v40, %v836_v48  ;;  %v838_v41 = vmul.f32 %v7288_v15, %v5943_v7 }
 0x10d   : > { %v870_v17 = vmul.f32 %v7288_v15, %v5897_v62  ;;  %2200 = vmatprep.mubr.f32.mxu0 %v7273_v37  ;;  %4918 = vmatprep.subr.bf16.mxu1 %v4917_v42  ;;  %v4911_v53 = vpack.c.bf16 %v1643_v28, %v1611_v54  ;;  %v1517_v12 = vadd.f32 %v5967_v20, %v1365_v6 }
 0x10e   : > { %v1428_v5 = vadd.f32 %v1300_v49, %v868_v43  ;;  %v1270_v58 = vmul.f32 %v7289_v3, %v5861_v57  ;;  %v1613_v27 = vmax.f32 %v1485_v50, 0.0  ;;  %v1548_v47 = vadd.f32 %v5983_v2, %v1396_v35 }
 0x10f   : > { %v1302_v9 = vmul.f32 %v7289_v3, %v5941_v4  ;;  %4795 = vmatmul.mubr.msk.f32.gmra.mrb[18].mxu1 %vm1755_vm7, %v6045_v52  ;;  %v835_v15 = vmul.f32 %v7290_v30, %v5943_v7  ;;  %4912 = vmatpush1.bf16.msra.mxu0 %v4911_v53  ;;  %v1645_v10 = vmax.f32 %v1517_v12, 0.0  ;;  %v867_v36 = vmul.f32 %v7290_v30, %v5897_v62  ;;  %v7296_v53 = vld [vmem:[#allocation38_spill] sm:$0xff] }
 0x110   : > { %v1580_v51 = vadd.f32 %v5995_v26, %v1428_v5  ;;  %v1398_v45 = vadd.f32 %v1270_v58, %v838_v41  ;;  %2289 = vmatprep.mubr.f32.mxu1 %v7273_v37  ;;  %v1676_v32 = vmax.f32 %v1548_v47, 0.0  ;;  %v1267_v3 = vmul.f32 %v7291_v38, %v5861_v57  ;;  %4792 = vmatmul.mubr.msk.f32.gmra.mrb[20].mxu0 %vm1755_vm7, %v6082_v55  ;;  %v7297_v47 = vld [vmem:[#allocation39_spill] sm:$0xff] }
 0x111   : > { %v1430_v8 = vadd.f32 %v1302_v9, %v870_v17  ;;  %v1299_v22 = vmul.f32 %v7291_v38, %v5941_v4  ;;  %v4919_v18 = vpack.c.bf16 %v1645_v10, %v1613_v27  ;;  %v837_v30 = vmul.f32 %v7292_v44, %v5943_v7  ;;  %2206 = vmatprep.mubr.f32.mxu0 %v7273_v37 }
 0x112   : > { %v6283_v1 = vpop.eup %5204  ;;  %v1708_v24 = vmax.f32 %v1580_v51, 0.0  ;;  %v1550_v33 = vadd.f32 %v5983_v2, %v1398_v45  ;;  %v1395_v31 = vadd.f32 %v1267_v3, %v835_v15  ;;  %v869_v38 = vmul.f32 %v7292_v44, %v5897_v62  ;;  %v7294_v44 = vld [vmem:[#allocation35_spill] sm:$0xff] }
 0x113   : > { %v1582_v34 = vadd.f32 %v5995_v26, %v1430_v8  ;;  %v1427_v60 = vadd.f32 %v1299_v22, %v867_v36  ;;  %4796 = vmatmul.mubr.msk.f32.gmra.mrb[20].mxu1 %vm1755_vm7, %v6082_v55  ;;  %v1269_v19 = vmul.f32 %v7293_v11, %v5861_v57  ;;  %v1301_v0 = vmul.f32 %v7293_v11, %v5941_v4  ;;  %v7295_v11 = vld [vmem:[#allocation37_spill] sm:$0xff]  ;;  %v7298_v8 = vld [vmem:[#allocation40_spill] sm:$0xff] }
 0x114   : > { %4920 = vmatpush1.bf16.msra.mxu1 %v4919_v18  ;;  %v4913_v61 = vpack.c.bf16 %v1708_v24, %v1676_v32  ;;  %v1678_v56 = vmax.f32 %v1550_v33, 0.0  ;;  %2295 = vmatprep.mubr.f32.mxu1 %v7273_v37  ;;  %v1547_v39 = vadd.f32 %v5983_v2, %v1395_v31  ;;  %v776_v54 = vmul.f32 %v7294_v44, %v7275_v46 }
 0x115   : > { %v1710_v59 = vmax.f32 %v1582_v34, 0.0  ;;  %v1579_v48 = vadd.f32 %v5995_v26, %v1427_v60  ;;  %4793 = vmatmul.mubr.msk.f32.gmra.mrb[22].mxu0 %vm1755_vm7, %v6104_v13  ;;  %v1397_v16 = vadd.f32 %v1269_v19, %v837_v30  ;;  %v1429_v43 = vadd.f32 %v1301_v0, %v869_v38  ;;  %v7299_v30 = vld [vmem:[#allocation41_spill] sm:$0xff] }
 0x116   : > { %4914 = vmatprep.subr.bf16.mxu0 %v4913_v61  ;;  %v808_v40 = vmul.f32 %v7294_v44, %v5915_v14  ;;  %v1208_v42 = vmul.f32 %v7295_v11, %v7277_v29  ;;  %v1675_v6 = vmax.f32 %v1547_v39, 0.0  ;;  %v1240_v50 = vmul.f32 %v7295_v11, %v7279_v21  ;;  %2366 = vmatprep.mubr.f32.mxu0 %v7273_v37  ;;  %v7300_v61 = vld [vmem:[#allocation42_spill] sm:$0xff] }
 0x117   : > { %v4921_v28 = vpack.c.bf16 %v1710_v59, %v1678_v56  ;;  %v1707_v49 = vmax.f32 %v1579_v48, 0.0  ;;  %4797 = vmatmul.mubr.msk.f32.gmra.mrb[22].mxu1 %vm1755_vm7, %v6104_v13  ;;  %v1549_v35 = vadd.f32 %v5983_v2, %v1397_v16  ;;  %v1581_v41 = vadd.f32 %v5995_v26, %v1429_v43  ;;  %v7301_v16 = vld [vmem:[#allocation43_spill] sm:$0xff] }
 0x118   : > { %v1336_v17 = vadd.f32 %v1208_v42, %v776_v54  ;;  %v778_v12 = vmul.f32 %v7296_v53, %v7275_v46  ;;  %2455 = vmatprep.mubr.f32.mxu1 %v7273_v37  ;;  %v1368_v58 = vadd.f32 %v1240_v50, %v808_v40  ;;  %v810_v27 = vmul.f32 %v7296_v53, %v5915_v14 }
 0x119   : > { %4922 = vmatprep.subr.bf16.mxu1 %v4921_v28  ;;  %v4915_v5 = vpack.c.bf16 %v1707_v49, %v1675_v6  ;;  %v1210_v9 = vmul.f32 %v7297_v47, %v7277_v29  ;;  %v1677_v15 = vmax.f32 %v1549_v35, 0.0  ;;  %v1709_v10 = vmax.f32 %v1581_v41, 0.0 }
 0x11a   : > { %v1488_v51 = vadd.f32 %v5969_v25, %v1336_v17  ;;  %v1242_v45 = vmul.f32 %v7297_v47, %v7279_v21  ;;  %v1520_v36 = vadd.f32 %v5967_v20, %v1368_v58  ;;  %v775_v3 = vmul.f32 %v7298_v8, %v7275_v46 }
 0x11b   : > { %4916 = vmatpush1.bf16.msra.mxu0 %v4915_v5  ;;  %v1338_v32 = vadd.f32 %v1210_v9, %v778_v12  ;;  %v807_v22 = vmul.f32 %v7298_v8, %v5915_v14  ;;  %v4923_v18 = vpack.c.bf16 %v1709_v10, %v1677_v15  ;;  %v1207_v34 = vmul.f32 %v7299_v30, %v7277_v29 }
 0x11c   : > { %v1616_v24 = vmax.f32 %v1488_v51, 0.0  ;;  %v1370_v33 = vadd.f32 %v1242_v45, %v810_v27  ;;  %v1648_v31 = vmax.f32 %v1520_v36, 0.0  ;;  %v1239_v38 = vmul.f32 %v7299_v30, %v7279_v21 }
 0x11d   : > { %v1490_v60 = vadd.f32 %v5969_v25, %v1338_v32  ;;  %v777_v56 = vmul.f32 %v7300_v61, %v7275_v46  ;;  %4924 = vmatpush1.bf16.msra.mxu1 %v4923_v18  ;;  %v1335_v0 = vadd.f32 %v1207_v34, %v775_v3  ;;  %v809_v59 = vmul.f32 %v7300_v61, %v5915_v14 }
 0x11e   : > { %v1522_v19 = vadd.f32 %v5967_v20, %v1370_v33  ;;  %4798 = vmatmul.mubr.msk.f32.vlgmr.msra.gmra.mrb[24].mxu0 %vm1755_vm7, %v6022_v63  ;;  %v4925_v39 = vpack.c.bf16 %v1648_v31, %v1616_v24  ;;  %v1367_v54 = vadd.f32 %v1239_v38, %v807_v22  ;;  %v1209_v43 = vmul.f32 %v7301_v16, %v7277_v29 }
 0x11f   : > { %v1618_v48 = vmax.f32 %v1490_v60, 0.0  ;;  %2372 = vmatprep.mubr.f32.mxu0 %v7273_v37  ;;  %v1487_v42 = vadd.f32 %v5969_v25, %v1335_v0  ;;  %v1241_v28 = vmul.f32 %v7301_v16, %v7279_v21  ;;  %v840_v6 = vmul.f32 %v7294_v44, %v5943_v7 }
 0x120   : > { %v1650_v40 = vmax.f32 %v1522_v19, 0.0  ;;  %4926 = vmatprep.subr.bf16.mxu0 %v4925_v39  ;;  %4802 = vmatmul.mubr.msk.f32.vlgmr.msra.gmra.mrb[24].mxu1 %vm1755_vm7, %v6022_v63  ;;  %v1519_v49 = vadd.f32 %v5967_v20, %v1367_v54  ;;  %v1337_v50 = vadd.f32 %v1209_v43, %v777_v56  ;;  %v872_v35 = vmul.f32 %v7294_v44, %v5897_v62 }
 0x121   : > { %v6357_v41 = vmul.f32 0.6931472, %v6283_v1  ;;  %v1615_v12 = vmax.f32 %v1487_v42, 0.0  ;;  %v1369_v5 = vadd.f32 %v1241_v28, %v809_v59  ;;  %v1272_v58 = vmul.f32 %v7295_v11, %v5861_v57  ;;  %2461 = vmatprep.mubr.f32.mxu1 %v7273_v37 }
 0x122   : > { %v4933_v17 = vpack.c.bf16 %v1650_v40, %v1618_v48  ;;  %4799 = vmatmul.mubr.msk.f32.gmra.mrb[26].mxu0 %vm1755_vm7, %v6045_v52  ;;  %v1647_v27 = vmax.f32 %v1519_v49, 0.0  ;;  %v1489_v9 = vadd.f32 %v5969_v25, %v1337_v50  ;;  %v1304_v44 = vmul.f32 %v7295_v11, %v5941_v4 }
 0x123   : > { %v842_v1 = vmul.f32 %v7296_v53, %v5943_v7  ;;  %2378 = vmatprep.mubr.f32.mxu0 %v7273_v37  ;;  %v1521_v15 = vadd.f32 %v5967_v20, %v1369_v5  ;;  %v1400_v10 = vadd.f32 %v1272_v58, %v840_v6  ;;  %v874_v51 = vmul.f32 %v7296_v53, %v5897_v62 }
 0x124   : > { %4934 = vmatprep.subr.bf16.mxu1 %v4933_v17  ;;  %v1274_v45 = vmul.f32 %v7297_v47, %v5861_v57  ;;  %v4927_v36 = vpack.c.bf16 %v1647_v27, %v1615_v12  ;;  %v1617_v32 = vmax.f32 %v1489_v9, 0.0  ;;  %v1432_v3 = vadd.f32 %v1304_v44, %v872_v35  ;;  %4803 = vmatmul.mubr.msk.f32.gmra.mrb[26].mxu1 %vm1755_vm7, %v6045_v52 }
 0x125   : > { %v1306_v11 = vmul.f32 %v7297_v47, %v5941_v4  ;;  %v1649_v22 = vmax.f32 %v1521_v15, 0.0  ;;  %v1552_v18 = vadd.f32 %v5983_v2, %v1400_v10  ;;  %v839_v33 = vmul.f32 %v7298_v8, %v5943_v7  ;;  %2467 = vmatprep.mubr.f32.mxu1 %v7273_v37  ;;  %v7304_v15 = vld [vmem:[#allocation46_spill] sm:$0xff] }
 0x126   : > { %v1402_v24 = vadd.f32 %v1274_v45, %v842_v1  ;;  %4800 = vmatmul.mubr.msk.f32.gmra.mrb[28].mxu0 %vm1755_vm7, %v6082_v55  ;;  %v1584_v53 = vadd.f32 %v5995_v26, %v1432_v3  ;;  %v871_v47 = vmul.f32 %v7298_v8, %v5897_v62  ;;  %v1271_v31 = vmul.f32 %v7299_v30, %v5861_v57 }
 0x127   : > { %4928 = vmatpush1.bf16.msra.mxu0 %v4927_v36  ;;  %v1434_v34 = vadd.f32 %v1306_v11, %v874_v51  ;;  %v4935_v60 = vpack.c.bf16 %v1649_v22, %v1617_v32  ;;  %v1680_v38 = vmax.f32 %v1552_v18, 0.0  ;;  %v1303_v19 = vmul.f32 %v7299_v30, %v5941_v4  ;;  %2384 = vmatprep.mubr.f32.mxu0 %v7273_v37  ;;  %v7305_v32 = vld [vmem:[#allocation47_spill] sm:$0xff] }
 0x128   : > { %v1554_v56 = vadd.f32 %v5983_v2, %v1402_v24  ;;  %v1712_v0 = vmax.f32 %v1584_v53, 0.0  ;;  %v1399_v39 = vadd.f32 %v1271_v31, %v839_v33  ;;  %v841_v48 = vmul.f32 %v7300_v61, %v5943_v7  ;;  %4804 = vmatmul.mubr.msk.f32.gmra.mrb[28].mxu1 %vm1755_vm7, %v6082_v55 }
 0x129   : > { %v1586_v59 = vadd.f32 %v5995_v26, %v1434_v34  ;;  %4936 = vmatpush1.bf16.msra.mxu1 %v4935_v60  ;;  %v1431_v54 = vadd.f32 %v1303_v19, %v871_v47  ;;  %v873_v43 = vmul.f32 %v7300_v61, %v5897_v62  ;;  %v1273_v30 = vmul.f32 %v7301_v16, %v5861_v57  ;;  %v7302_v61 = vld [vmem:[#allocation44_spill] sm:$0xff]  ;;  %v7307_v19 = vld [vmem:[#allocation49_spill] sm:$0xff] }
 0x12a   : > { %v1682_v8 = vmax.f32 %v1554_v56, 0.0  ;;  %2473 = vmatprep.mubr.f32.mxu1 %v7273_v37  ;;  %v4929_v40 = vpack.c.bf16 %v1712_v0, %v1680_v38  ;;  %v1551_v28 = vadd.f32 %v5983_v2, %v1399_v39  ;;  %v1305_v6 = vmul.f32 %v7301_v16, %v5941_v4  ;;  %4801 = vmatmul.mubr.msk.f32.gmra.mrb[30].mxu0 %vm1755_vm7, %v6104_v13  ;;  %v7303_v16 = vld [vmem:[#allocation45_spill] sm:$0xff]  ;;  %v7306_v47 = vld [vmem:[#allocation48_spill] sm:$0xff] }
 0x12b   : > { %v1714_v42 = vmax.f32 %v1586_v59, 0.0  ;;  %v1583_v49 = vadd.f32 %v5995_v26, %v1431_v54  ;;  %v1401_v50 = vadd.f32 %v1273_v30, %v841_v48  ;;  %v780_v35 = vmul.f32 %v7302_v61, %v7275_v46  ;;  %2544 = vmatprep.mubr.f32.mxu0 %v7273_v37 }
 0x12c   : > { %v812_v17 = vmul.f32 %v7302_v61, %v5915_v14  ;;  %4930 = vmatprep.subr.bf16.mxu0 %v4929_v40  ;;  %v1679_v5 = vmax.f32 %v1551_v28, 0.0  ;;  %v1433_v58 = vadd.f32 %v1305_v6, %v873_v43  ;;  %v1212_v27 = vmul.f32 %v7303_v16, %v7277_v29  ;;  %4805 = vmatmul.mubr.msk.f32.gmra.mrb[30].mxu1 %vm1755_vm7, %v6104_v13  ;;  %v7308_v40 = vld [vmem:[#allocation50_spill] sm:$0xff] }
 0x12d   : > { %v4937_v12 = vpack.c.bf16 %v1714_v42, %v1682_v8  ;;  %v1711_v9 = vmax.f32 %v1583_v49, 0.0  ;;  %v1553_v44 = vadd.f32 %v5983_v2, %v1401_v50  ;;  %v1244_v1 = vmul.f32 %v7303_v16, %v7279_v21  ;;  %2633 = vmatprep.mubr.f32.mxu1 %v7273_v37  ;;  %v7309_v50 = vld [vmem:[#allocation53_spill] sm:$0xff] }
 0x12e   : > { %v782_v10 = vmul.f32 %v7304_v15, %v7275_v46  ;;  %v1585_v51 = vadd.f32 %v5995_v26, %v1433_v58  ;;  %v1340_v45 = vadd.f32 %v1212_v27, %v780_v35  ;;  %v814_v36 = vmul.f32 %v7304_v15, %v5915_v14 }
 0x12f   : > { %4938 = vmatprep.subr.bf16.mxu1 %v4937_v12  ;;  %v1214_v3 = vmul.f32 %v7305_v32, %v7277_v29  ;;  %v4931_v11 = vpack.c.bf16 %v1711_v9, %v1679_v5  ;;  %v1681_v22 = vmax.f32 %v1553_v44, 0.0  ;;  %v1372_v18 = vadd.f32 %v1244_v1, %v812_v17 }
 0x130   : > { %v1246_v24 = vmul.f32 %v7305_v32, %v7279_v21  ;;  %v1713_v33 = vmax.f32 %v1585_v51, 0.0  ;;  %v1492_v53 = vadd.f32 %v5969_v25, %v1340_v45  ;;  %v779_v31 = vmul.f32 %v7306_v47, %v7275_v46 }
 0x131   : > { %v1342_v34 = vadd.f32 %v1214_v3, %v782_v10  ;;  %4932 = vmatpush1.bf16.msra.mxu0 %v4931_v11  ;;  %v1524_v60 = vadd.f32 %v5967_v20, %v1372_v18  ;;  %v811_v56 = vmul.f32 %v7306_v47, %v5915_v14  ;;  %v1211_v0 = vmul.f32 %v7307_v19, %v7277_v29 }
 0x132   : > { %v1374_v38 = vadd.f32 %v1246_v24, %v814_v36  ;;  %v4939_v59 = vpack.c.bf16 %v1713_v33, %v1681_v22  ;;  %v1620_v39 = vmax.f32 %v1492_v53, 0.0  ;;  %v1243_v8 = vmul.f32 %v7307_v19, %v7279_v21 }
 0x133   : > { %v1494_v48 = vadd.f32 %v5969_v25, %v1342_v34  ;;  %v1652_v54 = vmax.f32 %v1524_v60, 0.0  ;;  %v1339_v30 = vadd.f32 %v1211_v0, %v779_v31  ;;  %v781_v42 = vmul.f32 %v7308_v40, %v7275_v46 }
 0x134   : > { %v1526_v43 = vadd.f32 %v5967_v20, %v1374_v38  ;;  %4940 = vmatpush1.bf16.msra.mxu1 %v4939_v59  ;;  %4806 = vmatmul.mubr.msk.f32.vlgmr.msra.gmra.mrb[32].mxu0 %vm1755_vm7, %v6022_v63  ;;  %v1371_v6 = vadd.f32 %v1243_v8, %v811_v56  ;;  %v813_v49 = vmul.f32 %v7308_v40, %v5915_v14 }
 0x135   : > { %v1622_v28 = vmax.f32 %v1494_v48, 0.0  ;;  %v1213_v35 = vmul.f32 %v7309_v50, %v7277_v29  ;;  %v4941_v17 = vpack.c.bf16 %v1652_v54, %v1620_v39  ;;  %v1491_v5 = vadd.f32 %v5969_v25, %v1339_v30  ;;  %2550 = vmatprep.mubr.f32.mxu0 %v7273_v37 }
 0x136   : > { %v1654_v12 = vmax.f32 %v1526_v43, 0.0  ;;  %v1245_v58 = vmul.f32 %v7309_v50, %v7279_v21  ;;  %v1523_v27 = vadd.f32 %v5967_v20, %v1371_v6  ;;  %v844_v44 = vmul.f32 %v7302_v61, %v5943_v7 }
 0x137   : > { %v1341_v9 = vadd.f32 %v1213_v35, %v781_v42  ;;  %v876_v1 = vmul.f32 %v7302_v61, %v5897_v62  ;;  %4942 = vmatprep.subr.bf16.mxu0 %v4941_v17  ;;  %4810 = vmatmul.mubr.msk.f32.vlgmr.msra.gmra.mrb[32].mxu1 %vm1755_vm7, %v6022_v63  ;;  %v1619_v51 = vmax.f32 %v1491_v5, 0.0  ;;  %v1276_v36 = vmul.f32 %v7303_v16, %v5861_v57 }
 0x138   : > { %v4949_v10 = vpack.c.bf16 %v1654_v12, %v1622_v28  ;;  %v1373_v45 = vadd.f32 %v1245_v58, %v813_v49  ;;  %v1651_v3 = vmax.f32 %v1523_v27, 0.0  ;;  %v1308_v22 = vmul.f32 %v7303_v16, %v5941_v4  ;;  %2639 = vmatprep.mubr.f32.mxu1 %v7273_v37  ;;  %4807 = vmatmul.mubr.msk.f32.gmra.mrb[34].mxu0 %vm1755_vm7, %v6045_v52 }
 0x139   : > { %v1493_v11 = vadd.f32 %v5969_v25, %v1341_v9  ;;  %v846_v18 = vmul.f32 %v7304_v15, %v5943_v7  ;;  %v1404_v61 = vadd.f32 %v1276_v36, %v844_v44  ;;  %v878_v24 = vmul.f32 %v7304_v15, %v5897_v62  ;;  %2556 = vmatprep.mubr.f32.mxu0 %v7273_v37  ;;  %v7310_v9 = vld [vmem:[#allocation54_spill] sm:$0xff]  ;;  %v7313_v36 = vld [vmem:[#allocation11_spill] sm:$0xff] }
 0x13a   : > { %4950 = vmatprep.subr.bf16.mxu1 %v4949_v10  ;;  %v1525_v63 = vadd.f32 %v5967_v20, %v1373_v45  ;;  %v1278_v33 = vmul.f32 %v7305_v32, %v5861_v57  ;;  %v4943_v53 = vpack.c.bf16 %v1651_v3, %v1619_v51  ;;  %v1436_v34 = vadd.f32 %v1308_v22, %v876_v1  ;;  %v7311_v45 = vld [vmem:[#allocation14_spill] sm:$0xff] }
 0x13b   : > { %v1621_v16 = vmax.f32 %v1493_v11, 0.0  ;;  %v1310_v31 = vmul.f32 %v7305_v32, %v5941_v4  ;;  %v1556_v38 = vadd.f32 %v5983_v2, %v1404_v61  ;;  %4811 = vmatmul.mubr.msk.f32.gmra.mrb[34].mxu1 %vm1755_vm7, %v6045_v52  ;;  %v843_v15 = vmul.f32 %v7306_v47, %v5943_v7  ;;  %v7316_v61 = vld [vmem:[#allocation13_spill] sm:$0xff] }
 0x13c   : > { %v1653_v60 = vmax.f32 %v1525_v63, 0.0  ;;  %v1406_v56 = vadd.f32 %v1278_v33, %v846_v18  ;;  %4944 = vmatpush1.bf16.msra.mxu0 %v4943_v53  ;;  %v1588_v0 = vadd.f32 %v5995_v26, %v1436_v34  ;;  %v875_v39 = vmul.f32 %v7306_v47, %v5897_v62  ;;  %2645 = vmatprep.mubr.f32.mxu1 %v7273_v37  ;;  %v7315_v18 = vld [vmem:[#allocation12_spill] sm:$0xff] }
 0x13d   : > { %v1438_v59 = vadd.f32 %v1310_v31, %v878_v24  ;;  %v1275_v32 = vmul.f32 %v7307_v19, %v5861_v57  ;;  %v1684_v8 = vmax.f32 %v1556_v38, 0.0  ;;  %v1307_v52 = vmul.f32 %v7307_v19, %v5941_v4  ;;  %4808 = vmatmul.mubr.msk.f32.gmra.mrb[36].mxu0 %vm1755_vm7, %v6082_v55  ;;  %v7317_v38 = vld [vmem:[#allocation9_spill] sm:$0xff] }
 0x13e   : > { %v4951_v48 = vpack.c.bf16 %v1653_v60, %v1621_v16  ;;  %v1558_v54 = vadd.f32 %v5983_v2, %v1406_v56  ;;  %v1716_v43 = vmax.f32 %v1588_v0, 0.0  ;;  %v845_v47 = vmul.f32 %v7308_v40, %v5943_v7  ;;  %2562 = vmatprep.mubr.f32.mxu0 %v7273_v37 }
 0x13f   : > { %v1590_v30 = vadd.f32 %v5995_v26, %v1438_v59  ;;  %v1403_v42 = vadd.f32 %v1275_v32, %v843_v15  ;;  %v1435_v6 = vadd.f32 %v1307_v52, %v875_v39  ;;  %v877_v19 = vmul.f32 %v7308_v40, %v5897_v62  ;;  %4812 = vmatmul.mubr.msk.f32.gmra.mrb[36].mxu1 %vm1755_vm7, %v6082_v55 }
 0x140   : > { %4952 = vmatpush1.bf16.msra.mxu1 %v4951_v48  ;;  %v1686_v28 = vmax.f32 %v1558_v54, 0.0  ;;  %v1277_v49 = vmul.f32 %v7309_v50, %v5861_v57  ;;  %v4945_v35 = vpack.c.bf16 %v1716_v43, %v1684_v8  ;;  %v1309_v5 = vmul.f32 %v7309_v50, %v5941_v4  ;;  %2651 = vmatprep.mubr.f32.mxu1 %v7273_v37  ;;  %v7312_v50 = vld [vmem:[#allocation36_spill] sm:$0xff] }
 0x141   : > { %v1718_v17 = vmax.f32 %v1590_v30, 0.0  ;;  %v1555_v12 = vadd.f32 %v5983_v2, %v1403_v42  ;;  %v1587_v58 = vadd.f32 %v5995_v26, %v1435_v6  ;;  %v784_v44 = vmul.f32 %v7310_v9, %v7275_v46  ;;  %4809 = vmatmul.mubr.msk.f32.gmra.mrb[38].mxu0 %vm1755_vm7, %v6104_v13 }
 0x142   : > { %v1405_v27 = vadd.f32 %v1277_v49, %v845_v47  ;;  %v816_v40 = vmul.f32 %v7310_v9, %v5915_v14  ;;  %4946 = vmatprep.subr.bf16.mxu0 %v4945_v35  ;;  %v1437_v51 = vadd.f32 %v1309_v5, %v877_v19  ;;  %v7314_v3 = vrot.slane %v7312_v50, %v7313_v36  ;;  %v7318_v19 = vld [vmem:[#allocation15_spill] sm:$0xff] }
 0x143   : > { %v4953_v1 = vpack.c.bf16 %v1718_v17, %v1686_v28  ;;  %v1683_v10 = vmax.f32 %v1555_v12, 0.0  ;;  %v1715_v11 = vmax.f32 %v1587_v58, 0.0  ;;  %v582_v63 = vrot.slane %v7312_v50, %v7315_v18  ;;  %2722 = vmatprep.mubr.f32.mxu0 %v7273_v37  ;;  %4813 = vmatmul.mubr.msk.f32.gmra.mrb[38].mxu1 %vm1755_vm7, %v6104_v13  ;;  %v6563_v12 = vld [vmem:[%s7148_s4] sm:$0xff] }
 0x144   : > { %v6520_v55 = vrot.slane %v7314_v3, %v7311_v45  ;;  %v1557_v22 = vadd.f32 %v5983_v2, %v1405_v27  ;;  %v1014_v24 = vrot.slane %v7312_v50, %v7316_v61  ;;  %v1589_v33 = vadd.f32 %v5995_v26, %v1437_v51  ;;  %2811 = vmatprep.mubr.f32.mxu1 %v7273_v37  ;;  %v7319_v51 = vld [vmem:[#allocation16_spill] sm:$0xff] }
 0x145   : > { %4954 = vmatprep.subr.bf16.mxu1 %v4953_v1  ;;  %v430_v34 = vsub.f32 0.0, %v6357_v41  ;;  %v4947_v31 = vpack.c.bf16 %v1715_v11, %v1683_v10  ;;  %v742_v56 = vrot.slane %v582_v63, %v7317_v38  ;;  %v570_v32 = vrot.slane %v7312_v50, %v7317_v38 }
 0x146   : > { %v1216_v53 = vmul.f32 %v6520_v55, %v7277_v29  ;;  %v1248_v16 = vmul.f32 %v6520_v55, %v7279_v21  ;;  %v1685_v60 = vmax.f32 %v1557_v22, 0.0  ;;  %v6540_v15 = vrot.slane %v1014_v24, %v7311_v45 }
 0x147   : > { %v1717_v0 = vmax.f32 %v1589_v33, 0.0  ;;  %4948 = vmatpush1.bf16.msra.mxu0 %v4947_v31  ;;  %v786_v13 = vmul.f32 %v742_v56, %v7275_v46  ;;  %v818_v48 = vmul.f32 %v742_v56, %v5915_v14  ;;  %v6554_v42 = vrot.slane %v570_v32, %v7317_v38 }
 0x148   : > { %v1344_v59 = vadd.f32 %v1216_v53, %v784_v44  ;;  %v1376_v39 = vadd.f32 %v1248_v16, %v816_v40  ;;  %v1218_v8 = vmul.f32 %v6540_v15, %v7277_v29  ;;  %v1250_v54 = vmul.f32 %v6540_v15, %v7279_v21 }
 0x149   : > { %v4955_v52 = vpack.c.bf16 %v1717_v0, %v1685_v60  ;;  %v1002_v6 = vrot.slane %v7312_v50, %v7311_v45  ;;  %v578_v49 = vrot.slane %v7312_v50, %v7318_v19  ;;  %v783_v5 = vmul.f32 %v6554_v42, %v7275_v46 }
 0x14a   : > { %v1496_v43 = vadd.f32 %v5969_v25, %v1344_v59  ;;  %v1528_v30 = vadd.f32 %v5967_v20, %v1376_v39  ;;  %v1346_v47 = vadd.f32 %v1218_v8, %v786_v13  ;;  %v1378_v28 = vadd.f32 %v1250_v54, %v818_v48  ;;  %4814 = vmatmul.mubr.msk.f32.vlgmr.msra.gmra.mrb[40].mxu0 %vm1755_vm7, %v6563_v12  ;;  %v6613_v54 = vld [vmem:[%s7148_s4 + $0x8] sm:$0xff] }
 0x14b   : > { %4956 = vmatpush1.bf16.msra.mxu1 %v4955_v52  ;;  %v815_v58 = vmul.f32 %v6554_v42, %v5915_v14  ;;  %v6574_v40 = vrot.slane %v1002_v6, %v7311_v45  ;;  %v6577_v1 = vrot.slane %v578_v49, %v7317_v38  ;;  %2728 = vmatprep.mubr.f32.mxu0 %v7273_v37 }
 0x14c   : > { %v1624_v35 = vmax.f32 %v1496_v43, 0.0  ;;  %v1656_v17 = vmax.f32 %v1528_v30, 0.0  ;;  %v1498_v27 = vadd.f32 %v5969_v25, %v1346_v47  ;;  %v1530_v44 = vadd.f32 %v5967_v20, %v1378_v28 }
 0x14d   : > { %v1010_v3 = vrot.slane %v7312_v50, %v7319_v51  ;;  %v848_v11 = vmul.f32 %v7310_v9, %v5943_v7  ;;  %v880_v22 = vmul.f32 %v7310_v9, %v5897_v62  ;;  %v1215_v33 = vmul.f32 %v6574_v40, %v7277_v29 }
 0x14e   : > { %v4957_v10 = vpack.c.bf16 %v1656_v17, %v1624_v35  ;;  %v1626_v63 = vmax.f32 %v1498_v27, 0.0  ;;  %v1658_v24 = vmax.f32 %v1530_v44, 0.0  ;;  %4818 = vmatmul.mubr.msk.f32.vlgmr.msra.gmra.mrb[40].mxu1 %vm1755_vm7, %v6563_v12  ;;  %v1247_v53 = vmul.f32 %v6574_v40, %v7279_v21  ;;  %4815 = vmatmul.mubr.msk.f32.gmra.mrb[42].mxu0 %vm1755_vm7, %v6613_v54 }
 0x14f   : > { %v785_v50 = vmul.f32 %v6577_v1, %v7275_v46  ;;  %v817_v16 = vmul.f32 %v6577_v1, %v5915_v14  ;;  %v6597_v9 = vrot.slane %v1010_v3, %v7311_v45  ;;  %v1280_v31 = vmul.f32 %v6520_v55, %v5861_v57  ;;  %2817 = vmatprep.mubr.f32.mxu1 %v7273_v37  ;;  %v6635_v3 = vld [vmem:[%s7148_s4 + $0x10] sm:$0xff] }
 0x150   : > { %4958 = vmatprep.subr.bf16.mxu0 %v4957_v10  ;;  %v4965_v60 = vpack.c.bf16 %v1658_v24, %v1626_v63  ;;  %v1343_v0 = vadd.f32 %v1215_v33, %v783_v5  ;;  %v1375_v59 = vadd.f32 %v1247_v53, %v815_v58  ;;  %v1312_v39 = vmul.f32 %v6520_v55, %v5941_v4 }
 0x151   : > { %v1217_v32 = vmul.f32 %v6597_v9, %v7277_v29  ;;  %v1249_v13 = vmul.f32 %v6597_v9, %v7279_v21  ;;  %v1408_v48 = vadd.f32 %v1280_v31, %v848_v11  ;;  %v850_v8 = vmul.f32 %v742_v56, %v5943_v7  ;;  %2734 = vmatprep.mubr.f32.mxu0 %v7273_v37 }
 0x152   : > { %4966 = vmatprep.subr.bf16.mxu1 %v4965_v60  ;;  %v1495_v55 = vadd.f32 %v5969_v25, %v1343_v0  ;;  %v1527_v52 = vadd.f32 %v5967_v20, %v1375_v59  ;;  %v1440_v43 = vadd.f32 %v1312_v39, %v880_v22  ;;  %v882_v30 = vmul.f32 %v742_v56, %v5897_v62 }
 0x153   : > { %v1345_v47 = vadd.f32 %v1217_v32, %v785_v50  ;;  %v1377_v28 = vadd.f32 %v1249_v13, %v817_v16  ;;  %v1560_v6 = vadd.f32 %v5983_v2, %v1408_v48  ;;  %v1282_v49 = vmul.f32 %v6540_v15, %v5861_v57  ;;  %4819 = vmatmul.mubr.msk.f32.gmra.mrb[42].mxu1 %vm1755_vm7, %v6613_v54 }
 0x154   : > { %v1623_v35 = vmax.f32 %v1495_v55, 0.0  ;;  %v1655_v17 = vmax.f32 %v1527_v52, 0.0  ;;  %v1592_v5 = vadd.f32 %v5995_v26, %v1440_v43  ;;  %v1314_v58 = vmul.f32 %v6540_v15, %v5941_v4  ;;  %2823 = vmatprep.mubr.f32.mxu1 %v7273_v37  ;;  %4816 = vmatmul.mubr.msk.f32.gmra.mrb[44].mxu0 %vm1755_vm7, %v6635_v3 }
 0x155   : > { %v1497_v56 = vadd.f32 %v5969_v25, %v1345_v47  ;;  %v1529_v27 = vadd.f32 %v5967_v20, %v1377_v28  ;;  %v1688_v44 = vmax.f32 %v1560_v6, 0.0  ;;  %v1410_v10 = vadd.f32 %v1282_v49, %v850_v8  ;;  %2740 = vmatprep.mubr.f32.mxu0 %v7273_v37  ;;  %v7320_v49 = vld [vmem:[#allocation10_spill] sm:$0xff] }
 0x156   : > { %v4959_v11 = vpack.c.bf16 %v1655_v17, %v1623_v35  ;;  %v1720_v15 = vmax.f32 %v1592_v5, 0.0  ;;  %v1442_v22 = vadd.f32 %v1314_v58, %v882_v30  ;;  %v847_v63 = vmul.f32 %v6554_v42, %v5943_v7 }
 0x157   : > { %v1625_v24 = vmax.f32 %v1497_v56, 0.0  ;;  %v1657_v33 = vmax.f32 %v1529_v27, 0.0  ;;  %v1562_v53 = vadd.f32 %v5983_v2, %v1410_v10  ;;  %v879_v50 = vmul.f32 %v6554_v42, %v5897_v62  ;;  %4820 = vmatmul.mubr.msk.f32.gmra.mrb[44].mxu1 %vm1755_vm7, %v6635_v3  ;;  %v6658_v42 = vld [vmem:[%s7148_s4 + $0x18] sm:$0xff] }
 0x158   : > { %4960 = vmatpush1.bf16.msra.mxu0 %v4959_v11  ;;  %v4961_v16 = vpack.c.bf16 %v1720_v15, %v1688_v44  ;;  %v1594_v31 = vadd.f32 %v5995_v26, %v1442_v22  ;;  %v1279_v60 = vmul.f32 %v6574_v40, %v5861_v57  ;;  %v1311_v0 = vmul.f32 %v6574_v40, %v5941_v4 }
 0x159   : > { %v4967_v59 = vpack.c.bf16 %v1657_v33, %v1625_v24  ;;  %v1690_v39 = vmax.f32 %v1562_v53, 0.0  ;;  %v849_v32 = vmul.f32 %v6577_v1, %v5943_v7  ;;  %2829 = vmatprep.mubr.f32.mxu1 %v7273_v37  ;;  %4817 = vmatmul.mubr.msk.f32.gmra.mrb[46].mxu0 %vm1755_vm7, %v6658_v42  ;;  %v1281_v40 = vmul.f32 %v6597_v9, %v5861_v57 }
 0x15a   : > { %4962 = vmatprep.subr.bf16.mxu0 %v4961_v16  ;;  %v1722_v13 = vmax.f32 %v1594_v31, 0.0  ;;  %v1407_v48 = vadd.f32 %v1279_v60, %v847_v63  ;;  %v1439_v8 = vadd.f32 %v1311_v0, %v879_v50  ;;  %2900 = vmatprep.mubr.f32.mxu0 %v7273_v37  ;;  %v881_v55 = vmul.f32 %v6577_v1, %v5897_v62 }
 0x15b   : > { %4968 = vmatpush1.bf16.msra.mxu1 %v4967_v59  ;;  %v1313_v52 = vmul.f32 %v6597_v9, %v5941_v4  ;;  %v6674_v43 = vsel %vm422_vm8, %v430_v34, %v6357_v41  ;;  %v1409_v6 = vadd.f32 %v1281_v40, %v849_v32 }
 0x15c   : > { %v4969_v30 = vpack.c.bf16 %v1722_v13, %v1690_v39  ;;  %v1559_v47 = vadd.f32 %v5983_v2, %v1407_v48  ;;  %v1591_v28 = vadd.f32 %v5995_v26, %v1439_v8  ;;  %4821 = vmatmul.mubr.msk.f32.gmra.mrb[46].mxu1 %vm1755_vm7, %v6658_v42  ;;  %v590_v9 = vrot.slane %v6674_v43, %v7320_v49 }
 0x15d   : > { %v1441_v1 = vadd.f32 %v1313_v52, %v881_v55  ;;  %v1022_v35 = vrot.slane %v6674_v43, %v7313_v36  ;;  %v598_v23 = vrot.slane %v6674_v43, %v7315_v18  ;;  %2989 = vmatprep.mubr.f32.mxu1 %v7273_v37  ;;  %v1561_v17 = vadd.f32 %v5983_v2, %v1409_v6 }
 0x15e   : > { %4970 = vmatprep.subr.bf16.mxu1 %v4969_v30  ;;  %v1687_v41 = vmax.f32 %v1559_v47, 0.0  ;;  %v1719_v34 = vmax.f32 %v1591_v28, 0.0  ;;  %v1030_v5 = vrot.slane %v6674_v43, %v7316_v61  ;;  %v750_v56 = vrot.slane %v590_v9, %v7317_v38 }
 0x15f   : > { %v1593_v58 = vadd.f32 %v5995_v26, %v1441_v1  ;;  %v1182_v27 = vrot.slane %v1022_v35, %v7311_v45  ;;  %v6694_v36 = vrot.slane %v598_v23, %v7317_v38  ;;  %v1689_v44 = vmax.f32 %v1561_v17, 0.0 }
 0x160   : > { %v4963_v18 = vpack.c.bf16 %v1719_v34, %v1687_v41  ;;  %v6697_v10 = vrot.slane %v1030_v5, %v7311_v45  ;;  %v586_v11 = vrot.slane %v6674_v43, %v7317_v38  ;;  %v788_v61 = vmul.f32 %v750_v56, %v7275_v46 }
 0x161   : > { %v1721_v15 = vmax.f32 %v1593_v58, 0.0  ;;  %v820_v22 = vmul.f32 %v750_v56, %v5915_v14  ;;  %v1220_v63 = vmul.f32 %v1182_v27, %v7277_v29  ;;  %v1252_v24 = vmul.f32 %v1182_v27, %v7279_v21 }
 0x162   : > { %4964 = vmatpush1.bf16.msra.mxu0 %v4963_v18  ;;  %v790_v33 = vmul.f32 %v6694_v36, %v7275_v46  ;;  %v822_v53 = vmul.f32 %v6694_v36, %v5915_v14  ;;  %v1222_v50 = vmul.f32 %v6697_v10, %v7277_v29  ;;  %v1254_v60 = vmul.f32 %v6697_v10, %v7279_v21 }
 0x163   : > { %v4971_v16 = vpack.c.bf16 %v1721_v15, %v1689_v44  ;;  %v1348_v31 = vadd.f32 %v1220_v63, %v788_v61  ;;  %v6714_v0 = vrot.slane %v586_v11, %v7317_v38  ;;  %v1380_v59 = vadd.f32 %v1252_v24, %v820_v22 }
 0x164   : > { %v1350_v39 = vadd.f32 %v1222_v50, %v790_v33  ;;  %v1018_v32 = vrot.slane %v6674_v43, %v7311_v45  ;;  %v594_v13 = vrot.slane %v6674_v43, %v7318_v19  ;;  %v1382_v8 = vadd.f32 %v1254_v60, %v822_v53 }
 0x165   : > { %4972 = vmatpush1.bf16.msra.mxu1 %v4971_v16  ;;  %v1500_v48 = vadd.f32 %v5969_v25, %v1348_v31  ;;  %4822 = vmatmul.mubr.msk.f32.vlgmr.msra.gmra.mrb[48].mxu0 %vm1755_vm7, %v6563_v12  ;;  %v787_v40 = vmul.f32 %v6714_v0, %v7275_v46  ;;  %v1532_v55 = vadd.f32 %v5967_v20, %v1380_v59 }
 0x166   : > { %v1502_v52 = vadd.f32 %v5969_v25, %v1350_v39  ;;  %v819_v30 = vmul.f32 %v6714_v0, %v5915_v14  ;;  %v6730_v47 = vrot.slane %v1018_v32, %v7311_v45  ;;  %2906 = vmatprep.mubr.f32.mxu0 %v7273_v37  ;;  %v1534_v28 = vadd.f32 %v5967_v20, %v1382_v8 }
 0x167   : > { %v1628_v19 = vmax.f32 %v1500_v48, 0.0  ;;  %v6735_v6 = vrot.slane %v594_v13, %v7317_v38  ;;  %v1026_v1 = vrot.slane %v6674_v43, %v7319_v51  ;;  %v1660_v49 = vmax.f32 %v1532_v55, 0.0 }
 0x168   : > { %v1630_v9 = vmax.f32 %v1502_v52, 0.0  ;;  %4826 = vmatmul.mubr.msk.f32.vlgmr.msra.gmra.mrb[48].mxu1 %vm1755_vm7, %v6563_v12  ;;  %v1219_v35 = vmul.f32 %v6730_v47, %v7277_v29  ;;  %v1251_v23 = vmul.f32 %v6730_v47, %v7279_v21  ;;  %v1662_v41 = vmax.f32 %v1534_v28, 0.0 }
 0x169   : > { %v789_v34 = vmul.f32 %v6735_v6, %v7275_v46  ;;  %v821_v38 = vmul.f32 %v6735_v6, %v5915_v14  ;;  %v6750_v51 = vrot.slane %v1026_v1, %v7311_v45  ;;  %2995 = vmatprep.mubr.f32.mxu1 %v7273_v37  ;;  %4823 = vmatmul.mubr.msk.f32.gmra.mrb[50].mxu0 %vm1755_vm7, %v6613_v54 }
 0x16a   : > { %v4973_v43 = vpack.c.bf16 %v1660_v49, %v1628_v19  ;;  %v1347_v17 = vadd.f32 %v1219_v35, %v787_v40  ;;  %v1379_v5 = vadd.f32 %v1251_v23, %v819_v30  ;;  %v852_v58 = vmul.f32 %v750_v56, %v5943_v7  ;;  %2912 = vmatprep.mubr.f32.mxu0 %v7273_v37 }
 0x16b   : > { %v4981_v18 = vpack.c.bf16 %v1662_v41, %v1630_v9  ;;  %v1221_v46 = vmul.f32 %v6750_v51, %v7277_v29  ;;  %v1253_v14 = vmul.f32 %v6750_v51, %v7279_v21  ;;  %v884_v45 = vmul.f32 %v750_v56, %v5897_v62 }
 0x16c   : > { %4974 = vmatprep.subr.bf16.mxu0 %v4973_v43  ;;  %v1499_v44 = vadd.f32 %v5969_v25, %v1347_v17  ;;  %v1531_v11 = vadd.f32 %v5967_v20, %v1379_v5  ;;  %v1284_v15 = vmul.f32 %v1182_v27, %v5861_v57  ;;  %v1316_v61 = vmul.f32 %v1182_v27, %v5941_v4 }
 0x16d   : > { %4982 = vmatprep.subr.bf16.mxu1 %v4981_v18  ;;  %v1349_v22 = vadd.f32 %v1221_v46, %v789_v34  ;;  %v1381_v63 = vadd.f32 %v1253_v14, %v821_v38  ;;  %v854_v29 = vmul.f32 %v6694_v36, %v5943_v7  ;;  %v886_v21 = vmul.f32 %v6694_v36, %v5897_v62  ;;  %v6839_v46 = vpop.permute.xlu0 %1737  ;;  %v6841_v14 = vpop.permute.xlu1 %1742 }
 0x16e   : > { %v1627_v24 = vmax.f32 %v1499_v44, 0.0  ;;  %v1659_v56 = vmax.f32 %v1531_v11, 0.0  ;;  %v1412_v33 = vadd.f32 %v1284_v15, %v852_v58  ;;  %v1444_v53 = vadd.f32 %v1316_v61, %v884_v45  ;;  %4827 = vmatmul.mubr.msk.f32.gmra.mrb[50].mxu1 %vm1755_vm7, %v6613_v54  ;;  %4824 = vmatmul.mubr.msk.f32.gmra.mrb[52].mxu0 %vm1755_vm7, %v6635_v3 }
 0x16f   : > { %v1501_v27 = vadd.f32 %v5969_v25, %v1349_v22  ;;  %v1533_v50 = vadd.f32 %v5967_v20, %v1381_v63  ;;  %v1286_v16 = vmul.f32 %v6697_v10, %v5861_v57  ;;  %v1318_v36 = vmul.f32 %v6697_v10, %v5941_v4  ;;  %3001 = vmatprep.mubr.f32.mxu1 %v7273_v37 }
 0x170   : > { %v4975_v31 = vpack.c.bf16 %v1659_v56, %v1627_v24  ;;  %v1564_v60 = vadd.f32 %v5983_v2, %v1412_v33  ;;  %v1596_v59 = vadd.f32 %v5995_v26, %v1444_v53  ;;  %v851_v39 = vmul.f32 %v6714_v0, %v5943_v7  ;;  %2918 = vmatprep.mubr.f32.mxu0 %v7273_v37 }
 0x171   : > { %v1629_v25 = vmax.f32 %v1501_v27, 0.0  ;;  %v1661_v20 = vmax.f32 %v1533_v50, 0.0  ;;  %v1414_v32 = vadd.f32 %v1286_v16, %v854_v29  ;;  %v1446_v13 = vadd.f32 %v1318_v36, %v886_v21 }
 0x172   : > { %4976 = vmatpush1.bf16.msra.mxu0 %v4975_v31  ;;  %v1692_v48 = vmax.f32 %v1564_v60, 0.0  ;;  %v1724_v8 = vmax.f32 %v1596_v59, 0.0  ;;  %v883_v10 = vmul.f32 %v6714_v0, %v5897_v62  ;;  %v1283_v40 = vmul.f32 %v6730_v47, %v5861_v57  ;;  %4828 = vmatmul.mubr.msk.f32.gmra.mrb[52].mxu1 %vm1755_vm7, %v6635_v3 }
 0x173   : > { %v4983_v55 = vpack.c.bf16 %v1661_v20, %v1629_v25  ;;  %v1566_v52 = vadd.f32 %v5983_v2, %v1414_v32  ;;  %v1598_v30 = vadd.f32 %v5995_v26, %v1446_v13  ;;  %v1315_v19 = vmul.f32 %v6730_v47, %v5941_v4  ;;  %3007 = vmatprep.mubr.f32.mxu1 %v7273_v37 }
 0x174   : > { %v4977_v28 = vpack.c.bf16 %v1724_v8, %v1692_v48  ;;  %v1411_v1 = vadd.f32 %v1283_v40, %v851_v39  ;;  %v853_v0 = vmul.f32 %v6735_v6, %v5943_v7  ;;  %4825 = vmatmul.mubr.msk.f32.gmra.mrb[54].mxu0 %vm1755_vm7, %v6658_v42  ;;  %v1285_v23 = vmul.f32 %v6750_v51, %v5861_v57  ;;  %v6851_v8 = vpop.permute.xlu0 %1747  ;;  %v6854_v40 = vpop.permute.xlu1 %1752 }
 0x175   : > { %4984 = vmatpush1.bf16.msra.mxu1 %v4983_v55  ;;  %v1694_v49 = vmax.f32 %v1566_v52, 0.0  ;;  %v1726_v9 = vmax.f32 %v1598_v30, 0.0  ;;  %v1443_v35 = vadd.f32 %v1315_v19, %v883_v10  ;;  %3078 = vmatprep.mubr.f32.mxu0 %v7273_v37  ;;  %v885_v41 = vmul.f32 %v6735_v6, %v5897_v62 }
 0x176   : > { %4978 = vmatprep.subr.bf16.mxu0 %v4977_v28  ;;  %v1563_v47 = vadd.f32 %v5983_v2, %v1411_v1  ;;  %v1317_v7 = vmul.f32 %v6750_v51, %v5941_v4  ;;  %4829 = vmatmul.mubr.msk.f32.gmra.mrb[54].mxu1 %vm1755_vm7, %v6658_v42  ;;  %v1413_v43 = vadd.f32 %v1285_v23, %v853_v0 }
 0x177   : > { %v4985_v34 = vpack.c.bf16 %v1726_v9, %v1694_v49  ;;  %v1595_v38 = vadd.f32 %v5995_v26, %v1443_v35  ;;  %3167 = vmatprep.mubr.f32.mxu1 %v7273_v37 }
 0x178   : > { %v1445_v57 = vadd.f32 %v1317_v7, %v885_v41  ;;  %v1691_v17 = vmax.f32 %v1563_v47, 0.0  ;;  %v1565_v58 = vadd.f32 %v5983_v2, %v1413_v43 }
 0x179   : > { %4986 = vmatprep.subr.bf16.mxu1 %v4985_v34  ;;  %v1723_v5 = vmax.f32 %v1595_v38, 0.0 }
 0x17a   : > { %v1597_v62 = vadd.f32 %v5995_v26, %v1445_v57  ;;  %v1693_v18 = vmax.f32 %v1565_v58, 0.0 }
 0x17b   : > { %v4979_v6 = vpack.c.bf16 %v1723_v5, %v1691_v17 }
 0x17c   : > { %v1725_v4 = vmax.f32 %v1597_v62, 0.0 }
 0x17d   : > { %4980 = vmatpush1.bf16.msra.mxu0 %v4979_v6 }
 0x17e   : > { %v4987_v51 = vpack.c.bf16 %v1725_v4, %v1693_v18 }
 0x180   : > { %4988 = vmatpush1.bf16.msra.mxu1 %v4987_v51  ;;  %4830 = vmatmul.mubr.msk.f32.vlgmr.msra.gmra.mrb[56].mxu0 %vm1755_vm7, %v6563_v12 }
 0x181   : > { %3084 = vmatprep.mubr.f32.mxu0 %v7273_v37 }
 0x183   : > { %4834 = vmatmul.mubr.msk.f32.vlgmr.msra.gmra.mrb[56].mxu1 %vm1755_vm7, %v6563_v12 }
 0x184   : > { %3173 = vmatprep.mubr.f32.mxu1 %v7273_v37  ;;  %4831 = vmatmul.mubr.msk.f32.gmra.mrb[58].mxu0 %vm1755_vm7, %v6613_v54 }
 0x185   : > { %3090 = vmatprep.mubr.f32.mxu0 %v7273_v37 }
 0x187   : > { %4835 = vmatmul.mubr.msk.f32.gmra.mrb[58].mxu1 %vm1755_vm7, %v6613_v54 }
 0x188   : > { %3179 = vmatprep.mubr.f32.mxu1 %v7273_v37  ;;  %4832 = vmatmul.mubr.msk.f32.gmra.mrb[60].mxu0 %vm1755_vm7, %v6635_v3 }
 0x189   : > { %3096 = vmatprep.mubr.f32.mxu0 %v7273_v37 }
 0x18b   : > { %4836 = vmatmul.mubr.msk.f32.gmra.mrb[60].mxu1 %vm1755_vm7, %v6635_v3 }
 0x18c   : > { %3185 = vmatprep.mubr.f32.mxu1 %v7273_v37  ;;  %4833 = vmatmul.mubr.msk.f32.gmra.mrb[62].mxu0 %vm1755_vm7, %v6658_v42 }
 0x18d   : > { %3394 = vmatprep.mubr.f32.mxu0 %v7273_v37 }
 0x18f   : > { %4837 = vmatmul.mubr.msk.f32.gmra.mrb[62].mxu1 %vm1755_vm7, %v6658_v42 }
 0x190   : > { %3465 = vmatprep.mubr.f32.mxu1 %v7273_v37 }
 0x1b6   : > { %v1834_v2 = vpop.f32.mrb[0].mxu0  ;;  %v1923_v26 = vpop.f32.mrb[0].mxu1 }
 0x1b7   : > { %v1836_v12 = vpop.f32.mrb[1].mxu0  ;;  %v1925_v54 = vpop.f32.mrb[1].mxu1  ;;  %v1835_v3 = vadd.f32 %v1834_v2, %v6839_v46  ;;  %v1924_v45 = vadd.f32 %v1923_v26, %v6839_v46 }
 0x1b8   : > { %v1837_v44 = vadd.f32 %v1836_v12, %v6839_v46  ;;  %v1926_v11 = vadd.f32 %v1925_v54, %v6839_v46 }
 0x1b9   : > { %v3192_v56 = vmax.f32 %v1835_v3, 0.0  ;;  %v3194_v33 = vmax.f32 %v1924_v45, 0.0 }
 0x1ba   : > { %v1840_v15 = vpop.f32.mrb[2].mxu0  ;;  %v1929_v42 = vpop.f32.mrb[2].mxu1  ;;  %v3193_v50 = vmax.f32 %v1837_v44, 0.0  ;;  %v3195_v16 = vmax.f32 %v1926_v11, 0.0 }
 0x1bb   : > { %v1841_v61 = vadd.f32 %v1840_v15, %v6841_v14  ;;  %v1930_v22 = vadd.f32 %v1929_v42, %v6841_v14  ;;  %v1842_v63 = vpop.f32.mrb[3].mxu0  ;;  %v1931_v29 = vpop.f32.mrb[3].mxu1  ;;  %v6871_v42 = vld [vmem:[%s7150_s6] sm:$0x3] }
 0x1bc   : > { %v1843_v21 = vadd.f32 %v1842_v63, %v6841_v14  ;;  %v1932_v24 = vadd.f32 %v1931_v29, %v6841_v14 }
 0x1bd   : > { %v3224_v53 = vmax.f32 %v1841_v61, 0.0  ;;  %v3226_v27 = vmax.f32 %v1930_v22, 0.0 }
 0x1be   : > { %v3225_v36 = vmax.f32 %v1843_v21, 0.0  ;;  %v3227_v31 = vmax.f32 %v1932_v24, 0.0 }
 0x1bf   : > { %v4991_v60 = vpack.c.bf16 %v3224_v53, %v3192_v56  ;;  %v4999_v59 = vpack.c.bf16 %v3226_v27, %v3194_v33  ;;  %v1846_v39 = vpop.f32.mrb[4].mxu0  ;;  %v1935_v25 = vpop.f32.mrb[4].mxu1 }
 0x1c0   : > { %v4989_v20 = vpack.c.bf16 %v3225_v36, %v3193_v50  ;;  %v4997_v32 = vpack.c.bf16 %v3227_v31, %v3195_v16  ;;  %v1848_v13 = vpop.f32.mrb[5].mxu0  ;;  %v1937_v48 = vpop.f32.mrb[5].mxu1  ;;  %v1847_v10 = vadd.f32 %v1846_v39, %v6851_v8  ;;  %v1936_v55 = vadd.f32 %v1935_v25, %v6851_v8 }
 0x1c1   : > { %v1849_v52 = vadd.f32 %v1848_v13, %v6851_v8  ;;  %v1938_v19 = vadd.f32 %v1937_v48, %v6851_v8 }
 0x1c2   : > { %4990 = vmatprep.subr.bf16.mxu0 %v4989_v20  ;;  %4998 = vmatprep.subr.bf16.mxu1 %v4997_v32  ;;  %v3256_v23 = vmax.f32 %v1847_v10, 0.0  ;;  %v3258_v7 = vmax.f32 %v1936_v55, 0.0 }
 0x1c3   : > { %v1852_v30 = vpop.f32.mrb[6].mxu0  ;;  %4992 = vmatpush1.bf16.msra.mxu0 %v4991_v60  ;;  %5000 = vmatpush1.bf16.msra.mxu1 %v4999_v59  ;;  %v1941_v1 = vpop.f32.mrb[6].mxu1  ;;  %v3257_v34 = vmax.f32 %v1849_v52, 0.0  ;;  %v3259_v17 = vmax.f32 %v1938_v19, 0.0 }
 0x1c4   : > { %v1853_v28 = vadd.f32 %v1852_v30, %v6854_v40  ;;  %v1854_v0 = vpop.f32.mrb[7].mxu0  ;;  %v1942_v49 = vadd.f32 %v1941_v1, %v6854_v40  ;;  %v1943_v35 = vpop.f32.mrb[7].mxu1 }
 0x1c5   : > { %v1855_v9 = vadd.f32 %v1854_v0, %v6854_v40  ;;  %v1944_v41 = vadd.f32 %v1943_v35, %v6854_v40 }
 0x1c6   : > { %v3288_v47 = vmax.f32 %v1853_v28, 0.0  ;;  %v3290_v38 = vmax.f32 %v1942_v49, 0.0 }
 0x1c7   : > { %v3289_v43 = vmax.f32 %v1855_v9, 0.0  ;;  %v2012_v57 = vpop.f32.mrb[8].mxu0  ;;  %v3291_v58 = vmax.f32 %v1944_v41, 0.0 }
 0x1c8   : > { %v4995_v5 = vpack.c.bf16 %v3288_v47, %v3256_v23  ;;  %v2101_v62 = vpop.f32.mrb[8].mxu1  ;;  %v2014_v6 = vpop.f32.mrb[9].mxu0  ;;  %v5003_v18 = vpack.c.bf16 %v3290_v38, %v3258_v7  ;;  %v2013_v26 = vadd.f32 %v2012_v57, %v6839_v46 }
 0x1c9   : > { %v4993_v4 = vpack.c.bf16 %v3289_v43, %v3257_v34  ;;  %v2103_v51 = vpop.f32.mrb[9].mxu1  ;;  %v5001_v2 = vpack.c.bf16 %v3291_v58, %v3259_v17  ;;  %v2102_v12 = vadd.f32 %v2101_v62, %v6839_v46  ;;  %v2015_v54 = vadd.f32 %v2014_v6, %v6839_v46 }
 0x1ca   : > { %v2104_v45 = vadd.f32 %v2103_v51, %v6839_v46  ;;  %v3196_v29 = vmax.f32 %v2013_v26, 0.0 }
 0x1cb   : > { %v2018_v3 = vpop.f32.mrb[10].mxu0  ;;  %4994 = vmatprep.subr.bf16.mxu0 %v4993_v4  ;;  %5002 = vmatprep.subr.bf16.mxu1 %v5001_v2  ;;  %v3198_v56 = vmax.f32 %v2102_v12, 0.0  ;;  %v3197_v33 = vmax.f32 %v2015_v54, 0.0 }
 0x1cc   : > { %v2019_v44 = vadd.f32 %v2018_v3, %v6841_v14  ;;  %v2107_v11 = vpop.f32.mrb[10].mxu1  ;;  %v2020_v15 = vpop.f32.mrb[11].mxu0  ;;  %4996 = vmatpush1.bf16.msra.mxu0 %v4995_v5  ;;  %5004 = vmatpush1.bf16.msra.mxu1 %v5003_v18  ;;  %v3199_v50 = vmax.f32 %v2104_v45, 0.0 }
 0x1cd   : > { %v2108_v61 = vadd.f32 %v2107_v11, %v6841_v14  ;;  %v2021_v22 = vadd.f32 %v2020_v15, %v6841_v14  ;;  %v2109_v63 = vpop.f32.mrb[11].mxu1 }
 0x1ce   : > { %v3228_v21 = vmax.f32 %v2019_v44, 0.0  ;;  %v2110_v24 = vadd.f32 %v2109_v63, %v6841_v14 }
 0x1cf   : > { %v3230_v53 = vmax.f32 %v2108_v61, 0.0  ;;  %v3229_v27 = vmax.f32 %v2021_v22, 0.0  ;;  %4838 = vmatmul.mubr.msk.f32.vlgmr.msra.gmra.mrb[64].mxu0 %vm1755_vm7, %v6871_v42  ;;  %v2024_v31 = vpop.f32.mrb[12].mxu0  ;;  %4839 = vmatmul.mubr.msk.f32.vlgmr.msra.gmra.mrb[64].mxu1 %vm1755_vm7, %v6871_v42 }
 0x1d0   : > { %v5007_v16 = vpack.c.bf16 %v3228_v21, %v3196_v29  ;;  %v3231_v36 = vmax.f32 %v2110_v24, 0.0  ;;  %3536 = vmatprep.mubr.f32.mxu0 %v7273_v37  ;;  %v2026_v25 = vpop.f32.mrb[13].mxu0  ;;  %3607 = vmatprep.mubr.f32.mxu1 %v7273_v37  ;;  %v2025_v13 = vadd.f32 %v2024_v31, %v6851_v8 }
 0x1d1   : > { %v2113_v60 = vpop.f32.mrb[12].mxu1  ;;  %v5015_v59 = vpack.c.bf16 %v3230_v53, %v3198_v56  ;;  %v5005_v39 = vpack.c.bf16 %v3229_v27, %v3197_v33  ;;  %v2027_v10 = vadd.f32 %v2026_v25, %v6851_v8 }
 0x1d2   : > { %v2115_v20 = vpop.f32.mrb[13].mxu1  ;;  %v5013_v32 = vpack.c.bf16 %v3231_v36, %v3199_v50  ;;  %v2114_v48 = vadd.f32 %v2113_v60, %v6851_v8  ;;  %v3260_v35 = vmax.f32 %v2025_v13, 0.0 }
 0x1d3   : > { %5006 = vmatprep.subr.bf16.mxu0 %v5005_v39  ;;  %v2116_v55 = vadd.f32 %v2115_v20, %v6851_v8  ;;  %v2030_v52 = vpop.f32.mrb[14].mxu0  ;;  %v3261_v7 = vmax.f32 %v2027_v10, 0.0 }
 0x1d4   : > { %5014 = vmatprep.subr.bf16.mxu1 %v5013_v32  ;;  %5008 = vmatpush1.bf16.msra.mxu0 %v5007_v16  ;;  %v2031_v19 = vadd.f32 %v2030_v52, %v6854_v40  ;;  %v2032_v1 = vpop.f32.mrb[15].mxu0  ;;  %v3262_v23 = vmax.f32 %v2114_v48, 0.0 }
 0x1d5   : > { %v2119_v30 = vpop.f32.mrb[14].mxu1  ;;  %5016 = vmatpush1.bf16.msra.mxu1 %v5015_v59  ;;  %v2033_v49 = vadd.f32 %v2032_v1, %v6854_v40  ;;  %v3263_v34 = vmax.f32 %v2116_v55, 0.0 }
 0x1d6   : > { %v2120_v28 = vadd.f32 %v2119_v30, %v6854_v40  ;;  %v2121_v0 = vpop.f32.mrb[15].mxu1  ;;  %v3292_v47 = vmax.f32 %v2031_v19, 0.0 }
 0x1d7   : > { %v2122_v9 = vadd.f32 %v2121_v0, %v6854_v40  ;;  %v3293_v38 = vmax.f32 %v2033_v49, 0.0 }
 0x1d8   : > { %v3294_v41 = vmax.f32 %v2120_v28, 0.0  ;;  %v5011_v57 = vpack.c.bf16 %v3292_v47, %v3260_v35 }
 0x1d9   : > { %v3295_v43 = vmax.f32 %v2122_v9, 0.0  ;;  %v5009_v58 = vpack.c.bf16 %v3293_v38, %v3261_v7 }
 0x1da   : > { %v5019_v17 = vpack.c.bf16 %v3294_v41, %v3262_v23  ;;  %v2190_v5 = vpop.f32.mrb[16].mxu0 }
 0x1db   : > { %v5017_v62 = vpack.c.bf16 %v3295_v43, %v3263_v34  ;;  %v2192_v6 = vpop.f32.mrb[17].mxu0  ;;  %v2191_v18 = vadd.f32 %v2190_v5, %v6839_v46  ;;  %5010 = vmatprep.subr.bf16.mxu0 %v5009_v58 }
 0x1dc   : > { %v2193_v51 = vadd.f32 %v2192_v6, %v6839_v46  ;;  %5012 = vmatpush1.bf16.msra.mxu0 %v5011_v57 }
 0x1dd   : > { %5018 = vmatprep.subr.bf16.mxu1 %v5017_v62  ;;  %v3200_v44 = vmax.f32 %v2191_v18, 0.0 }
 0x1de   : > { %v2279_v4 = vpop.f32.mrb[16].mxu1  ;;  %v2196_v26 = vpop.f32.mrb[18].mxu0  ;;  %5020 = vmatpush1.bf16.msra.mxu1 %v5019_v17  ;;  %v3201_v22 = vmax.f32 %v2193_v51, 0.0 }
 0x1df   : > { %v2281_v2 = vpop.f32.mrb[17].mxu1  ;;  %v2197_v12 = vadd.f32 %v2196_v26, %v6841_v14  ;;  %v2198_v54 = vpop.f32.mrb[19].mxu0  ;;  %v2280_v3 = vadd.f32 %v2279_v4, %v6839_v46  ;;  %4840 = vmatmul.mubr.msk.f32.vlgmr.msra.gmra.mrb[66].mxu0 %vm1755_vm7, %v6871_v42 }
 0x1e0   : > { %v2199_v45 = vadd.f32 %v2198_v54, %v6841_v14  ;;  %v2282_v11 = vadd.f32 %v2281_v2, %v6839_v46  ;;  %3678 = vmatprep.mubr.f32.mxu0 %v7273_v37 }
 0x1e1   : > { %v3232_v15 = vmax.f32 %v2197_v12, 0.0  ;;  %4841 = vmatmul.mubr.msk.f32.vlgmr.msra.gmra.mrb[66].mxu1 %vm1755_vm7, %v6871_v42  ;;  %v3202_v53 = vmax.f32 %v2280_v3, 0.0 }
 0x1e2   : > { %v2285_v61 = vpop.f32.mrb[18].mxu1  ;;  %v3233_v29 = vmax.f32 %v2199_v45, 0.0  ;;  %3749 = vmatprep.mubr.f32.mxu1 %v7273_v37  ;;  %v3203_v36 = vmax.f32 %v2282_v11, 0.0 }
 0x1e3   : > { %v2286_v63 = vadd.f32 %v2285_v61, %v6841_v14  ;;  %v2287_v21 = vpop.f32.mrb[19].mxu1  ;;  %v5023_v24 = vpack.c.bf16 %v3232_v15, %v3200_v44  ;;  %v2202_v33 = vpop.f32.mrb[20].mxu0 }
 0x1e4   : > { %v2288_v56 = vadd.f32 %v2287_v21, %v6841_v14  ;;  %v5021_v50 = vpack.c.bf16 %v3233_v29, %v3201_v22  ;;  %v2204_v16 = vpop.f32.mrb[21].mxu0  ;;  %v2203_v39 = vadd.f32 %v2202_v33, %v6851_v8 }
 0x1e5   : > { %v3234_v27 = vmax.f32 %v2286_v63, 0.0  ;;  %v2205_v32 = vadd.f32 %v2204_v16, %v6851_v8 }
 0x1e6   : > { %v3235_v31 = vmax.f32 %v2288_v56, 0.0  ;;  %v2291_v60 = vpop.f32.mrb[20].mxu1  ;;  %5022 = vmatprep.subr.bf16.mxu0 %v5021_v50  ;;  %v3264_v28 = vmax.f32 %v2203_v39, 0.0 }
 0x1e7   : > { %v5031_v59 = vpack.c.bf16 %v3234_v27, %v3202_v53  ;;  %v2293_v25 = vpop.f32.mrb[21].mxu1  ;;  %5024 = vmatpush1.bf16.msra.mxu0 %v5023_v24  ;;  %v2292_v48 = vadd.f32 %v2291_v60, %v6851_v8  ;;  %v3265_v9 = vmax.f32 %v2205_v32, 0.0 }
 0x1e8   : > { %v5029_v20 = vpack.c.bf16 %v3235_v31, %v3203_v36  ;;  %v2208_v13 = vpop.f32.mrb[22].mxu0  ;;  %v2294_v52 = vadd.f32 %v2293_v25, %v6851_v8 }
 0x1e9   : > { %v2209_v10 = vadd.f32 %v2208_v13, %v6854_v40  ;;  %v2210_v55 = vpop.f32.mrb[23].mxu0  ;;  %v3266_v47 = vmax.f32 %v2292_v48, 0.0 }
 0x1ea   : > { %v2297_v30 = vpop.f32.mrb[22].mxu1  ;;  %5030 = vmatprep.subr.bf16.mxu1 %v5029_v20  ;;  %v2211_v19 = vadd.f32 %v2210_v55, %v6854_v40  ;;  %v3267_v34 = vmax.f32 %v2294_v52, 0.0 }
 0x1eb   : > { %v3296_v1 = vmax.f32 %v2209_v10, 0.0  ;;  %v2298_v0 = vadd.f32 %v2297_v30, %v6854_v40  ;;  %v2299_v49 = vpop.f32.mrb[23].mxu1  ;;  %5032 = vmatpush1.bf16.msra.mxu1 %v5031_v59 }
 0x1ec   : > { %v3297_v35 = vmax.f32 %v2211_v19, 0.0  ;;  %v2300_v23 = vadd.f32 %v2299_v49, %v6854_v40 }
 0x1ed   : > { %v5027_v41 = vpack.c.bf16 %v3296_v1, %v3264_v28  ;;  %v3298_v7 = vmax.f32 %v2298_v0, 0.0 }
 0x1ee   : > { %v5025_v38 = vpack.c.bf16 %v3297_v35, %v3265_v9  ;;  %v3299_v43 = vmax.f32 %v2300_v23, 0.0 }
 0x1ef   : > { %v5035_v57 = vpack.c.bf16 %v3298_v7, %v3266_v47 }
 0x1f0   : > { %v5033_v17 = vpack.c.bf16 %v3299_v43, %v3267_v34  ;;  %5026 = vmatprep.subr.bf16.mxu0 %v5025_v38 }
 0x1f1   : > { %v2368_v5 = vpop.f32.mrb[24].mxu0  ;;  %5028 = vmatpush1.bf16.msra.mxu0 %v5027_v41 }
 0x1f2   : > { %v2370_v58 = vpop.f32.mrb[25].mxu0  ;;  %5034 = vmatprep.subr.bf16.mxu1 %v5033_v17  ;;  %v2369_v62 = vadd.f32 %v2368_v5, %v6839_v46 }
 0x1f3   : > { %5036 = vmatpush1.bf16.msra.mxu1 %v5035_v57  ;;  %v2457_v6 = vpop.f32.mrb[24].mxu1  ;;  %v2371_v18 = vadd.f32 %v2370_v58, %v6839_v46 }
 0x1f4   : > { %4842 = vmatmul.mubr.msk.f32.vlgmr.msra.gmra.mrb[68].mxu0 %vm1755_vm7, %v6871_v42  ;;  %v2459_v4 = vpop.f32.mrb[25].mxu1  ;;  %v2458_v12 = vadd.f32 %v2457_v6, %v6839_v46  ;;  %v3204_v3 = vmax.f32 %v2369_v62, 0.0 }
 0x1f5   : > { %v2374_v51 = vpop.f32.mrb[26].mxu0  ;;  %3820 = vmatprep.mubr.f32.mxu0 %v7273_v37  ;;  %v2460_v45 = vadd.f32 %v2459_v4, %v6839_v46  ;;  %v3205_v15 = vmax.f32 %v2371_v18, 0.0 }
 0x1f6   : > { %v2375_v2 = vadd.f32 %v2374_v51, %v6841_v14  ;;  %v2376_v26 = vpop.f32.mrb[27].mxu0  ;;  %4843 = vmatmul.mubr.msk.f32.vlgmr.msra.gmra.mrb[68].mxu1 %vm1755_vm7, %v6871_v42  ;;  %v3206_v33 = vmax.f32 %v2458_v12, 0.0 }
 0x1f7   : > { %v2377_v54 = vadd.f32 %v2376_v26, %v6841_v14  ;;  %3891 = vmatprep.mubr.f32.mxu1 %v7273_v37  ;;  %v2463_v11 = vpop.f32.mrb[26].mxu1  ;;  %v3207_v50 = vmax.f32 %v2460_v45, 0.0 }
 0x1f8   : > { %v3236_v44 = vmax.f32 %v2375_v2, 0.0  ;;  %v2464_v61 = vadd.f32 %v2463_v11, %v6841_v14  ;;  %v2465_v63 = vpop.f32.mrb[27].mxu1 }
 0x1f9   : > { %v3237_v22 = vmax.f32 %v2377_v54, 0.0  ;;  %v2380_v29 = vpop.f32.mrb[28].mxu0  ;;  %v2466_v24 = vadd.f32 %v2465_v63, %v6841_v14 }
 0x1fa   : > { %v5039_v21 = vpack.c.bf16 %v3236_v44, %v3204_v3  ;;  %v2382_v56 = vpop.f32.mrb[29].mxu0  ;;  %v3238_v53 = vmax.f32 %v2464_v61, 0.0  ;;  %v2381_v60 = vadd.f32 %v2380_v29, %v6851_v8 }
 0x1fb   : > { %v5037_v27 = vpack.c.bf16 %v3237_v22, %v3205_v15  ;;  %v3239_v16 = vmax.f32 %v2466_v24, 0.0  ;;  %v2469_v36 = vpop.f32.mrb[28].mxu1  ;;  %v2383_v25 = vadd.f32 %v2382_v56, %v6851_v8 }
 0x1fc   : > { %v5047_v31 = vpack.c.bf16 %v3238_v53, %v3206_v33  ;;  %v2471_v59 = vpop.f32.mrb[29].mxu1  ;;  %v2470_v32 = vadd.f32 %v2469_v36, %v6851_v8  ;;  %v3268_v30 = vmax.f32 %v2381_v60, 0.0 }
 0x1fd   : > { %5038 = vmatprep.subr.bf16.mxu0 %v5037_v27  ;;  %v5045_v39 = vpack.c.bf16 %v3239_v16, %v3207_v50  ;;  %v2386_v20 = vpop.f32.mrb[30].mxu0  ;;  %v2472_v10 = vadd.f32 %v2471_v59, %v6851_v8  ;;  %v3269_v0 = vmax.f32 %v2383_v25, 0.0 }
 0x1fe   : > { %5040 = vmatpush1.bf16.msra.mxu0 %v5039_v21  ;;  %v2387_v13 = vadd.f32 %v2386_v20, %v6854_v40  ;;  %v2388_v48 = vpop.f32.mrb[31].mxu0  ;;  %v3270_v35 = vmax.f32 %v2470_v32, 0.0 }
 0x1ff   : > { %v2475_v55 = vpop.f32.mrb[30].mxu1  ;;  %5046 = vmatprep.subr.bf16.mxu1 %v5045_v39  ;;  %v2389_v52 = vadd.f32 %v2388_v48, %v6854_v40  ;;  %v3271_v41 = vmax.f32 %v2472_v10, 0.0 }
 0x200   : > { %v3300_v19 = vmax.f32 %v2387_v13, 0.0  ;;  %v2476_v28 = vadd.f32 %v2475_v55, %v6854_v40  ;;  %v2477_v1 = vpop.f32.mrb[31].mxu1  ;;  %5048 = vmatpush1.bf16.msra.mxu1 %v5047_v31 }
 0x201   : > { %v3301_v49 = vmax.f32 %v2389_v52, 0.0  ;;  %v2478_v9 = vadd.f32 %v2477_v1, %v6854_v40 }
 0x202   : > { %v5043_v23 = vpack.c.bf16 %v3300_v19, %v3268_v30  ;;  %v3302_v47 = vmax.f32 %v2476_v28, 0.0 }
 0x203   : > { %v5041_v7 = vpack.c.bf16 %v3301_v49, %v3269_v0  ;;  %v3303_v34 = vmax.f32 %v2478_v9, 0.0 }
 0x204   : > { %v5051_v38 = vpack.c.bf16 %v3302_v47, %v3270_v35 }
 0x205   : > { %v5049_v43 = vpack.c.bf16 %v3303_v34, %v3271_v41  ;;  %5042 = vmatprep.subr.bf16.mxu0 %v5041_v7 }
 0x206   : > { %5044 = vmatpush1.bf16.msra.mxu0 %v5043_v23 }
 0x207   : > { %v2546_v57 = vpop.f32.mrb[32].mxu0  ;;  %5050 = vmatprep.subr.bf16.mxu1 %v5049_v43 }
 0x208   : > { %v2548_v17 = vpop.f32.mrb[33].mxu0  ;;  %5052 = vmatpush1.bf16.msra.mxu1 %v5051_v38  ;;  %v2547_v5 = vadd.f32 %v2546_v57, %v6839_v46 }
 0x209   : > { %4844 = vmatmul.mubr.msk.f32.vlgmr.msra.gmra.mrb[70].mxu0 %vm1755_vm7, %v6871_v42  ;;  %v2549_v62 = vadd.f32 %v2548_v17, %v6839_v46 }
 0x20a   : > { %v2635_v58 = vpop.f32.mrb[32].mxu1  ;;  %3962 = vmatprep.mubr.f32.mxu0 %v7273_v37  ;;  %v3208_v12 = vmax.f32 %v2547_v5, 0.0 }
 0x20b   : > { %v2637_v6 = vpop.f32.mrb[33].mxu1  ;;  %v2552_v18 = vpop.f32.mrb[34].mxu0  ;;  %4845 = vmatmul.mubr.msk.f32.vlgmr.msra.gmra.mrb[70].mxu1 %vm1755_vm7, %v6871_v42  ;;  %v2636_v2 = vadd.f32 %v2635_v58, %v6839_v46  ;;  %v3209_v44 = vmax.f32 %v2549_v62, 0.0 }
 0x20c   : > { %v2553_v4 = vadd.f32 %v2552_v18, %v6841_v14  ;;  %v2554_v51 = vpop.f32.mrb[35].mxu0  ;;  %4033 = vmatprep.mubr.f32.mxu1 %v7273_v37  ;;  %v2638_v54 = vadd.f32 %v2637_v6, %v6839_v46 }
 0x20d   : > { %v2555_v26 = vadd.f32 %v2554_v51, %v6841_v14  ;;  %v3210_v21 = vmax.f32 %v2636_v2, 0.0 }
 0x20e   : > { %v3240_v3 = vmax.f32 %v2553_v4, 0.0  ;;  %v2641_v45 = vpop.f32.mrb[34].mxu1  ;;  %v3211_v53 = vmax.f32 %v2638_v54, 0.0 }
 0x20f   : > { %v2642_v11 = vadd.f32 %v2641_v45, %v6841_v14  ;;  %v3241_v15 = vmax.f32 %v2555_v26, 0.0  ;;  %v2643_v61 = vpop.f32.mrb[35].mxu1 }
 0x210   : > { %v5055_v22 = vpack.c.bf16 %v3240_v3, %v3208_v12  ;;  %v2644_v63 = vadd.f32 %v2643_v61, %v6841_v14  ;;  %v2558_v29 = vpop.f32.mrb[36].mxu0 }
 0x211   : > { %v3242_v24 = vmax.f32 %v2642_v11, 0.0  ;;  %v5053_v56 = vpack.c.bf16 %v3241_v15, %v3209_v44  ;;  %v2560_v33 = vpop.f32.mrb[37].mxu0  ;;  %v2559_v31 = vadd.f32 %v2558_v29, %v6851_v8 }
 0x212   : > { %v3243_v27 = vmax.f32 %v2644_v63, 0.0  ;;  %v2647_v16 = vpop.f32.mrb[36].mxu1  ;;  %v2561_v59 = vadd.f32 %v2560_v33, %v6851_v8 }
 0x213   : > { %v5063_v50 = vpack.c.bf16 %v3242_v24, %v3210_v21  ;;  %5054 = vmatprep.subr.bf16.mxu0 %v5053_v56  ;;  %v2649_v60 = vpop.f32.mrb[37].mxu1  ;;  %v2648_v25 = vadd.f32 %v2647_v16, %v6851_v8  ;;  %v3272_v55 = vmax.f32 %v2559_v31, 0.0 }
 0x214   : > { %v5061_v36 = vpack.c.bf16 %v3243_v27, %v3211_v53  ;;  %5056 = vmatpush1.bf16.msra.mxu0 %v5055_v22  ;;  %v2564_v39 = vpop.f32.mrb[38].mxu0  ;;  %v2650_v13 = vadd.f32 %v2649_v60, %v6851_v8  ;;  %v3273_v28 = vmax.f32 %v2561_v59, 0.0 }
 0x215   : > { %v2565_v20 = vadd.f32 %v2564_v39, %v6854_v40  ;;  %v2566_v32 = vpop.f32.mrb[39].mxu0  ;;  %v3274_v49 = vmax.f32 %v2648_v25, 0.0 }
 0x216   : > { %5062 = vmatprep.subr.bf16.mxu1 %v5061_v36  ;;  %v2653_v48 = vpop.f32.mrb[38].mxu1  ;;  %v2567_v10 = vadd.f32 %v2566_v32, %v6854_v40  ;;  %v3275_v23 = vmax.f32 %v2650_v13, 0.0 }
 0x217   : > { %5064 = vmatpush1.bf16.msra.mxu1 %v5063_v50  ;;  %v3304_v52 = vmax.f32 %v2565_v20, 0.0  ;;  %v2654_v30 = vadd.f32 %v2653_v48, %v6854_v40  ;;  %v2655_v19 = vpop.f32.mrb[39].mxu1 }
 0x218   : > { %v3305_v1 = vmax.f32 %v2567_v10, 0.0  ;;  %v2656_v0 = vadd.f32 %v2655_v19, %v6854_v40 }
 0x219   : > { %v5059_v9 = vpack.c.bf16 %v3304_v52, %v3272_v55  ;;  %v3306_v35 = vmax.f32 %v2654_v30, 0.0 }
 0x21a   : > { %v5057_v47 = vpack.c.bf16 %v3305_v1, %v3273_v28  ;;  %v3307_v41 = vmax.f32 %v2656_v0, 0.0 }
 0x21b   : > { %v5067_v7 = vpack.c.bf16 %v3306_v35, %v3274_v49 }
 0x21c   : > { %v5065_v34 = vpack.c.bf16 %v3307_v41, %v3275_v23  ;;  %5058 = vmatprep.subr.bf16.mxu0 %v5057_v47 }
 0x21d   : > { %v2724_v38 = vpop.f32.mrb[40].mxu0  ;;  %5060 = vmatpush1.bf16.msra.mxu0 %v5059_v9 }
 0x21e   : > { %v2726_v43 = vpop.f32.mrb[41].mxu0  ;;  %5066 = vmatprep.subr.bf16.mxu1 %v5065_v34  ;;  %v2725_v5 = vadd.f32 %v2724_v38, %v6839_v46 }
 0x21f   : > { %5068 = vmatpush1.bf16.msra.mxu1 %v5067_v7  ;;  %v2727_v58 = vadd.f32 %v2726_v43, %v6839_v46 }
 0x220   : > { %4846 = vmatmul.mubr.msk.f32.vlgmr.msra.gmra.mrb[72].mxu0 %vm1755_vm7, %v6871_v42  ;;  %v3212_v12 = vmax.f32 %v2725_v5, 0.0 }
 0x221   : > { %v2813_v57 = vpop.f32.mrb[40].mxu1  ;;  %4104 = vmatprep.mubr.f32.mxu0 %v7273_v37  ;;  %v2730_v62 = vpop.f32.mrb[42].mxu0  ;;  %v3213_v44 = vmax.f32 %v2727_v58, 0.0 }
 0x222   : > { %v2815_v17 = vpop.f32.mrb[41].mxu1  ;;  %4847 = vmatmul.mubr.msk.f32.vlgmr.msra.gmra.mrb[72].mxu1 %vm1755_vm7, %v6871_v42  ;;  %v2814_v6 = vadd.f32 %v2813_v57, %v6839_v46  ;;  %v2731_v18 = vadd.f32 %v2730_v62, %v6841_v14  ;;  %v2732_v4 = vpop.f32.mrb[43].mxu0 }
 0x223   : > { %4175 = vmatprep.mubr.f32.mxu1 %v7273_v37  ;;  %v2816_v51 = vadd.f32 %v2815_v17, %v6839_v46  ;;  %v2733_v26 = vadd.f32 %v2732_v4, %v6841_v14 }
 0x224   : > { %v3244_v54 = vmax.f32 %v2731_v18, 0.0  ;;  %v3214_v22 = vmax.f32 %v2814_v6, 0.0 }
 0x225   : > { %v3245_v11 = vmax.f32 %v2733_v26, 0.0  ;;  %v3215_v24 = vmax.f32 %v2816_v51, 0.0 }
 0x226   : > { %v2819_v2 = vpop.f32.mrb[42].mxu1  ;;  %v5071_v63 = vpack.c.bf16 %v3244_v54, %v3212_v12 }
 0x227   : > { %v2820_v3 = vadd.f32 %v2819_v2, %v6841_v14  ;;  %v2821_v45 = vpop.f32.mrb[43].mxu1  ;;  %v2736_v61 = vpop.f32.mrb[44].mxu0  ;;  %v5069_v56 = vpack.c.bf16 %v3245_v11, %v3213_v44 }
 0x228   : > { %v2822_v15 = vadd.f32 %v2821_v45, %v6841_v14  ;;  %v2738_v21 = vpop.f32.mrb[45].mxu0  ;;  %v2737_v50 = vadd.f32 %v2736_v61, %v6851_v8 }
 0x229   : > { %v3246_v29 = vmax.f32 %v2820_v3, 0.0  ;;  %v2739_v31 = vadd.f32 %v2738_v21, %v6851_v8  ;;  %5070 = vmatprep.subr.bf16.mxu0 %v5069_v56 }
 0x22a   : > { %v3247_v33 = vmax.f32 %v2822_v15, 0.0  ;;  %v2825_v53 = vpop.f32.mrb[44].mxu1  ;;  %5072 = vmatpush1.bf16.msra.mxu0 %v5071_v63  ;;  %v3276_v32 = vmax.f32 %v2737_v50, 0.0 }
 0x22b   : > { %v5079_v27 = vpack.c.bf16 %v3246_v29, %v3214_v22  ;;  %v2827_v16 = vpop.f32.mrb[45].mxu1  ;;  %v2826_v25 = vadd.f32 %v2825_v53, %v6851_v8  ;;  %v3277_v55 = vmax.f32 %v2739_v31, 0.0 }
 0x22c   : > { %v5077_v36 = vpack.c.bf16 %v3247_v33, %v3215_v24  ;;  %v2742_v60 = vpop.f32.mrb[46].mxu0  ;;  %v2828_v13 = vadd.f32 %v2827_v16, %v6851_v8 }
 0x22d   : > { %v2743_v59 = vadd.f32 %v2742_v60, %v6854_v40  ;;  %v2744_v39 = vpop.f32.mrb[47].mxu0  ;;  %v3278_v0 = vmax.f32 %v2826_v25, 0.0 }
 0x22e   : > { %5078 = vmatprep.subr.bf16.mxu1 %v5077_v36  ;;  %v2745_v20 = vadd.f32 %v2744_v39, %v6854_v40  ;;  %v3279_v35 = vmax.f32 %v2828_v13, 0.0 }
 0x22f   : > { %v3308_v48 = vmax.f32 %v2743_v59, 0.0  ;;  %v2831_v10 = vpop.f32.mrb[46].mxu1  ;;  %5080 = vmatpush1.bf16.msra.mxu1 %v5079_v27 }
 0x230   : > { %v2832_v52 = vadd.f32 %v2831_v10, %v6854_v40  ;;  %v3309_v30 = vmax.f32 %v2745_v20, 0.0  ;;  %v2833_v19 = vpop.f32.mrb[47].mxu1 }
 0x231   : > { %v5075_v28 = vpack.c.bf16 %v3308_v48, %v3276_v32  ;;  %v2834_v1 = vadd.f32 %v2833_v19, %v6854_v40 }
 0x232   : > { %v3310_v49 = vmax.f32 %v2832_v52, 0.0  ;;  %v5073_v9 = vpack.c.bf16 %v3309_v30, %v3277_v55 }
 0x233   : > { %v3311_v23 = vmax.f32 %v2834_v1, 0.0 }
 0x234   : > { %v5083_v47 = vpack.c.bf16 %v3310_v49, %v3278_v0  ;;  %5074 = vmatprep.subr.bf16.mxu0 %v5073_v9 }
 0x235   : > { %v5081_v41 = vpack.c.bf16 %v3311_v23, %v3279_v35  ;;  %5076 = vmatpush1.bf16.msra.mxu0 %v5075_v28 }
 0x237   : > { %5082 = vmatprep.subr.bf16.mxu1 %v5081_v41 }
 0x238   : > { %v2902_v7 = vpop.f32.mrb[48].mxu0  ;;  %5084 = vmatpush1.bf16.msra.mxu1 %v5083_v47  ;;  %4848 = vmatmul.mubr.msk.f32.vlgmr.msra.gmra.mrb[74].mxu0 %vm1755_vm7, %v6871_v42 }
 0x239   : > { %v2904_v34 = vpop.f32.mrb[49].mxu0  ;;  %4246 = vmatprep.mubr.f32.mxu0 %v7273_v37  ;;  %v2903_v38 = vadd.f32 %v2902_v7, %v6839_v46 }
 0x23a   : > { %v2905_v57 = vadd.f32 %v2904_v34, %v6839_v46 }
 0x23b   : > { %v2991_v43 = vpop.f32.mrb[48].mxu1  ;;  %4849 = vmatmul.mubr.msk.f32.vlgmr.msra.gmra.mrb[74].mxu1 %vm1755_vm7, %v6871_v42  ;;  %v3216_v18 = vmax.f32 %v2903_v38, 0.0 }
 0x23c   : > { %v2993_v17 = vpop.f32.mrb[49].mxu1  ;;  %v2908_v5 = vpop.f32.mrb[50].mxu0  ;;  %4317 = vmatprep.mubr.f32.mxu1 %v7273_v37  ;;  %v2992_v51 = vadd.f32 %v2991_v43, %v6839_v46  ;;  %v3217_v2 = vmax.f32 %v2905_v57, 0.0 }
 0x23d   : > { %v2909_v58 = vadd.f32 %v2908_v5, %v6841_v14  ;;  %v2910_v62 = vpop.f32.mrb[51].mxu0  ;;  %v2994_v12 = vadd.f32 %v2993_v17, %v6839_v46 }
 0x23e   : > { %v2911_v6 = vadd.f32 %v2910_v62, %v6841_v14  ;;  %v3218_v63 = vmax.f32 %v2992_v51, 0.0 }
 0x23f   : > { %v3248_v4 = vmax.f32 %v2909_v58, 0.0  ;;  %v3219_v21 = vmax.f32 %v2994_v12, 0.0 }
 0x240   : > { %v3249_v26 = vmax.f32 %v2911_v6, 0.0 }
 0x241   : > { %v5087_v54 = vpack.c.bf16 %v3248_v4, %v3216_v18  ;;  %v2997_v3 = vpop.f32.mrb[50].mxu1  ;;  %v2914_v45 = vpop.f32.mrb[52].mxu0 }
 0x242   : > { %v2998_v44 = vadd.f32 %v2997_v3, %v6841_v14  ;;  %v5085_v11 = vpack.c.bf16 %v3249_v26, %v3217_v2  ;;  %v2999_v15 = vpop.f32.mrb[51].mxu1  ;;  %v2916_v61 = vpop.f32.mrb[53].mxu0  ;;  %v2915_v53 = vadd.f32 %v2914_v45, %v6851_v8 }
 0x243   : > { %v3000_v22 = vadd.f32 %v2999_v15, %v6841_v14  ;;  %v2917_v16 = vadd.f32 %v2916_v61, %v6851_v8 }
 0x244   : > { %v3250_v29 = vmax.f32 %v2998_v44, 0.0  ;;  %5086 = vmatprep.subr.bf16.mxu0 %v5085_v11  ;;  %v3280_v32 = vmax.f32 %v2915_v53, 0.0 }
 0x245   : > { %v3251_v24 = vmax.f32 %v3000_v22, 0.0  ;;  %v3003_v56 = vpop.f32.mrb[52].mxu1  ;;  %5088 = vmatpush1.bf16.msra.mxu0 %v5087_v54  ;;  %v3281_v55 = vmax.f32 %v2917_v16, 0.0 }
 0x246   : > { %v5095_v33 = vpack.c.bf16 %v3250_v29, %v3218_v63  ;;  %v3005_v27 = vpop.f32.mrb[53].mxu1  ;;  %v3004_v31 = vadd.f32 %v3003_v56, %v6851_v8 }
 0x247   : > { %v5093_v50 = vpack.c.bf16 %v3251_v24, %v3219_v21  ;;  %v2920_v36 = vpop.f32.mrb[54].mxu0  ;;  %v3006_v39 = vadd.f32 %v3005_v27, %v6851_v8 }
 0x248   : > { %v2921_v60 = vadd.f32 %v2920_v36, %v6854_v40  ;;  %v2922_v59 = vpop.f32.mrb[55].mxu0  ;;  %v3282_v19 = vmax.f32 %v3004_v31, 0.0 }
 0x249   : > { %v3009_v25 = vpop.f32.mrb[54].mxu1  ;;  %5094 = vmatprep.subr.bf16.mxu1 %v5093_v50  ;;  %v2923_v20 = vadd.f32 %v2922_v59, %v6854_v40  ;;  %v3283_v0 = vmax.f32 %v3006_v39, 0.0 }
 0x24a   : > { %v3312_v13 = vmax.f32 %v2921_v60, 0.0  ;;  %v3010_v48 = vadd.f32 %v3009_v25, %v6854_v40  ;;  %v3011_v10 = vpop.f32.mrb[55].mxu1  ;;  %5096 = vmatpush1.bf16.msra.mxu1 %v5095_v33 }
 0x24b   : > { %v3313_v52 = vmax.f32 %v2923_v20, 0.0  ;;  %v3012_v30 = vadd.f32 %v3011_v10, %v6854_v40 }
 0x24c   : > { %v5091_v28 = vpack.c.bf16 %v3312_v13, %v3280_v32  ;;  %v3314_v1 = vmax.f32 %v3010_v48, 0.0 }
 0x24d   : > { %v5089_v49 = vpack.c.bf16 %v3313_v52, %v3281_v55  ;;  %v3315_v9 = vmax.f32 %v3012_v30, 0.0 }
 0x24e   : > { %v5099_v35 = vpack.c.bf16 %v3314_v1, %v3282_v19  ;;  %v5328_v1 = vmov 1983009808  }
 0x24f   : > { %v5097_v23 = vpack.c.bf16 %v3315_v9, %v3283_v0  ;;  %5090 = vmatprep.subr.bf16.mxu0 %v5089_v49  ;;  %v4501_v0 = vunpack.c.l.s4 %v5328_v1  ;;  %v7026_v49 = vpop.permute.xlu0 %3324 }
 0x250   : > { %5092 = vmatpush1.bf16.msra.mxu0 %v5091_v28 }
 0x251   : > { %5098 = vmatprep.subr.bf16.mxu1 %v5097_v23 }
 0x252   : > { %5100 = vmatpush1.bf16.msra.mxu1 %v5099_v35 }
 0x253   : > { %v3080_v47 = vpop.f32.mrb[56].mxu0  ;;  %4850 = vmatmul.mubr.msk.f32.vlgmr.msra.gmra.mrb[76].mxu0 %vm1755_vm7, %v6871_v42 }
 0x254   : > { %v3082_v41 = vpop.f32.mrb[57].mxu0  ;;  %4388 = vmatprep.mubr.f32.mxu0 %v7273_v37  ;;  %v3081_v7 = vadd.f32 %v3080_v47, %v6839_v46 }
 0x255   : > { %4851 = vmatmul.mubr.msk.f32.vlgmr.msra.gmra.mrb[76].mxu1 %vm1755_vm7, %v6871_v42  ;;  %v3083_v38 = vadd.f32 %v3082_v41, %v6839_v46  ;;  %v7321_v41 = vld [vmem:[#allocation8_spill] sm:$0xff] }
 0x256   : > { %v3169_v34 = vpop.f32.mrb[56].mxu1  ;;  %4459 = vmatprep.mubr.f32.mxu1 %v7273_v37  ;;  %v3220_v6 = vmax.f32 %v3081_v7, 0.0 }
 0x257   : > { %v3171_v43 = vpop.f32.mrb[57].mxu1  ;;  %v3086_v57 = vpop.f32.mrb[58].mxu0  ;;  %v3170_v58 = vadd.f32 %v3169_v34, %v6839_v46  ;;  %v3221_v2 = vmax.f32 %v3083_v38, 0.0 }
 0x258   : > { %v3087_v17 = vadd.f32 %v3086_v57, %v6841_v14  ;;  %v3088_v5 = vpop.f32.mrb[59].mxu0  ;;  %v3172_v18 = vadd.f32 %v3171_v43, %v6839_v46 }
 0x259   : > { %v3089_v62 = vadd.f32 %v3088_v5, %v6841_v14  ;;  %v3222_v11 = vmax.f32 %v3170_v58, 0.0 }
 0x25a   : > { %v3252_v4 = vmax.f32 %v3087_v17, 0.0  ;;  %v3175_v51 = vpop.f32.mrb[58].mxu1  ;;  %v3223_v22 = vmax.f32 %v3172_v18, 0.0 }
 0x25b   : > { %v3176_v26 = vadd.f32 %v3175_v51, %v6841_v14  ;;  %v3253_v37 = vmax.f32 %v3089_v62, 0.0  ;;  %v3177_v12 = vpop.f32.mrb[59].mxu1  ;;  %v3092_v54 = vpop.f32.mrb[60].mxu0 }
 0x25c   : > { %v5103_v3 = vpack.c.bf16 %v3252_v4, %v3220_v6  ;;  %v3178_v45 = vadd.f32 %v3177_v12, %v6841_v14  ;;  %v3094_v44 = vpop.f32.mrb[61].mxu0  ;;  %v3093_v29 = vadd.f32 %v3092_v54, %v6851_v8 }
 0x25d   : > { %v3254_v15 = vmax.f32 %v3176_v26, 0.0  ;;  %v5101_v61 = vpack.c.bf16 %v3253_v37, %v3221_v2  ;;  %v3095_v24 = vadd.f32 %v3094_v44, %v6851_v8 }
 0x25e   : > { %v3255_v63 = vmax.f32 %v3178_v45, 0.0  ;;  %v3181_v46 = vpop.f32.mrb[60].mxu1  ;;  %v3284_v36 = vmax.f32 %v3093_v29, 0.0 }
 0x25f   : > { %v5111_v21 = vpack.c.bf16 %v3254_v15, %v3222_v11  ;;  %v3183_v56 = vpop.f32.mrb[61].mxu1  ;;  %v3098_v33 = vpop.f32.mrb[62].mxu0  ;;  %5102 = vmatprep.subr.bf16.mxu0 %v5101_v61  ;;  %v3182_v14 = vadd.f32 %v3181_v46, %v6851_v8  ;;  %v3285_v39 = vmax.f32 %v3095_v24, 0.0 }
 0x260   : > { %v5109_v53 = vpack.c.bf16 %v3255_v63, %v3223_v22  ;;  %v3099_v27 = vadd.f32 %v3098_v33, %v6854_v40  ;;  %v3100_v50 = vpop.f32.mrb[63].mxu0  ;;  %5104 = vmatpush1.bf16.msra.mxu0 %v5103_v3  ;;  %v3184_v31 = vadd.f32 %v3183_v56, %v6851_v8 }
 0x261   : > { %v3101_v16 = vadd.f32 %v3100_v50, %v6854_v40  ;;  %v3286_v10 = vmax.f32 %v3182_v14, 0.0 }
 0x262   : > { %v3316_v60 = vmax.f32 %v3099_v27, 0.0  ;;  %v3187_v59 = vpop.f32.mrb[62].mxu1  ;;  %5110 = vmatprep.subr.bf16.mxu1 %v5109_v53  ;;  %v3287_v30 = vmax.f32 %v3184_v31, 0.0 }
 0x263   : > { %v3188_v25 = vadd.f32 %v3187_v59, %v6854_v40  ;;  %v3317_v20 = vmax.f32 %v3101_v16, 0.0  ;;  %v3189_v32 = vpop.f32.mrb[63].mxu1  ;;  %5112 = vmatpush1.bf16.msra.mxu1 %v5111_v21 }
 0x264   : > { %v5107_v13 = vpack.c.bf16 %v3316_v60, %v3284_v36  ;;  %v3190_v48 = vadd.f32 %v3189_v32, %v6854_v40  ;;  %v4502_v40 = vunpack.c.0.s8 %v4501_v0 }
 0x265   : > { %v3318_v55 = vmax.f32 %v3188_v25, 0.0  ;;  %v5105_v52 = vpack.c.bf16 %v3317_v20, %v3285_v39 }
 0x266   : > { %v3319_v19 = vmax.f32 %v3190_v48, 0.0  ;;  %v7030_v7 = vsub.s32 %v4502_v40, %v7321_v41 }
 0x267   : > { %v5115_v28 = vpack.c.bf16 %v3318_v55, %v3286_v10  ;;  %5106 = vmatprep.subr.bf16.mxu0 %v5105_v52 }
 0x268   : > { %v5113_v8 = vpack.c.bf16 %v3319_v19, %v3287_v30  ;;  %5108 = vmatpush1.bf16.msra.mxu0 %v5107_v13 }
 0x26a   : > { %5114 = vmatprep.subr.bf16.mxu1 %v5113_v8 }
 0x26b   : > { %5116 = vmatpush1.bf16.msra.mxu1 %v5115_v28  ;;  %4852 = vmatmul.mubr.msk.f32.vlgmr.msra.gmra.mrb[78].mxu0 %vm1755_vm7, %v6871_v42 }
 0x26e   : > { %4853 = vmatmul.mubr.msk.f32.vlgmr.msra.gmra.mrb[78].mxu1 %vm1755_vm7, %v6871_v42 }
 0x2a2   : > { %v3396_v9 = vpop.f32.mrb[64].mxu0  ;;  %v3467_v23 = vpop.f32.mrb[64].mxu1 }
 0x2a3   : > { %v3397_v35 = vadd.f32 %v3396_v9, %v7026_v49  ;;  %v3398_v47 = vpop.f32.mrb[65].mxu0  ;;  %v3468_v34 = vadd.f32 %v3467_v23, %v7026_v49  ;;  %v3469_v43 = vpop.f32.mrb[65].mxu1 }
 0x2a4   : > { %v3399_v38 = vadd.f32 %v3398_v47, %v7026_v49  ;;  %v3470_v42 = vadd.f32 %v3469_v43, %v7026_v49 }
 0x2a6   : > { %v4498_v57 = vcombine.low %v3397_v35, %v3399_v38  ;;  %v4499_v17 = vcombine.low %v3468_v34, %v3470_v42 }
 0x2a8   : > { %v4506_v5 = vrot.slane %v4498_v57, %v7030_v7  ;;  %v4513_v58 = vrot.slane %v4499_v17, %v7030_v7 }
 0x2aa   : > { %v4514_v62 = vcombine.low %v4506_v5, %v4513_v58 }
 0x2ac   : > { %4642 = vst [vmem:[%s7039_s22] sm:$0xff] %v4514_v62 }
 0x2b2   : > { %v3538_v6 = vpop.f32.mrb[66].mxu0 }
 0x2b3   : > { %v3539_v4 = vadd.f32 %v3538_v6, %v7026_v49  ;;  %v3540_v2 = vpop.f32.mrb[67].mxu0 }
 0x2b4   : > { %v3609_v18 = vpop.f32.mrb[66].mxu1  ;;  %v3541_v37 = vadd.f32 %v3540_v2, %v7026_v49 }
 0x2b5   : > { %v3610_v51 = vadd.f32 %v3609_v18, %v7026_v49  ;;  %v3611_v26 = vpop.f32.mrb[67].mxu1 }
 0x2b6   : > { %v3612_v12 = vadd.f32 %v3611_v26, %v7026_v49  ;;  %v4515_v54 = vcombine.low %v3539_v4, %v3541_v37 }
 0x2b8   : > { %v4516_v3 = vcombine.low %v3610_v51, %v3612_v12  ;;  %v4523_v45 = vrot.slane %v4515_v54, %v7030_v7 }
 0x2ba   : > { %v4530_v44 = vrot.slane %v4516_v3, %v7030_v7 }
 0x2bc   : > { %v4531_v11 = vcombine.low %v4523_v45, %v4530_v44 }
 0x2be   : > { %4643 = vst [vmem:[%s7039_s22 + $0x8] sm:$0xff] %v4531_v11 }
 0x2c7   : > { %v3680_v15 = vpop.f32.mrb[68].mxu0 }
 0x2c8   : > { %v3681_v61 = vadd.f32 %v3680_v15, %v7026_v49  ;;  %v3682_v22 = vpop.f32.mrb[69].mxu0 }
 0x2c9   : > { %v3751_v63 = vpop.f32.mrb[68].mxu1  ;;  %v3683_v29 = vadd.f32 %v3682_v22, %v7026_v49 }
 0x2ca   : > { %v3752_v46 = vadd.f32 %v3751_v63, %v7026_v49  ;;  %v3753_v21 = vpop.f32.mrb[69].mxu1 }
 0x2cb   : > { %v4532_v24 = vcombine.low %v3681_v61, %v3683_v29  ;;  %v3754_v56 = vadd.f32 %v3753_v21, %v7026_v49 }
 0x2cd   : > { %v4540_v33 = vrot.slane %v4532_v24, %v7030_v7  ;;  %v4533_v53 = vcombine.low %v3752_v46, %v3754_v56 }
 0x2cf   : > { %v4547_v27 = vrot.slane %v4533_v53, %v7030_v7 }
 0x2d1   : > { %v4548_v50 = vcombine.low %v4540_v33, %v4547_v27 }
 0x2d3   : > { %4644 = vst [vmem:[%s7039_s22 + $0x10] sm:$0xff] %v4548_v50 }
 0x2dc   : > { %v3822_v14 = vpop.f32.mrb[70].mxu0 }
 0x2dd   : > { %v3823_v16 = vadd.f32 %v3822_v14, %v7026_v49  ;;  %v3824_v36 = vpop.f32.mrb[71].mxu0 }
 0x2de   : > { %v3893_v31 = vpop.f32.mrb[70].mxu1  ;;  %v3825_v60 = vadd.f32 %v3824_v36, %v7026_v49 }
 0x2df   : > { %v3894_v59 = vadd.f32 %v3893_v31, %v7026_v49  ;;  %v3895_v39 = vpop.f32.mrb[71].mxu1 }
 0x2e0   : > { %v4549_v25 = vcombine.low %v3823_v16, %v3825_v60  ;;  %v3896_v20 = vadd.f32 %v3895_v39, %v7026_v49 }
 0x2e2   : > { %v4557_v32 = vrot.slane %v4549_v25, %v7030_v7  ;;  %v4550_v13 = vcombine.low %v3894_v59, %v3896_v20 }
 0x2e4   : > { %v4564_v48 = vrot.slane %v4550_v13, %v7030_v7 }
 0x2e6   : > { %v4565_v10 = vcombine.low %v4557_v32, %v4564_v48 }
 0x2e8   : > { %4645 = vst [vmem:[%s7039_s22 + $0x18] sm:$0xff] %v4565_v10 }
 0x2f3   : > { %v3964_v55 = vpop.f32.mrb[72].mxu0 }
 0x2f4   : > { %v3965_v52 = vadd.f32 %v3964_v55, %v7026_v49  ;;  %v3966_v30 = vpop.f32.mrb[73].mxu0 }
 0x2f5   : > { %v4035_v19 = vpop.f32.mrb[72].mxu1  ;;  %v3967_v28 = vadd.f32 %v3966_v30, %v7026_v49 }
 0x2f6   : > { %v4036_v8 = vadd.f32 %v4035_v19, %v7026_v49  ;;  %v4037_v1 = vpop.f32.mrb[73].mxu1 }
 0x2f7   : > { %v4566_v0 = vcombine.low %v3965_v52, %v3967_v28  ;;  %v4038_v40 = vadd.f32 %v4037_v1, %v7026_v49 }
 0x2f9   : > { %v4574_v9 = vrot.slane %v4566_v0, %v7030_v7  ;;  %v4567_v35 = vcombine.low %v4036_v8, %v4038_v40 }
 0x2fb   : > { %v4581_v23 = vrot.slane %v4567_v35, %v7030_v7 }
 0x2fd   : > { %v4582_v47 = vcombine.low %v4574_v9, %v4581_v23 }
 0x2ff   : > { %4646 = vst [vmem:[%s7039_s22 + $0x20] sm:$0xff] %v4582_v47 }
 0x30b   : > { %v4106_v41 = vpop.f32.mrb[74].mxu0 }
 0x30c   : > { %v4107_v34 = vadd.f32 %v4106_v41, %v7026_v49  ;;  %v4108_v38 = vpop.f32.mrb[75].mxu0 }
 0x30d   : > { %v4109_v43 = vadd.f32 %v4108_v38, %v7026_v49 }
 0x30e   : > { %v4177_v42 = vpop.f32.mrb[74].mxu1 }
 0x30f   : > { %v4178_v57 = vadd.f32 %v4177_v42, %v7026_v49  ;;  %v4583_v17 = vcombine.low %v4107_v34, %v4109_v43  ;;  %v4179_v5 = vpop.f32.mrb[75].mxu1 }
 0x310   : > { %v4180_v58 = vadd.f32 %v4179_v5, %v7026_v49 }
 0x311   : > { %v4591_v62 = vrot.slane %v4583_v17, %v7030_v7 }
 0x312   : > { %v4584_v6 = vcombine.low %v4178_v57, %v4180_v58 }
 0x314   : > { %v4598_v18 = vrot.slane %v4584_v6, %v7030_v7 }
 0x316   : > { %v4599_v4 = vcombine.low %v4591_v62, %v4598_v18 }
 0x318   : > { %4647 = vst [vmem:[%s7039_s22 + $0x28] sm:$0xff] %v4599_v4 }
 0x326   : > { %v4248_v51 = vpop.f32.mrb[76].mxu0 }
 0x327   : > { %v4249_v2 = vadd.f32 %v4248_v51, %v7026_v49  ;;  %v4250_v26 = vpop.f32.mrb[77].mxu0 }
 0x328   : > { %v4319_v37 = vpop.f32.mrb[76].mxu1  ;;  %v4251_v12 = vadd.f32 %v4250_v26, %v7026_v49 }
 0x329   : > { %v4320_v54 = vadd.f32 %v4319_v37, %v7026_v49  ;;  %v4321_v3 = vpop.f32.mrb[77].mxu1 }
 0x32a   : > { %v4600_v45 = vcombine.low %v4249_v2, %v4251_v12  ;;  %v4322_v44 = vadd.f32 %v4321_v3, %v7026_v49 }
 0x32c   : > { %v4608_v11 = vrot.slane %v4600_v45, %v7030_v7  ;;  %v4601_v15 = vcombine.low %v4320_v54, %v4322_v44 }
 0x32e   : > { %v4615_v61 = vrot.slane %v4601_v15, %v7030_v7 }
 0x330   : > { %v4616_v22 = vcombine.low %v4608_v11, %v4615_v61 }
 0x332   : > { %4648 = vst [vmem:[%s7039_s22 + $0x30] sm:$0xff] %v4616_v22 }
 0x33e   : > { %v4390_v63 = vpop.f32.mrb[78].mxu0 }
 0x33f   : > { %v4391_v29 = vadd.f32 %v4390_v63, %v7026_v49  ;;  %v4392_v46 = vpop.f32.mrb[79].mxu0 }
 0x340   : > { %v4393_v21 = vadd.f32 %v4392_v46, %v7026_v49 }
 0x341   : > { %v4461_v24 = vpop.f32.mrb[78].mxu1 }
 0x342   : > { %v4462_v56 = vadd.f32 %v4461_v24, %v7026_v49  ;;  %v4617_v33 = vcombine.low %v4391_v29, %v4393_v21  ;;  %v4463_v53 = vpop.f32.mrb[79].mxu1 }
 0x343   : > { %v4464_v27 = vadd.f32 %v4463_v53, %v7026_v49 }
 0x344   : > { %v4625_v50 = vrot.slane %v4617_v33, %v7030_v7 }
 0x345   : > { %v4618_v14 = vcombine.low %v4462_v56, %v4464_v27 }
 0x347   : > { %v4632_v16 = vrot.slane %v4618_v14, %v7030_v7 }
 0x349   : > { %v4633_v36 = vcombine.low %v4625_v50, %v4632_v16 }
 0x34b   : > { %4649 = vst [vmem:[%s7039_s22 + $0x38] sm:$0xff] %v4633_v36 }
 0x34c   : > { %5253 = shalt.err (!%p5250_p5)
}
 0x34d   : > { %s5254_s23 = scalar_lea.hbm %s7095_s25, 1024  ;;  %s5258_s15 = scalar_lea.hbm %s7152_s8, 8192 }
 0x34e   : > { %p5255_p4 = scmp.ne.s32.totalorder %s7095_s25, %s5254_s23  ;;  %p5259_p0 = scmp.lt.u32.totalorder %s7095_s25, %s7152_s8 }
 0x34f   : > { %p5260_p1 = scmp.lt.u32.totalorder %s5258_s15, %s5254_s23  ;;  %p5262_p8 = scmp.lt.u32.totalorder %s5254_s23, %s7095_s25 }
 0x350   : > { %p5256_p7 = pnand %p5255_p4, %p7322_p9 }
 0x351   : > { %p5261_p3 = por %p5260_p1, %p5259_p0 }
 0x352   : > { %p5257_p10 = pneg %p5256_p7 }
 0x353   : > { %p5263_p11 = por %p5262_p8, %p5261_p3 }
 0x355   : > { %p5264_p13 = pnand %p5263_p11, %p5257_p10 }
 0x357   : > { %5267 = shalt.err (!%p5264_p13)
}
 0x358   : > { %5119 = dma.vmem_to_hbm [thread:$0]  (%p7322_p9), %s7097_s24, 1024, %s7095_s25, %s4651_s11  }
 0x359 PF: > { %p5130_p6 = scmp.ge.s32.totalorder %s5322_s10, 2  ;;  %s4679_s26 = sand.u32 1, %s5302_s27  }
 0x35a   : > { %p7323_p12 = scmp.ne.s32.totalorder %s7220_s20, 0  ;;  %s4680_s30 = scalar_lea.sflag [#allocation4], %s4679_s26 }
 0x35c   : > { %p5126_p2 = pnand %p5130_p6, %p7323_p12 }
 0x35e   : > { %5297 = dma.done.wait (!%p5126_p2), %s4680_s30, 1024  }
 0x35f   : > { %5299 = vsyncadd (!%p5126_p2), %s4680_s30, 4294966272  ;;  %s24_s10 = sadd.s32 1, %s5322_s10   ;;  %s7324_s27 = smov %s5306_s28 }
 0x360   : > { %p21_p5 = scmp.ge.s32.totalorder %s24_s10, 10   ;;  %s7325_s28 = smov %s5310_s29 }
 0x361   : > { %s7326_s29 = smov %s5431_s19  ;;  %s7327_s30 = smov %s5318_s9 }
 0x362   : > { %s7328_s9 = smov %s7330_s13  ;;  %23 = sbr.rel (!%p21_p5) target bundleno = 6 (0x6), region = 100 }
 0x369   :  { %4685 = vsyncpa [#allocation3], 1 }
 0x36a   :  { %4687 = vsyncpa [#allocation3 + $0x1], 1 }
 0x36b   :  { %4688 = vsyncpa [#allocation4], 1 }
 0x36c   :  { %4690 = vsyncpa [#allocation4 + $0x1], 1 }

</bundles_post_ra>
